<compile_context>
chip_gen: v6e
topology: v6e:2x2x1
jax: 0.10.0
libtpu: 0.0.40
codegen_flags: <defaults>
</compile_context>

<pallas_src>
import math
import functools

import jax
import jax.numpy as jnp
from jax import lax
from jax.experimental import pallas as pl
from jax.experimental.pallas import tpu as pltpu


MATMUL_DTYPE = jnp.bfloat16   # MXU-native; accumulation is always f32
NEG_INF = -1e30               # large finite negative; avoids inf-inf NaNs
LN_EPS = 1e-5
VMEM_LIMIT = 64 * 1024 * 1024


def _choose_tile(dim, preferred, granules):
    """Largest tile <= preferred that is a multiple of one of `granules`
    (tried in order) and divides `dim`; falls back to the full dim (legal)."""
    if dim <= preferred:
        return dim
    for g in granules:
        t = (preferred // g) * g
        while t >= g:
            if dim % t == 0:
                return t
            t -= g
    return dim


# ----------------------------- tiled linear -----------------------------

def _linear_kernel(x_ref, w_ref, b_ref, o_ref, acc_ref, *, activation):
    @pl.when(pl.program_id(2) == 0)
    def _():
        acc_ref[...] = jnp.zeros_like(acc_ref)

    acc_ref[...] += jnp.dot(x_ref[...].astype(MATMUL_DTYPE),
                            w_ref[...].astype(MATMUL_DTYPE),
                            preferred_element_type=jnp.float32)

    @pl.when(pl.program_id(2) == pl.num_programs(2) - 1)
    def _():
        out = acc_ref[...] + b_ref[...]
        if activation == "relu":
            out = jnp.maximum(out, 0.0)
        o_ref[...] = out.astype(o_ref.dtype)


def linear(x2d, w, b, activation=None, out_dtype=jnp.float32, *,
           tm=256, tn=256, tk=512):
    """x2d: [M, K], w: [K, N] (bf16 in HBM), b: [N] -> [M, N].
    Tiled, pipelined bf16 MXU matmul with f32 accumulator; cast is in-kernel."""
    M, K = x2d.shape
    Kw, N = w.shape
    assert K == Kw
    tm = _choose_tile(M, tm, (256, 8))
    tn = _choose_tile(N, tn, (256, 128))
    tk = _choose_tile(K, tk, (256, 128))
    kern = functools.partial(_linear_kernel, activation=activation)
    return pl.pallas_call(
        kern,
        out_shape=jax.ShapeDtypeStruct((M, N), out_dtype),
        grid=(M // tm, N // tn, K // tk),
        in_specs=[
            pl.BlockSpec((tm, tk), lambda i, j, k: (i, k)),
            pl.BlockSpec((tk, tn), lambda i, j, k: (k, j)),
            pl.BlockSpec((1, tn), lambda i, j, k: (0, j)),
        ],
        out_specs=pl.BlockSpec((tm, tn), lambda i, j, k: (i, j)),
        scratch_shapes=[pltpu.VMEM((tm, tn), jnp.float32)],
        compiler_params=pltpu.CompilerParams(
            dimension_semantics=("parallel", "parallel", "arbitrary"),
            vmem_limit_bytes=VMEM_LIMIT),
    )(x2d, w, b.reshape(1, N).astype(jnp.float32))


# -------- flash attention + fused out-proj / residual / LayerNorm --------

def _flash_attn_kernel(*refs, causal, has_mask, nhead, dh, tq, tk, eps):
    if has_mask:
        (q_ref, k_ref, v_ref, msk_ref, wo_ref, bo_ref, res_ref, g_ref, be_ref,
         o_ref, m_scr, l_scr, acc_scr, o_scr) = refs
    else:
        (q_ref, k_ref, v_ref, wo_ref, bo_ref, res_ref, g_ref, be_ref,
         o_ref, m_scr, l_scr, acc_scr, o_scr) = refs

    qi = pl.program_id(1)
    ki = pl.program_id(2)

    @pl.when(ki == 0)
    def _():
        m_scr[...] = jnp.full_like(m_scr, NEG_INF)
        l_scr[...] = jnp.zeros_like(l_scr)
        acc_scr[...] = jnp.zeros_like(acc_scr)

    def body():
        q = q_ref[0]                         # [tq, D] bf16 (scale pre-folded)
        k = k_ref[0]                         # [tk, D] bf16
        v = v_ref[0]                         # [tk, D] bf16
        if causal:
            q_pos = qi * tq + lax.broadcasted_iota(jnp.int32, (tq, tk), 0)
            k_pos = ki * tk + lax.broadcasted_iota(jnp.int32, (tq, tk), 1)
            cmask = k_pos > q_pos
        if has_mask:
            add_mask = msk_ref[0]            # [1, tk] additive (0 / NEG_INF)
        # per-head online softmax; heads are static lane slices (no transposes)
        for h in range(nhead):
            sl = slice(h * dh, (h + 1) * dh)
            s = lax.dot_general(q[:, sl], k[:, sl],
                                (((1,), (1,)), ((), ())),
                                preferred_element_type=jnp.float32)  # [tq, tk]
            if causal:
                s = jnp.where(cmask, NEG_INF, s)
            if has_mask:
                s = s + add_mask
            m_prev = m_scr[h]                                        # [tq, 1]
            m_new = jnp.maximum(m_prev, jnp.max(s, axis=-1, keepdims=True))
            alpha = jnp.exp(m_prev - m_new)
            p = jnp.exp(s - m_new)
            l_scr[h] = alpha * l_scr[h] + jnp.sum(p, axis=-1, keepdims=True)
            acc_scr[h] = alpha * acc_scr[h] + jnp.dot(
                p.astype(MATMUL_DTYPE), v[:, sl],
                preferred_element_type=jnp.float32)                  # [tq, dh]
            m_scr[h] = m_new

    if causal:
        # skip k-blocks entirely above the diagonal
        @pl.when(ki * tk < (qi + 1) * tq)
        def _():
            body()
    else:
        body()

    @pl.when(ki == pl.num_programs(2) - 1)
    def _():
        # assemble lane-dense [tq, D] attention output in VMEM
        for h in range(nhead):
            l = l_scr[h]
            l = jnp.where(l == 0.0, 1.0, l)  # guard fully-masked rows
            o_scr[:, h * dh:(h + 1) * dh] = (
                acc_scr[h] * pl.reciprocal(l, approx=True))
        # fused out-projection + residual add + LayerNorm (never hits HBM)
        y = jnp.dot(o_scr[...].astype(MATMUL_DTYPE), wo_ref[...],
                    preferred_element_type=jnp.float32) + bo_ref[...]
        hr = res_ref[0] + y
        mean = jnp.mean(hr, axis=-1, keepdims=True)
        var = jnp.mean((hr - mean) ** 2, axis=-1, keepdims=True)
        o_ref[0] = ((hr - mean) * lax.rsqrt(var + eps) * g_ref[...]
                    + be_ref[...]).astype(o_ref.dtype)


def attention_ln(q, k, v, key_mask, w_o, b_o, residual, gamma, beta, *,
                 nhead, causal, eps=LN_EPS, tq=256, tk=256):
    """Returns LayerNorm(residual + MHA(q, k, v) @ w_o + b_o).
    q: [B, Tq, D] bf16, k/v: [B, Tk, D] bf16 (softmax scale folded into q),
    key_mask: [B, 1, Tk] additive f32 or None, residual: [B, Tq, D] f32."""
    B, Tq, D = q.shape
    Tk = k.shape[1]
    dh = D // nhead
    tq = _choose_tile(Tq, tq, (128, 8))
    tk = _choose_tile(Tk, tk, (128, 8))
    has_mask = key_mask is not None
    kern = functools.partial(_flash_attn_kernel, causal=causal,
                             has_mask=has_mask, nhead=nhead, dh=dh,
                             tq=tq, tk=tk, eps=eps)
    in_specs = [
        pl.BlockSpec((1, tq, D), lambda b, i, j: (b, i, 0)),   # q
        pl.BlockSpec((1, tk, D), lambda b, i, j: (b, j, 0)),   # k
        pl.BlockSpec((1, tk, D), lambda b, i, j: (b, j, 0)),   # v
    ]
    args = [q, k, v]
    if has_mask:
        in_specs.append(pl.BlockSpec((1, 1, tk), lambda b, i, j: (b, 0, j)))
        args.append(key_mask)
    in_specs += [
        pl.BlockSpec((D, D), lambda b, i, j: (0, 0)),          # w_o (bf16)
        pl.BlockSpec((1, D), lambda b, i, j: (0, 0)),          # b_o
        pl.BlockSpec((1, tq, D), lambda b, i, j: (b, i, 0)),   # residual
        pl.BlockSpec((1, D), lambda b, i, j: (0, 0)),          # gamma
        pl.BlockSpec((1, D), lambda b, i, j: (0, 0)),          # beta
    ]
    args += [w_o, b_o.reshape(1, D).astype(jnp.float32), residual,
             gamma.reshape(1, D), beta.reshape(1, D)]
    return pl.pallas_call(
        kern,
        out_shape=jax.ShapeDtypeStruct((B, Tq, D), jnp.float32),
        grid=(B, Tq // tq, Tk // tk),
        in_specs=in_specs,
        out_specs=pl.BlockSpec((1, tq, D), lambda b, i, j: (b, i, 0)),
        scratch_shapes=[
            pltpu.VMEM((nhead, tq, 1), jnp.float32),   # m (running max)
            pltpu.VMEM((nhead, tq, 1), jnp.float32),   # l (running denom)
            pltpu.VMEM((nhead, tq, dh), jnp.float32),  # acc
            pltpu.VMEM((tq, D), jnp.float32),          # lane-dense head merge
        ],
        compiler_params=pltpu.CompilerParams(
            dimension_semantics=("parallel", "parallel", "arbitrary"),
            vmem_limit_bytes=VMEM_LIMIT),
    )(*args)


# --------------------- fused FFN + residual + LayerNorm ---------------------

def _ffn_res_ln_kernel(x_ref, w1_ref, b1_ref, w2_ref, b2_ref,
                       g_ref, be_ref, o_ref, *, eps):
    x = x_ref[...]                                              # f32
    h = jnp.dot(x.astype(MATMUL_DTYPE), w1_ref[...],
                preferred_element_type=jnp.float32) + b1_ref[...]
    h = jnp.maximum(h, 0.0)
    y = jnp.dot(h.astype(MATMUL_DTYPE), w2_ref[...],
                preferred_element_type=jnp.float32) + b2_ref[...]
    r = x + y
    mean = jnp.mean(r, axis=-1, keepdims=True)
    var = jnp.mean((r - mean) ** 2, axis=-1, keepdims=True)
    o_ref[...] = ((r - mean) * lax.rsqrt(var + eps) * g_ref[...]
                  + be_ref[...]).astype(o_ref.dtype)


def ffn_residual_layernorm(x2d, w1, b1, w2, b2, gamma, beta, eps=LN_EPS, *,
                           tm=256):
    """LayerNorm(x + relu(x@w1+b1)@w2+b2); intermediate stays in VMEM.
    Weights are bf16-resident (halved VMEM vs f32 -> fits v7x / v5e scope)."""
    M, D = x2d.shape
    F = w1.shape[1]
    tm = _choose_tile(M, tm, (256, 8))
    kern = functools.partial(_ffn_res_ln_kernel, eps=eps)
    return pl.pallas_call(
        kern,
        out_shape=jax.ShapeDtypeStruct((M, D), jnp.float32),
        grid=(M // tm,),
        in_specs=[
            pl.BlockSpec((tm, D), lambda i: (i, 0)),
            pl.BlockSpec((D, F), lambda i: (0, 0)),
            pl.BlockSpec((1, F), lambda i: (0, 0)),
            pl.BlockSpec((F, D), lambda i: (0, 0)),
            pl.BlockSpec((1, D), lambda i: (0, 0)),
            pl.BlockSpec((1, D), lambda i: (0, 0)),
            pl.BlockSpec((1, D), lambda i: (0, 0)),
        ],
        out_specs=pl.BlockSpec((tm, D), lambda i: (i, 0)),
        compiler_params=pltpu.CompilerParams(
            dimension_semantics=("parallel",),
            vmem_limit_bytes=VMEM_LIMIT),
    )(x2d, w1, b1.reshape(1, F).astype(jnp.float32), w2,
      b2.reshape(1, D).astype(jnp.float32),
      gamma.reshape(1, D), beta.reshape(1, D))


# ----------------------------- model glue -----------------------------

def forward(params, tgt_ids, memory, tgt_pad_mask=None, *, nhead):
    B, T = tgt_ids.shape
    D = params["token_embedding"].shape[1]
    Te, E = memory.shape[1], memory.shape[2]

    # token embedding + positional encoding (glue: gather + elementwise add)
    emb = jnp.take(params["token_embedding"], tgt_ids, axis=0)       # [B, T, D]
    x2d = (emb + params["pe"][None, :T, :]).reshape(B * T, D)        # f32

    # encoder projection (K = 1280); bf16 out (consumed only by K/V matmuls)
    mem2d = linear(memory.reshape(B * Te, E), params["enc_w"], params["enc_b"],
                   out_dtype=MATMUL_DTYPE)

    # optional key-padding mask for self-attention (additive, finite negative)
    key_mask = None
    if tgt_pad_mask is not None:   # [B, T] bool, True = ignore that key
        key_mask = jnp.where(tgt_pad_mask, NEG_INF, 0.0).astype(
            jnp.float32).reshape(B, 1, T)

    for lp in params["layers"]:
        # 1) masked self-attention: fused QKV projection (bf16 intermediates),
        #    flash attention with fused out-proj + residual + LayerNorm.
        qkv = linear(x2d, lp["sa_w_qkv"], lp["sa_b_qkv"], out_dtype=MATMUL_DTYPE)
        q = qkv[:, :D].reshape(B, T, D)
        k = qkv[:, D:2 * D].reshape(B, T, D)
        v = qkv[:, 2 * D:].reshape(B, T, D)
        x2d = attention_ln(q, k, v, key_mask, lp["sa_w_o"], lp["sa_b_o"],
                           x2d.reshape(B, T, D), lp["ln1_g"], lp["ln1_b"],
                           nhead=nhead, causal=True).reshape(B * T, D)

        # 2) cross-attention over projected memory (fused KV, no mask)
        kvm = linear(mem2d, lp["ca_w_kv"], lp["ca_b_kv"], out_dtype=MATMUL_DTYPE)
        km = kvm[:, :D].reshape(B, Te, D)
        vm = kvm[:, D:].reshape(B, Te, D)
        qc = linear(x2d, lp["ca_w_q"], lp["ca_b_q"],
                    out_dtype=MATMUL_DTYPE).reshape(B, T, D)
        x2d = attention_ln(qc, km, vm, None, lp["ca_w_o"], lp["ca_b_o"],
                           x2d.reshape(B, T, D), lp["ln2_g"], lp["ln2_b"],
                           nhead=nhead, causal=False).reshape(B * T, D)

        # 3) fused feed-forward + add & norm (intermediate stays in VMEM)
        x2d = ffn_residual_layernorm(x2d, lp["w1"], lp["b1"], lp["w2"], lp["b2"],
                                     lp["ln3_g"], lp["ln3_b"])

    logits = linear(x2d, params["fc_w"], params["fc_b"])
    return logits.reshape(B, T, -1)


# ----------------------------- parameter init -----------------------------

def init_params(key, vocab_size, d_model, nhead, num_layers,
                dim_feedforward, enc_dim, max_len):
    dh = d_model // nhead
    scale = 1.0 / math.sqrt(dh)
    keys = iter(jax.random.split(key, 4 + num_layers * 12))

    def dense(kin, kout):
        w = 0.02 * jax.random.normal(next(keys), (kin, kout), jnp.float32)
        b = jnp.zeros((kout,), jnp.float32)
        return w, b

    def as_w(w):   # weights live in HBM as bf16 (halved DMA / VMEM footprint)
        return w.astype(MATMUL_DTYPE)

    params = {}
    params["token_embedding"] = 0.02 * jax.random.normal(
        next(keys), (vocab_size, d_model), jnp.float32)
    w, b = dense(enc_dim, d_model)
    params["enc_w"], params["enc_b"] = as_w(w), b
    w, b = dense(d_model, vocab_size)
    params["fc_w"], params["fc_b"] = as_w(w), b

    # positional encoding buffer (same construction as PositionalEncoding)
    position = jnp.arange(max_len, dtype=jnp.float32)[:, None]
    div_term = jnp.exp(jnp.arange(0, d_model, 2, dtype=jnp.float32)
                       * (-math.log(10000.0) / d_model))
    pe = jnp.zeros((max_len, d_model), jnp.float32)
    pe = pe.at[:, 0::2].set(jnp.sin(position * div_term))
    pe = pe.at[:, 1::2].set(jnp.cos(position * div_term))
    params["pe"] = pe

    layers = []
    for _ in range(num_layers):
        lp = {}
        # self-attention: fused QKV weight [D, 3D]; fold 1/sqrt(dh) into Q slice
        w, b = dense(d_model, 3 * d_model)
        w = w.at[:, :d_model].multiply(scale)
        b = b.at[:d_model].multiply(scale)
        lp["sa_w_qkv"], lp["sa_b_qkv"] = as_w(w), b
        w, b = dense(d_model, d_model)
        lp["sa_w_o"], lp["sa_b_o"] = as_w(w), b
        # cross-attention: Q (scale folded), fused KV [D, 2D], out proj
        w, b = dense(d_model, d_model)
        lp["ca_w_q"], lp["ca_b_q"] = as_w(w * scale), b * scale
        w, b = dense(d_model, 2 * d_model)
        lp["ca_w_kv"], lp["ca_b_kv"] = as_w(w), b
        w, b = dense(d_model, d_model)
        lp["ca_w_o"], lp["ca_b_o"] = as_w(w), b
        # feed-forward
        w, b = dense(d_model, dim_feedforward)
        lp["w1"], lp["b1"] = as_w(w), b
        w, b = dense(dim_feedforward, d_model)
        lp["w2"], lp["b2"] = as_w(w), b
        for n in ("ln1", "ln2", "ln3"):
            lp[n + "_g"] = jnp.ones((d_model,), jnp.float32)
            lp[n + "_b"] = jnp.zeros((d_model,), jnp.float32)
        layers.append(lp)
    params["layers"] = layers
    return params


# ----------------------------- demo -----------------------------

if __name__ == "__main__":
    # small, shape-consistent config (dh = 128 -> lane-aligned head slices)
    vocab_size = 16
    d_model = 256
    nhead = 2
    num_layers = 2
    dim_feedforward = 512
    max_len = 100
    enc_dim = 1280          # fixed by the module's encoder_proj (1280 -> d_model)
    B, T_dec, T_enc = 2, 8, 8

    key = jax.random.PRNGKey(0)
    kp, kt, km = jax.random.split(key, 3)

    params = init_params(kp, vocab_size, d_model, nhead, num_layers,
                         dim_feedforward, enc_dim, max_len)
    tgt = jax.random.randint(kt, (B, T_dec), 0, vocab_size, dtype=jnp.int32)
    memory = jax.random.normal(km, (B, T_enc, enc_dim), dtype=jnp.float32)

    fwd = jax.jit(functools.partial(forward, nhead=nhead))
    logits = fwd(params, tgt, memory)   # tgt_pad_mask=None, like PyTorch default
    jax.block_until_ready(logits)

    assert logits.shape == (B, T_dec, vocab_size)
    assert bool(jnp.all(jnp.isfinite(logits)))
    print("KERNEL_OK")
</pallas_src>

<mosaic_0001>
module attributes {stable_mosaic.version = 11 : i64} {
  func.func @_linear_kernel(%arg0: i32, %arg1: i32, %arg2: i32, %arg3: memref<16x256xf32, #tpu.memory_space<vmem>>, %arg4: memref<256x256xbf16, #tpu.memory_space<vmem>>, %arg5: memref<1x256xf32, #tpu.memory_space<vmem>>, %arg6: memref<16x256xbf16, #tpu.memory_space<vmem>>, %arg7: memref<16x256xf32, #tpu.memory_space<vmem>>) attributes {dimension_semantics = [#tpu.dimension_semantics<parallel>, #tpu.dimension_semantics<parallel>, #tpu.dimension_semantics<arbitrary>], iteration_bounds = array<i64: 1, 1, 1>, scalar_prefetch = 0 : i64, scratch_operands = 1 : i64, tpu.core_type = #tpu.core_type<tc>, window_params = [{transform_indices = @transform_0, window_bounds = array<i64: 16, 256>}, {transform_indices = @transform_1, window_bounds = array<i64: 256, 256>}, {transform_indices = @transform_2, window_bounds = array<i64: 1, 256>}, {transform_indices = @transform_3, window_bounds = array<i64: 16, 256>}]} {
    %c0_i32 = arith.constant 0 : i32
    %0 = arith.cmpi eq, %arg2, %c0_i32 : i32
    %1 = arith.extui %0 : i1 to i32
    %c0_i32_0 = arith.constant 0 : i32
    %2 = arith.cmpi ne, %1, %c0_i32_0 : i32
    scf.if %2 {
      %cst_10 = arith.constant 0.000000e+00 : f32
      %13 = vector.broadcast %cst_10 : f32 to vector<16x256xf32>
      %c0_11 = arith.constant 0 : index
      %c0_12 = arith.constant 0 : index
      %14 = vector.load %arg7[%c0_11, %c0_12] : memref<16x256xf32, #tpu.memory_space<vmem>>, vector<16x256xf32>
      tpu.vector_store %arg7[%c0_11, %c0_12], %13 {strides = array<i32>} : memref<16x256xf32, #tpu.memory_space<vmem>>, vector<16x256xf32>,
    } else {
    }
    %c0 = arith.constant 0 : index
    %c0_1 = arith.constant 0 : index
    %3 = vector.load %arg7[%c0, %c0_1] : memref<16x256xf32, #tpu.memory_space<vmem>>, vector<16x256xf32>
    %c0_2 = arith.constant 0 : index
    %c0_3 = arith.constant 0 : index
    %4 = vector.load %arg3[%c0_2, %c0_3] : memref<16x256xf32, #tpu.memory_space<vmem>>, vector<16x256xf32>
    %5 = arith.truncf %4 : vector<16x256xf32> to vector<16x256xbf16>
    %c0_4 = arith.constant 0 : index
    %c0_5 = arith.constant 0 : index
    %6 = vector.load %arg4[%c0_4, %c0_5] : memref<256x256xbf16, #tpu.memory_space<vmem>>, vector<256x256xbf16>
    %cst = arith.constant dense<0.000000e+00> : vector<16x256xf32>
    %7 = tpu.matmul %5, %6, %cst {dimension_numbers = #tpu.dot_dimension_numbers<[1], [0], [0], [1], [0, 0, 1, 1], [], []>} : vector<16x256xbf16>, vector<256x256xbf16>, vector<16x256xf32> -> vector<16x256xf32>
    %8 = arith.addf %3, %7 : vector<16x256xf32>
    %c0_6 = arith.constant 0 : index
    %c0_7 = arith.constant 0 : index
    %9 = vector.load %arg7[%c0_6, %c0_7] : memref<16x256xf32, #tpu.memory_space<vmem>>, vector<16x256xf32>
    tpu.vector_store %arg7[%c0_6, %c0_7], %8 {strides = array<i32>} : memref<16x256xf32, #tpu.memory_space<vmem>>, vector<16x256xf32>,
    %c0_i32_8 = arith.constant 0 : i32
    %10 = arith.cmpi eq, %arg2, %c0_i32_8 : i32
    %11 = arith.extui %10 : i1 to i32
    %c0_i32_9 = arith.constant 0 : i32
    %12 = arith.cmpi ne, %11, %c0_i32_9 : i32
    scf.if %12 {
      %c0_10 = arith.constant 0 : index
      %c0_11 = arith.constant 0 : index
      %13 = vector.load %arg7[%c0_10, %c0_11] : memref<16x256xf32, #tpu.memory_space<vmem>>, vector<16x256xf32>
      %c0_12 = arith.constant 0 : index
      %c0_13 = arith.constant 0 : index
      %14 = vector.load %arg5[%c0_12, %c0_13] : memref<1x256xf32, #tpu.memory_space<vmem>>, vector<1x256xf32>
      %15 = vector.broadcast %14 : vector<1x256xf32> to vector<16x256xf32>
      %16 = arith.addf %13, %15 : vector<16x256xf32>
      %17 = arith.truncf %16 : vector<16x256xf32> to vector<16x256xbf16>
      %c0_14 = arith.constant 0 : index
      %c0_15 = arith.constant 0 : index
      %18 = vector.load %arg6[%c0_14, %c0_15] : memref<16x256xbf16, #tpu.memory_space<vmem>>, vector<16x256xbf16>
      tpu.vector_store %arg6[%c0_14, %c0_15], %17 {strides = array<i32>} : memref<16x256xbf16, #tpu.memory_space<vmem>>, vector<16x256xbf16>,
    } else {
    }
    return
  }
  func.func @transform_0(%arg0: i32, %arg1: i32, %arg2: i32) -> (i32, i32) {
    %c0_i32 = arith.constant 0 : i32
    return %arg0, %arg2 : i32, i32
  }
  func.func @transform_1(%arg0: i32, %arg1: i32, %arg2: i32) -> (i32, i32) {
    %c0_i32 = arith.constant 0 : i32
    return %arg2, %arg1 : i32, i32
  }
  func.func @transform_2(%arg0: i32, %arg1: i32, %arg2: i32) -> (i32, i32) {
    %c0_i32 = arith.constant 0 : i32
    %c0_i32_0 = arith.constant 0 : i32
    return %c0_i32, %arg1 : i32, i32
  }
  func.func @transform_3(%arg0: i32, %arg1: i32, %arg2: i32) -> (i32, i32) {
    %c0_i32 = arith.constant 0 : i32
    return %arg0, %arg1 : i32, i32
  }
}

module attributes {stable_mosaic.version = 11 : i64} {
  func.func @_linear_kernel(%arg0: i32, %arg1: i32, %arg2: i32, %arg3: memref<16x256xf32, #tpu.memory_space<vmem>>, %arg4: memref<256x256xbf16, #tpu.memory_space<vmem>>, %arg5: memref<1x256xf32, #tpu.memory_space<vmem>>, %arg6: memref<16x256xbf16, #tpu.memory_space<vmem>>, %arg7: memref<16x256xf32, #tpu.memory_space<vmem>>) attributes {dimension_semantics = [#tpu.dimension_semantics<parallel>, #tpu.dimension_semantics<parallel>, #tpu.dimension_semantics<arbitrary>], iteration_bounds = array<i64: 1, 3, 1>, scalar_prefetch = 0 : i64, scratch_operands = 1 : i64, tpu.core_type = #tpu.core_type<tc>, window_params = [{transform_indices = @transform_0, window_bounds = array<i64: 16, 256>}, {transform_indices = @transform_1, window_bounds = array<i64: 256, 256>}, {transform_indices = @transform_2, window_bounds = array<i64: 1, 256>}, {transform_indices = @transform_3, window_bounds = array<i64: 16, 256>}]} {
    %c0_i32 = arith.constant 0 : i32
    %0 = arith.cmpi eq, %arg2, %c0_i32 : i32
    %1 = arith.extui %0 : i1 to i32
    %c0_i32_0 = arith.constant 0 : i32
    %2 = arith.cmpi ne, %1, %c0_i32_0 : i32
    scf.if %2 {
      %cst_10 = arith.constant 0.000000e+00 : f32
      %13 = vector.broadcast %cst_10 : f32 to vector<16x256xf32>
      %c0_11 = arith.constant 0 : index
      %c0_12 = arith.constant 0 : index
      %14 = vector.load %arg7[%c0_11, %c0_12] : memref<16x256xf32, #tpu.memory_space<vmem>>, vector<16x256xf32>
      tpu.vector_store %arg7[%c0_11, %c0_12], %13 {strides = array<i32>} : memref<16x256xf32, #tpu.memory_space<vmem>>, vector<16x256xf32>,
    } else {
    }
    %c0 = arith.constant 0 : index
    %c0_1 = arith.constant 0 : index
    %3 = vector.load %arg7[%c0, %c0_1] : memref<16x256xf32, #tpu.memory_space<vmem>>, vector<16x256xf32>
    %c0_2 = arith.constant 0 : index
    %c0_3 = arith.constant 0 : index
    %4 = vector.load %arg3[%c0_2, %c0_3] : memref<16x256xf32, #tpu.memory_space<vmem>>, vector<16x256xf32>
    %5 = arith.truncf %4 : vector<16x256xf32> to vector<16x256xbf16>
    %c0_4 = arith.constant 0 : index
    %c0_5 = arith.constant 0 : index
    %6 = vector.load %arg4[%c0_4, %c0_5] : memref<256x256xbf16, #tpu.memory_space<vmem>>, vector<256x256xbf16>
    %cst = arith.constant dense<0.000000e+00> : vector<16x256xf32>
    %7 = tpu.matmul %5, %6, %cst {dimension_numbers = #tpu.dot_dimension_numbers<[1], [0], [0], [1], [0, 0, 1, 1], [], []>} : vector<16x256xbf16>, vector<256x256xbf16>, vector<16x256xf32> -> vector<16x256xf32>
    %8 = arith.addf %3, %7 : vector<16x256xf32>
    %c0_6 = arith.constant 0 : index
    %c0_7 = arith.constant 0 : index
    %9 = vector.load %arg7[%c0_6, %c0_7] : memref<16x256xf32, #tpu.memory_space<vmem>>, vector<16x256xf32>
    tpu.vector_store %arg7[%c0_6, %c0_7], %8 {strides = array<i32>} : memref<16x256xf32, #tpu.memory_space<vmem>>, vector<16x256xf32>,
    %c0_i32_8 = arith.constant 0 : i32
    %10 = arith.cmpi eq, %arg2, %c0_i32_8 : i32
    %11 = arith.extui %10 : i1 to i32
    %c0_i32_9 = arith.constant 0 : i32
    %12 = arith.cmpi ne, %11, %c0_i32_9 : i32
    scf.if %12 {
      %c0_10 = arith.constant 0 : index
      %c0_11 = arith.constant 0 : index
      %13 = vector.load %arg7[%c0_10, %c0_11] : memref<16x256xf32, #tpu.memory_space<vmem>>, vector<16x256xf32>
      %c0_12 = arith.constant 0 : index
      %c0_13 = arith.constant 0 : index
      %14 = vector.load %arg5[%c0_12, %c0_13] : memref<1x256xf32, #tpu.memory_space<vmem>>, vector<1x256xf32>
      %15 = vector.broadcast %14 : vector<1x256xf32> to vector<16x256xf32>
      %16 = arith.addf %13, %15 : vector<16x256xf32>
      %17 = arith.truncf %16 : vector<16x256xf32> to vector<16x256xbf16>
      %c0_14 = arith.constant 0 : index
      %c0_15 = arith.constant 0 : index
      %18 = vector.load %arg6[%c0_14, %c0_15] : memref<16x256xbf16, #tpu.memory_space<vmem>>, vector<16x256xbf16>
      tpu.vector_store %arg6[%c0_14, %c0_15], %17 {strides = array<i32>} : memref<16x256xbf16, #tpu.memory_space<vmem>>, vector<16x256xbf16>,
    } else {
    }
    return
  }
  func.func @transform_0(%arg0: i32, %arg1: i32, %arg2: i32) -> (i32, i32) {
    %c0_i32 = arith.constant 0 : i32
    return %arg0, %arg2 : i32, i32
  }
  func.func @transform_1(%arg0: i32, %arg1: i32, %arg2: i32) -> (i32, i32) {
    %c0_i32 = arith.constant 0 : i32
    return %arg2, %arg1 : i32, i32
  }
  func.func @transform_2(%arg0: i32, %arg1: i32, %arg2: i32) -> (i32, i32) {
    %c0_i32 = arith.constant 0 : i32
    %c0_i32_0 = arith.constant 0 : i32
    return %c0_i32, %arg1 : i32, i32
  }
  func.func @transform_3(%arg0: i32, %arg1: i32, %arg2: i32) -> (i32, i32) {
    %c0_i32 = arith.constant 0 : i32
    return %arg0, %arg1 : i32, i32
  }
}

module attributes {stable_mosaic.version = 11 : i64} {
  func.func @_linear_kernel(%arg0: i32, %arg1: i32, %arg2: i32, %arg3: memref<16x256xf32, #tpu.memory_space<vmem>>, %arg4: memref<256x256xbf16, #tpu.memory_space<vmem>>, %arg5: memref<1x256xf32, #tpu.memory_space<vmem>>, %arg6: memref<16x256xbf16, #tpu.memory_space<vmem>>, %arg7: memref<16x256xf32, #tpu.memory_space<vmem>>) attributes {dimension_semantics = [#tpu.dimension_semantics<parallel>, #tpu.dimension_semantics<parallel>, #tpu.dimension_semantics<arbitrary>], iteration_bounds = array<i64: 1, 1, 5>, scalar_prefetch = 0 : i64, scratch_operands = 1 : i64, tpu.core_type = #tpu.core_type<tc>, window_params = [{transform_indices = @transform_0, window_bounds = array<i64: 16, 256>}, {transform_indices = @transform_1, window_bounds = array<i64: 256, 256>}, {transform_indices = @transform_2, window_bounds = array<i64: 1, 256>}, {transform_indices = @transform_3, window_bounds = array<i64: 16, 256>}]} {
    %c0_i32 = arith.constant 0 : i32
    %0 = arith.cmpi eq, %arg2, %c0_i32 : i32
    %1 = arith.extui %0 : i1 to i32
    %c0_i32_0 = arith.constant 0 : i32
    %2 = arith.cmpi ne, %1, %c0_i32_0 : i32
    scf.if %2 {
      %cst_9 = arith.constant 0.000000e+00 : f32
      %13 = vector.broadcast %cst_9 : f32 to vector<16x256xf32>
      %c0_10 = arith.constant 0 : index
      %c0_11 = arith.constant 0 : index
      %14 = vector.load %arg7[%c0_10, %c0_11] : memref<16x256xf32, #tpu.memory_space<vmem>>, vector<16x256xf32>
      tpu.vector_store %arg7[%c0_10, %c0_11], %13 {strides = array<i32>} : memref<16x256xf32, #tpu.memory_space<vmem>>, vector<16x256xf32>,
    } else {
    }
    %c0 = arith.constant 0 : index
    %c0_1 = arith.constant 0 : index
    %3 = vector.load %arg7[%c0, %c0_1] : memref<16x256xf32, #tpu.memory_space<vmem>>, vector<16x256xf32>
    %c0_2 = arith.constant 0 : index
    %c0_3 = arith.constant 0 : index
    %4 = vector.load %arg3[%c0_2, %c0_3] : memref<16x256xf32, #tpu.memory_space<vmem>>, vector<16x256xf32>
    %5 = arith.truncf %4 : vector<16x256xf32> to vector<16x256xbf16>
    %c0_4 = arith.constant 0 : index
    %c0_5 = arith.constant 0 : index
    %6 = vector.load %arg4[%c0_4, %c0_5] : memref<256x256xbf16, #tpu.memory_space<vmem>>, vector<256x256xbf16>
    %cst = arith.constant dense<0.000000e+00> : vector<16x256xf32>
    %7 = tpu.matmul %5, %6, %cst {dimension_numbers = #tpu.dot_dimension_numbers<[1], [0], [0], [1], [0, 0, 1, 1], [], []>} : vector<16x256xbf16>, vector<256x256xbf16>, vector<16x256xf32> -> vector<16x256xf32>
    %8 = arith.addf %3, %7 : vector<16x256xf32>
    %c0_6 = arith.constant 0 : index
    %c0_7 = arith.constant 0 : index
    %9 = vector.load %arg7[%c0_6, %c0_7] : memref<16x256xf32, #tpu.memory_space<vmem>>, vector<16x256xf32>
    tpu.vector_store %arg7[%c0_6, %c0_7], %8 {strides = array<i32>} : memref<16x256xf32, #tpu.memory_space<vmem>>, vector<16x256xf32>,
    %c4_i32 = arith.constant 4 : i32
    %10 = arith.cmpi eq, %arg2, %c4_i32 : i32
    %11 = arith.extui %10 : i1 to i32
    %c0_i32_8 = arith.constant 0 : i32
    %12 = arith.cmpi ne, %11, %c0_i32_8 : i32
    scf.if %12 {
      %c0_9 = arith.constant 0 : index
      %c0_10 = arith.constant 0 : index
      %13 = vector.load %arg7[%c0_9, %c0_10] : memref<16x256xf32, #tpu.memory_space<vmem>>, vector<16x256xf32>
      %c0_11 = arith.constant 0 : index
      %c0_12 = arith.constant 0 : index
      %14 = vector.load %arg5[%c0_11, %c0_12] : memref<1x256xf32, #tpu.memory_space<vmem>>, vector<1x256xf32>
      %15 = vector.broadcast %14 : vector<1x256xf32> to vector<16x256xf32>
      %16 = arith.addf %13, %15 : vector<16x256xf32>
      %17 = arith.truncf %16 : vector<16x256xf32> to vector<16x256xbf16>
      %c0_13 = arith.constant 0 : index
      %c0_14 = arith.constant 0 : index
      %18 = vector.load %arg6[%c0_13, %c0_14] : memref<16x256xbf16, #tpu.memory_space<vmem>>, vector<16x256xbf16>
      tpu.vector_store %arg6[%c0_13, %c0_14], %17 {strides = array<i32>} : memref<16x256xbf16, #tpu.memory_space<vmem>>, vector<16x256xbf16>,
    } else {
    }
    return
  }
  func.func @transform_0(%arg0: i32, %arg1: i32, %arg2: i32) -> (i32, i32) {
    %c0_i32 = arith.constant 0 : i32
    return %arg0, %arg2 : i32, i32
  }
  func.func @transform_1(%arg0: i32, %arg1: i32, %arg2: i32) -> (i32, i32) {
    %c0_i32 = arith.constant 0 : i32
    return %arg2, %arg1 : i32, i32
  }
  func.func @transform_2(%arg0: i32, %arg1: i32, %arg2: i32) -> (i32, i32) {
    %c0_i32 = arith.constant 0 : i32
    %c0_i32_0 = arith.constant 0 : i32
    return %c0_i32, %arg1 : i32, i32
  }
  func.func @transform_3(%arg0: i32, %arg1: i32, %arg2: i32) -> (i32, i32) {
    %c0_i32 = arith.constant 0 : i32
    return %arg0, %arg1 : i32, i32
  }
}

module attributes {stable_mosaic.version = 11 : i64} {
  func.func @_flash_attn_kernel(%arg0: i32, %arg1: i32, %arg2: i32, %arg3: memref<1x8x256xbf16, #tpu.memory_space<vmem>>, %arg4: memref<1x8x256xbf16, #tpu.memory_space<vmem>>, %arg5: memref<1x8x256xbf16, #tpu.memory_space<vmem>>, %arg6: memref<256x256xbf16, #tpu.memory_space<vmem>>, %arg7: memref<1x256xf32, #tpu.memory_space<vmem>>, %arg8: memref<1x8x256xf32, #tpu.memory_space<vmem>>, %arg9: memref<1x256xf32, #tpu.memory_space<vmem>>, %arg10: memref<1x256xf32, #tpu.memory_space<vmem>>, %arg11: memref<1x8x256xf32, #tpu.memory_space<vmem>>, %arg12: memref<2x8x1xf32, #tpu.memory_space<vmem>>, %arg13: memref<2x8x1xf32, #tpu.memory_space<vmem>>, %arg14: memref<2x8x128xf32, #tpu.memory_space<vmem>>, %arg15: memref<8x256xf32, #tpu.memory_space<vmem>>) attributes {dimension_semantics = [#tpu.dimension_semantics<parallel>, #tpu.dimension_semantics<parallel>, #tpu.dimension_semantics<arbitrary>], iteration_bounds = array<i64: 2, 1, 1>, scalar_prefetch = 0 : i64, scratch_operands = 4 : i64, tpu.core_type = #tpu.core_type<tc>, window_params = [{transform_indices = @transform_0, window_bounds = array<i64: 1, 8, 256>}, {transform_indices = @transform_1, window_bounds = array<i64: 1, 8, 256>}, {transform_indices = @transform_2, window_bounds = array<i64: 1, 8, 256>}, {pipeline_mode = #tpu.pipeline_mode<synchronous>, transform_indices = @transform_3, window_bounds = array<i64: 256, 256>}, {pipeline_mode = #tpu.pipeline_mode<synchronous>, transform_indices = @transform_4, window_bounds = array<i64: 1, 256>}, {transform_indices = @transform_5, window_bounds = array<i64: 1, 8, 256>}, {pipeline_mode = #tpu.pipeline_mode<synchronous>, transform_indices = @transform_6, window_bounds = array<i64: 1, 256>}, {pipeline_mode = #tpu.pipeline_mode<synchronous>, transform_indices = @transform_7, window_bounds = array<i64: 1, 256>}, {transform_indices = @transform_8, window_bounds = array<i64: 1, 8, 256>}]} {
    %c0_i32 = arith.constant 0 : i32
    %0 = arith.cmpi eq, %arg2, %c0_i32 : i32
    %1 = arith.extui %0 : i1 to i32
    %c0_i32_0 = arith.constant 0 : i32
    %2 = arith.cmpi ne, %1, %c0_i32_0 : i32
    scf.if %2 {
      %cst = arith.constant -1.000000e+30 : f32
      %12 = vector.broadcast %cst : f32 to vector<2x8x1xf32>
      %c0 = arith.constant 0 : index
      %c0_5 = arith.constant 0 : index
      %c0_6 = arith.constant 0 : index
      %13 = vector.load %arg12[%c0, %c0_5, %c0_6] : memref<2x8x1xf32, #tpu.memory_space<vmem>>, vector<2x8x1xf32>
      tpu.vector_store %arg12[%c0, %c0_5, %c0_6], %12 {strides = array<i32>} : memref<2x8x1xf32, #tpu.memory_space<vmem>>, vector<2x8x1xf32>,
      %cst_7 = arith.constant 0.000000e+00 : f32
      %14 = vector.broadcast %cst_7 : f32 to vector<2x8x1xf32>
      %c0_8 = arith.constant 0 : index
      %c0_9 = arith.constant 0 : index
      %c0_10 = arith.constant 0 : index
      %15 = vector.load %arg13[%c0_8, %c0_9, %c0_10] : memref<2x8x1xf32, #tpu.memory_space<vmem>>, vector<2x8x1xf32>
      tpu.vector_store %arg13[%c0_8, %c0_9, %c0_10], %14 {strides = array<i32>} : memref<2x8x1xf32, #tpu.memory_space<vmem>>, vector<2x8x1xf32>,
      %cst_11 = arith.constant 0.000000e+00 : f32
      %16 = vector.broadcast %cst_11 : f32 to vector<2x8x128xf32>
      %c0_12 = arith.constant 0 : index
      %c0_13 = arith.constant 0 : index
      %c0_14 = arith.constant 0 : index
      %17 = vector.load %arg14[%c0_12, %c0_13, %c0_14] : memref<2x8x128xf32, #tpu.memory_space<vmem>>, vector<2x8x128xf32>
      tpu.vector_store %arg14[%c0_12, %c0_13, %c0_14], %16 {strides = array<i32>} : memref<2x8x128xf32, #tpu.memory_space<vmem>>, vector<2x8x128xf32>,
    } else {
    }
    %c8_i32 = arith.constant 8 : i32
    %3 = arith.muli %arg2, %c8_i32 : i32
    %c1_i32 = arith.constant 1 : i32
    %4 = arith.addi %arg1, %c1_i32 : i32
    %c8_i32_1 = arith.constant 8 : i32
    %5 = arith.muli %4, %c8_i32_1 : i32
    %6 = arith.cmpi slt, %3, %5 : i32
    %7 = arith.extui %6 : i1 to i32
    %c0_i32_2 = arith.constant 0 : i32
    %8 = arith.cmpi ne, %7, %c0_i32_2 : i32
    scf.if %8 {
      %c0 = arith.constant 0 : index
      %c0_5 = arith.constant 0 : index
      %c0_6 = arith.constant 0 : index
      %12 = vector.load %arg3[%c0, %c0_5, %c0_6] : memref<1x8x256xbf16, #tpu.memory_space<vmem>>, vector<1x8x256xbf16>
      %13 = vector.shape_cast %12 : vector<1x8x256xbf16> to vector<8x256xbf16>
      %c0_7 = arith.constant 0 : index
      %c0_8 = arith.constant 0 : index
      %c0_9 = arith.constant 0 : index
      %14 = vector.load %arg4[%c0_7, %c0_8, %c0_9] : memref<1x8x256xbf16, #tpu.memory_space<vmem>>, vector<1x8x256xbf16>
      %15 = vector.shape_cast %14 : vector<1x8x256xbf16> to vector<8x256xbf16>
      %c0_10 = arith.constant 0 : index
      %c0_11 = arith.constant 0 : index
      %c0_12 = arith.constant 0 : index
      %16 = vector.load %arg5[%c0_10, %c0_11, %c0_12] : memref<1x8x256xbf16, #tpu.memory_space<vmem>>, vector<1x8x256xbf16>
      %17 = vector.shape_cast %16 : vector<1x8x256xbf16> to vector<8x256xbf16>
      %c8_i32_13 = arith.constant 8 : i32
      %18 = arith.muli %arg1, %c8_i32_13 : i32
      %19 = tpu.iota {dimensions = array<i32: 0>} : vector<8x8xi32>
      %20 = vector.broadcast %18 : i32 to vector<8x8xi32>
      %21 = arith.addi %20, %19 : vector<8x8xi32>
      %c8_i32_14 = arith.constant 8 : i32
      %22 = arith.muli %arg2, %c8_i32_14 : i32
      %23 = tpu.iota {dimensions = array<i32: 1>} : vector<8x8xi32>
      %24 = vector.broadcast %22 : i32 to vector<8x8xi32>
      %25 = arith.addi %24, %23 : vector<8x8xi32>
      %26 = arith.cmpi sgt, %25, %21 : vector<8x8xi32>
      %27 = vector.extract_strided_slice %13 {offsets = [0, 0], sizes = [8, 128], strides = [1, 1]} : vector<8x256xbf16> to vector<8x128xbf16>
      %28 = vector.extract_strided_slice %15 {offsets = [0, 0], sizes = [8, 128], strides = [1, 1]} : vector<8x256xbf16> to vector<8x128xbf16>
      %cst = arith.constant dense<0.000000e+00> : vector<8x8xf32>
      %29 = tpu.matmul %27, %28, %cst {dimension_numbers = #tpu.dot_dimension_numbers<[1], [1], [0], [0], [0, 0, 1, 0], [], []>} : vector<8x128xbf16>, vector<8x128xbf16>, vector<8x8xf32> -> vector<8x8xf32>
      %cst_15 = arith.constant -1.000000e+30 : f32
      %30 = vector.broadcast %cst_15 : f32 to vector<8x8xf32>
      %31 = arith.select %26, %30, %29 : vector<8x8xi1>, vector<8x8xf32>
      %c0_16 = arith.constant 0 : index
      %c0_17 = arith.constant 0 : index
      %c0_18 = arith.constant 0 : index
      %32 = vector.load %arg12[%c0_16, %c0_17, %c0_18] : memref<2x8x1xf32, #tpu.memory_space<vmem>>, vector<1x8x1xf32>
      %33 = vector.shape_cast %32 : vector<1x8x1xf32> to vector<8x1xf32>
      %cst_19 = arith.constant dense<0xFF800000> : vector<8xf32>
      %34 = vector.multi_reduction <maximumf>, %31, %cst_19 [1] : vector<8x8xf32> to vector<8xf32>
      %35 = vector.shape_cast %34 : vector<8xf32> to vector<8x1xf32>
      %36 = arith.maximumf %33, %35 : vector<8x1xf32>
      %37 = arith.subf %33, %36 : vector<8x1xf32>
      %38 = math.exp %37 : vector<8x1xf32>
      %39 = vector.broadcast %36 : vector<8x1xf32> to vector<8x8xf32>
      %40 = arith.subf %31, %39 : vector<8x8xf32>
      %41 = math.exp %40 : vector<8x8xf32>
      %c0_20 = arith.constant 0 : index
      %c0_21 = arith.constant 0 : index
      %c0_22 = arith.constant 0 : index
      %42 = vector.load %arg13[%c0_20, %c0_21, %c0_22] : memref<2x8x1xf32, #tpu.memory_space<vmem>>, vector<1x8x1xf32>
      %43 = vector.shape_cast %42 : vector<1x8x1xf32> to vector<8x1xf32>
      %44 = arith.mulf %38, %43 : vector<8x1xf32>
      %cst_23 = arith.constant dense<0.000000e+00> : vector<8xf32>
      %45 = vector.multi_reduction <add>, %41, %cst_23 [1] : vector<8x8xf32> to vector<8xf32>
      %46 = vector.shape_cast %45 : vector<8xf32> to vector<8x1xf32>
      %47 = arith.addf %44, %46 : vector<8x1xf32>
      %c0_24 = arith.constant 0 : index
      %c0_25 = arith.constant 0 : index
      %c0_26 = arith.constant 0 : index
      %48 = vector.load %arg13[%c0_24, %c0_25, %c0_26] : memref<2x8x1xf32, #tpu.memory_space<vmem>>, vector<1x8x1xf32>
      %49 = vector.shape_cast %48 : vector<1x8x1xf32> to vector<8x1xf32>
      %50 = vector.shape_cast %47 : vector<8x1xf32> to vector<1x8x1xf32>
      tpu.vector_store %arg13[%c0_24, %c0_25, %c0_26], %50 {strides = array<i32>} : memref<2x8x1xf32, #tpu.memory_space<vmem>>, vector<1x8x1xf32>,
      %c0_27 = arith.constant 0 : index
      %c0_28 = arith.constant 0 : index
      %c0_29 = arith.constant 0 : index
      %51 = vector.load %arg14[%c0_27, %c0_28, %c0_29] : memref<2x8x128xf32, #tpu.memory_space<vmem>>, vector<1x8x128xf32>
      %52 = vector.shape_cast %51 : vector<1x8x128xf32> to vector<8x128xf32>
      %53 = vector.broadcast %38 : vector<8x1xf32> to vector<8x128xf32>
      %54 = arith.mulf %53, %52 : vector<8x128xf32>
      %55 = arith.truncf %41 : vector<8x8xf32> to vector<8x8xbf16>
      %56 = vector.extract_strided_slice %17 {offsets = [0, 0], sizes = [8, 128], strides = [1, 1]} : vector<8x256xbf16> to vector<8x128xbf16>
      %cst_30 = arith.constant dense<0.000000e+00> : vector<8x128xf32>
      %57 = tpu.matmul %55, %56, %cst_30 {dimension_numbers = #tpu.dot_dimension_numbers<[1], [0], [0], [1], [0, 0, 1, 1], [], []>} : vector<8x8xbf16>, vector<8x128xbf16>, vector<8x128xf32> -> vector<8x128xf32>
      %58 = arith.addf %54, %57 : vector<8x128xf32>
      %c0_31 = arith.constant 0 : index
      %c0_32 = arith.constant 0 : index
      %c0_33 = arith.constant 0 : index
      %59 = vector.load %arg14[%c0_31, %c0_32, %c0_33] : memref<2x8x128xf32, #tpu.memory_space<vmem>>, vector<1x8x128xf32>
      %60 = vector.shape_cast %59 : vector<1x8x128xf32> to vector<8x128xf32>
      %61 = vector.shape_cast %58 : vector<8x128xf32> to vector<1x8x128xf32>
      tpu.vector_store %arg14[%c0_31, %c0_32, %c0_33], %61 {strides = array<i32>} : memref<2x8x128xf32, #tpu.memory_space<vmem>>, vector<1x8x128xf32>,
      %c0_34 = arith.constant 0 : index
      %c0_35 = arith.constant 0 : index
      %c0_36 = arith.constant 0 : index
      %62 = vector.load %arg12[%c0_34, %c0_35, %c0_36] : memref<2x8x1xf32, #tpu.memory_space<vmem>>, vector<1x8x1xf32>
      %63 = vector.shape_cast %62 : vector<1x8x1xf32> to vector<8x1xf32>
      %64 = vector.shape_cast %36 : vector<8x1xf32> to vector<1x8x1xf32>
      tpu.vector_store %arg12[%c0_34, %c0_35, %c0_36], %64 {strides = array<i32>} : memref<2x8x1xf32, #tpu.memory_space<vmem>>, vector<1x8x1xf32>,
      %65 = vector.extract_strided_slice %13 {offsets = [0, 128], sizes = [8, 128], strides = [1, 1]} : vector<8x256xbf16> to vector<8x128xbf16>
      %66 = vector.extract_strided_slice %15 {offsets = [0, 128], sizes = [8, 128], strides = [1, 1]} : vector<8x256xbf16> to vector<8x128xbf16>
      %cst_37 = arith.constant dense<0.000000e+00> : vector<8x8xf32>
      %67 = tpu.matmul %65, %66, %cst_37 {dimension_numbers = #tpu.dot_dimension_numbers<[1], [1], [0], [0], [0, 0, 1, 0], [], []>} : vector<8x128xbf16>, vector<8x128xbf16>, vector<8x8xf32> -> vector<8x8xf32>
      %cst_38 = arith.constant -1.000000e+30 : f32
      %68 = vector.broadcast %cst_38 : f32 to vector<8x8xf32>
      %69 = arith.select %26, %68, %67 : vector<8x8xi1>, vector<8x8xf32>
      %c1 = arith.constant 1 : index
      %c0_39 = arith.constant 0 : index
      %c0_40 = arith.constant 0 : index
      %70 = vector.load %arg12[%c1, %c0_39, %c0_40] : memref<2x8x1xf32, #tpu.memory_space<vmem>>, vector<1x8x1xf32>
      %71 = vector.shape_cast %70 : vector<1x8x1xf32> to vector<8x1xf32>
      %cst_41 = arith.constant dense<0xFF800000> : vector<8xf32>
      %72 = vector.multi_reduction <maximumf>, %69, %cst_41 [1] : vector<8x8xf32> to vector<8xf32>
      %73 = vector.shape_cast %72 : vector<8xf32> to vector<8x1xf32>
      %74 = arith.maximumf %71, %73 : vector<8x1xf32>
      %75 = arith.subf %71, %74 : vector<8x1xf32>
      %76 = math.exp %75 : vector<8x1xf32>
      %77 = vector.broadcast %74 : vector<8x1xf32> to vector<8x8xf32>
      %78 = arith.subf %69, %77 : vector<8x8xf32>
      %79 = math.exp %78 : vector<8x8xf32>
      %c1_42 = arith.constant 1 : index
      %c0_43 = arith.constant 0 : index
      %c0_44 = arith.constant 0 : index
      %80 = vector.load %arg13[%c1_42, %c0_43, %c0_44] : memref<2x8x1xf32, #tpu.memory_space<vmem>>, vector<1x8x1xf32>
      %81 = vector.shape_cast %80 : vector<1x8x1xf32> to vector<8x1xf32>
      %82 = arith.mulf %76, %81 : vector<8x1xf32>
      %cst_45 = arith.constant dense<0.000000e+00> : vector<8xf32>
      %83 = vector.multi_reduction <add>, %79, %cst_45 [1] : vector<8x8xf32> to vector<8xf32>
      %84 = vector.shape_cast %83 : vector<8xf32> to vector<8x1xf32>
      %85 = arith.addf %82, %84 : vector<8x1xf32>
      %c1_46 = arith.constant 1 : index
      %c0_47 = arith.constant 0 : index
      %c0_48 = arith.constant 0 : index
      %86 = vector.load %arg13[%c1_46, %c0_47, %c0_48] : memref<2x8x1xf32, #tpu.memory_space<vmem>>, vector<1x8x1xf32>
      %87 = vector.shape_cast %86 : vector<1x8x1xf32> to vector<8x1xf32>
      %88 = vector.shape_cast %85 : vector<8x1xf32> to vector<1x8x1xf32>
      tpu.vector_store %arg13[%c1_46, %c0_47, %c0_48], %88 {strides = array<i32>} : memref<2x8x1xf32, #tpu.memory_space<vmem>>, vector<1x8x1xf32>,
      %c1_49 = arith.constant 1 : index
      %c0_50 = arith.constant 0 : index
      %c0_51 = arith.constant 0 : index
      %89 = vector.load %arg14[%c1_49, %c0_50, %c0_51] : memref<2x8x128xf32, #tpu.memory_space<vmem>>, vector<1x8x128xf32>
      %90 = vector.shape_cast %89 : vector<1x8x128xf32> to vector<8x128xf32>
      %91 = vector.broadcast %76 : vector<8x1xf32> to vector<8x128xf32>
      %92 = arith.mulf %91, %90 : vector<8x128xf32>
      %93 = arith.truncf %79 : vector<8x8xf32> to vector<8x8xbf16>
      %94 = vector.extract_strided_slice %17 {offsets = [0, 128], sizes = [8, 128], strides = [1, 1]} : vector<8x256xbf16> to vector<8x128xbf16>
      %cst_52 = arith.constant dense<0.000000e+00> : vector<8x128xf32>
      %95 = tpu.matmul %93, %94, %cst_52 {dimension_numbers = #tpu.dot_dimension_numbers<[1], [0], [0], [1], [0, 0, 1, 1], [], []>} : vector<8x8xbf16>, vector<8x128xbf16>, vector<8x128xf32> -> vector<8x128xf32>
      %96 = arith.addf %92, %95 : vector<8x128xf32>
      %c1_53 = arith.constant 1 : index
      %c0_54 = arith.constant 0 : index
      %c0_55 = arith.constant 0 : index
      %97 = vector.load %arg14[%c1_53, %c0_54, %c0_55] : memref<2x8x128xf32, #tpu.memory_space<vmem>>, vector<1x8x128xf32>
      %98 = vector.shape_cast %97 : vector<1x8x128xf32> to vector<8x128xf32>
      %99 = vector.shape_cast %96 : vector<8x128xf32> to vector<1x8x128xf32>
      tpu.vector_store %arg14[%c1_53, %c0_54, %c0_55], %99 {strides = array<i32>} : memref<2x8x128xf32, #tpu.memory_space<vmem>>, vector<1x8x128xf32>,
      %c1_56 = arith.constant 1 : index
      %c0_57 = arith.constant 0 : index
      %c0_58 = arith.constant 0 : index
      %100 = vector.load %arg12[%c1_56, %c0_57, %c0_58] : memref<2x8x1xf32, #tpu.memory_space<vmem>>, vector<1x8x1xf32>
      %101 = vector.shape_cast %100 : vector<1x8x1xf32> to vector<8x1xf32>
      %102 = vector.shape_cast %74 : vector<8x1xf32> to vector<1x8x1xf32>
      tpu.vector_store %arg12[%c1_56, %c0_57, %c0_58], %102 {strides = array<i32>} : memref<2x8x1xf32, #tpu.memory_space<vmem>>, vector<1x8x1xf32>,
    } else {
    }
    %c0_i32_3 = arith.constant 0 : i32
    %9 = arith.cmpi eq, %arg2, %c0_i32_3 : i32
    %10 = arith.extui %9 : i1 to i32
    %c0_i32_4 = arith.constant 0 : i32
    %11 = arith.cmpi ne, %10, %c0_i32_4 : i32
    scf.if %11 {
      %c0 = arith.constant 0 : index
      %c0_5 = arith.constant 0 : index
      %c0_6 = arith.constant 0 : index
      %12 = vector.load %arg13[%c0, %c0_5, %c0_6] : memref<2x8x1xf32, #tpu.memory_space<vmem>>, vector<1x8x1xf32>
      %13 = vector.shape_cast %12 : vector<1x8x1xf32> to vector<8x1xf32>
      %cst = arith.constant 0.000000e+00 : f32
      %14 = vector.broadcast %cst : f32 to vector<8x1xf32>
      %15 = arith.cmpf oeq, %13, %14 : vector<8x1xf32>
      %cst_7 = arith.constant 1.000000e+00 : f32
      %16 = vector.broadcast %cst_7 : f32 to vector<8x1xf32>
      %17 = arith.select %15, %16, %13 : vector<8x1xi1>, vector<8x1xf32>
      %c0_8 = arith.constant 0 : index
      %c0_9 = arith.constant 0 : index
      %c0_10 = arith.constant 0 : index
      %18 = vector.load %arg14[%c0_8, %c0_9, %c0_10] : memref<2x8x128xf32, #tpu.memory_space<vmem>>, vector<1x8x128xf32>
      %19 = vector.shape_cast %18 : vector<1x8x128xf32> to vector<8x128xf32>
      %20 = tpu.reciprocal %17 {approx = true} : vector<8x1xf32> -> vector<8x1xf32>
      %21 = vector.broadcast %20 : vector<8x1xf32> to vector<8x128xf32>
      %22 = arith.mulf %19, %21 : vector<8x128xf32>
      %c0_11 = arith.constant 0 : index
      %c0_12 = arith.constant 0 : index
      %23 = vector.load %arg15[%c0_11, %c0_12] : memref<8x256xf32, #tpu.memory_space<vmem>>, vector<8x128xf32>
      tpu.vector_store %arg15[%c0_11, %c0_12], %22 {strides = array<i32>} : memref<8x256xf32, #tpu.memory_space<vmem>>, vector<8x128xf32>,
      %c1 = arith.constant 1 : index
      %c0_13 = arith.constant 0 : index
      %c0_14 = arith.constant 0 : index
      %24 = vector.load %arg13[%c1, %c0_13, %c0_14] : memref<2x8x1xf32, #tpu.memory_space<vmem>>, vector<1x8x1xf32>
      %25 = vector.shape_cast %24 : vector<1x8x1xf32> to vector<8x1xf32>
      %cst_15 = arith.constant 0.000000e+00 : f32
      %26 = vector.broadcast %cst_15 : f32 to vector<8x1xf32>
      %27 = arith.cmpf oeq, %25, %26 : vector<8x1xf32>
      %cst_16 = arith.constant 1.000000e+00 : f32
      %28 = vector.broadcast %cst_16 : f32 to vector<8x1xf32>
      %29 = arith.select %27, %28, %25 : vector<8x1xi1>, vector<8x1xf32>
      %c1_17 = arith.constant 1 : index
      %c0_18 = arith.constant 0 : index
      %c0_19 = arith.constant 0 : index
      %30 = vector.load %arg14[%c1_17, %c0_18, %c0_19] : memref<2x8x128xf32, #tpu.memory_space<vmem>>, vector<1x8x128xf32>
      %31 = vector.shape_cast %30 : vector<1x8x128xf32> to vector<8x128xf32>
      %32 = tpu.reciprocal %29 {approx = true} : vector<8x1xf32> -> vector<8x1xf32>
      %33 = vector.broadcast %32 : vector<8x1xf32> to vector<8x128xf32>
      %34 = arith.mulf %31, %33 : vector<8x128xf32>
      %c0_20 = arith.constant 0 : index
      %c128 = arith.constant 128 : index
      %35 = vector.load %arg15[%c0_20, %c128] : memref<8x256xf32, #tpu.memory_space<vmem>>, vector<8x128xf32>
      tpu.vector_store %arg15[%c0_20, %c128], %34 {strides = array<i32>} : memref<8x256xf32, #tpu.memory_space<vmem>>, vector<8x128xf32>,
      %c0_21 = arith.constant 0 : index
      %c0_22 = arith.constant 0 : index
      %36 = vector.load %arg15[%c0_21, %c0_22] : memref<8x256xf32, #tpu.memory_space<vmem>>, vector<8x256xf32>
      %37 = arith.truncf %36 : vector<8x256xf32> to vector<8x256xbf16>
      %c0_23 = arith.constant 0 : index
      %c0_24 = arith.constant 0 : index
      %38 = vector.load %arg6[%c0_23, %c0_24] : memref<256x256xbf16, #tpu.memory_space<vmem>>, vector<256x256xbf16>
      %cst_25 = arith.constant dense<0.000000e+00> : vector<8x256xf32>
      %39 = tpu.matmul %37, %38, %cst_25 {dimension_numbers = #tpu.dot_dimension_numbers<[1], [0], [0], [1], [0, 0, 1, 1], [], []>} : vector<8x256xbf16>, vector<256x256xbf16>, vector<8x256xf32> -> vector<8x256xf32>
      %c0_26 = arith.constant 0 : index
      %c0_27 = arith.constant 0 : index
      %40 = vector.load %arg7[%c0_26, %c0_27] : memref<1x256xf32, #tpu.memory_space<vmem>>, vector<1x256xf32>
      %41 = vector.broadcast %40 : vector<1x256xf32> to vector<8x256xf32>
      %42 = arith.addf %39, %41 : vector<8x256xf32>
      %c0_28 = arith.constant 0 : index
      %c0_29 = arith.constant 0 : index
      %c0_30 = arith.constant 0 : index
      %43 = vector.load %arg8[%c0_28, %c0_29, %c0_30] : memref<1x8x256xf32, #tpu.memory_space<vmem>>, vector<1x8x256xf32>
      %44 = vector.shape_cast %43 : vector<1x8x256xf32> to vector<8x256xf32>
      %45 = arith.addf %44, %42 : vector<8x256xf32>
      %cst_31 = arith.constant dense<0.000000e+00> : vector<8xf32>
      %46 = vector.multi_reduction <add>, %45, %cst_31 [1] : vector<8x256xf32> to vector<8xf32>
      %47 = vector.shape_cast %46 : vector<8xf32> to vector<8x1xf32>
      %cst_32 = arith.constant 2.560000e+02 : f32
      %48 = vector.broadcast %cst_32 : f32 to vector<8x1xf32>
      %49 = arith.divf %47, %48 : vector<8x1xf32>
      %50 = vector.broadcast %49 : vector<8x1xf32> to vector<8x256xf32>
      %51 = arith.subf %45, %50 : vector<8x256xf32>
      %52 = arith.mulf %51, %51 : vector<8x256xf32>
      %cst_33 = arith.constant dense<0.000000e+00> : vector<8xf32>
      %53 = vector.multi_reduction <add>, %52, %cst_33 [1] : vector<8x256xf32> to vector<8xf32>
      %54 = vector.shape_cast %53 : vector<8xf32> to vector<8x1xf32>
      %cst_34 = arith.constant 2.560000e+02 : f32
      %55 = vector.broadcast %cst_34 : f32 to vector<8x1xf32>
      %56 = arith.divf %54, %55 : vector<8x1xf32>
      %57 = vector.broadcast %49 : vector<8x1xf32> to vector<8x256xf32>
      %58 = arith.subf %45, %57 : vector<8x256xf32>
      %cst_35 = arith.constant 9.99999974E-6 : f32
      %59 = vector.broadcast %cst_35 : f32 to vector<8x1xf32>
      %60 = arith.addf %56, %59 : vector<8x1xf32>
      %61 = math.rsqrt %60 : vector<8x1xf32>
      %62 = vector.broadcast %61 : vector<8x1xf32> to vector<8x256xf32>
      %63 = arith.mulf %58, %62 : vector<8x256xf32>
      %c0_36 = arith.constant 0 : index
      %c0_37 = arith.constant 0 : index
      %64 = vector.load %arg9[%c0_36, %c0_37] : memref<1x256xf32, #tpu.memory_space<vmem>>, vector<1x256xf32>
      %65 = vector.broadcast %64 : vector<1x256xf32> to vector<8x256xf32>
      %66 = arith.mulf %63, %65 : vector<8x256xf32>
      %c0_38 = arith.constant 0 : index
      %c0_39 = arith.constant 0 : index
      %67 = vector.load %arg10[%c0_38, %c0_39] : memref<1x256xf32, #tpu.memory_space<vmem>>, vector<1x256xf32>
      %68 = vector.broadcast %67 : vector<1x256xf32> to vector<8x256xf32>
      %69 = arith.addf %66, %68 : vector<8x256xf32>
      %c0_40 = arith.constant 0 : index
      %c0_41 = arith.constant 0 : index
      %c0_42 = arith.constant 0 : index
      %70 = vector.load %arg11[%c0_40, %c0_41, %c0_42] : memref<1x8x256xf32, #tpu.memory_space<vmem>>, vector<1x8x256xf32>
      %71 = vector.shape_cast %70 : vector<1x8x256xf32> to vector<8x256xf32>
      %72 = vector.shape_cast %69 : vector<8x256xf32> to vector<1x8x256xf32>
      tpu.vector_store %arg11[%c0_40, %c0_41, %c0_42], %72 {strides = array<i32>} : memref<1x8x256xf32, #tpu.memory_space<vmem>>, vector<1x8x256xf32>,
    } else {
    }
    return
  }
  func.func @transform_0(%arg0: i32, %arg1: i32, %arg2: i32) -> (i32, i32, i32) {
    %c0_i32 = arith.constant 0 : i32
    %c0_i32_0 = arith.constant 0 : i32
    return %arg0, %arg1, %c0_i32 : i32, i32, i32
  }
  func.func @transform_1(%arg0: i32, %arg1: i32, %arg2: i32) -> (i32, i32, i32) {
    %c0_i32 = arith.constant 0 : i32
    %c0_i32_0 = arith.constant 0 : i32
    return %arg0, %arg2, %c0_i32 : i32, i32, i32
  }
  func.func @transform_2(%arg0: i32, %arg1: i32, %arg2: i32) -> (i32, i32, i32) {
    %c0_i32 = arith.constant 0 : i32
    %c0_i32_0 = arith.constant 0 : i32
    return %arg0, %arg2, %c0_i32 : i32, i32, i32
  }
  func.func @transform_3(%arg0: i32, %arg1: i32, %arg2: i32) -> (i32, i32) {
    %c0_i32 = arith.constant 0 : i32
    %c0_i32_0 = arith.constant 0 : i32
    %c0_i32_1 = arith.constant 0 : i32
    return %c0_i32, %c0_i32_0 : i32, i32
  }
  func.func @transform_4(%arg0: i32, %arg1: i32, %arg2: i32) -> (i32, i32) {
    %c0_i32 = arith.constant 0 : i32
    %c0_i32_0 = arith.constant 0 : i32
    %c0_i32_1 = arith.constant 0 : i32
    return %c0_i32, %c0_i32_0 : i32, i32
  }
  func.func @transform_5(%arg0: i32, %arg1: i32, %arg2: i32) -> (i32, i32, i32) {
    %c0_i32 = arith.constant 0 : i32
    %c0_i32_0 = arith.constant 0 : i32
    return %arg0, %arg1, %c0_i32 : i32, i32, i32
  }
  func.func @transform_6(%arg0: i32, %arg1: i32, %arg2: i32) -> (i32, i32) {
    %c0_i32 = arith.constant 0 : i32
    %c0_i32_0 = arith.constant 0 : i32
    %c0_i32_1 = arith.constant 0 : i32
    return %c0_i32, %c0_i32_0 : i32, i32
  }
  func.func @transform_7(%arg0: i32, %arg1: i32, %arg2: i32) -> (i32, i32) {
    %c0_i32 = arith.constant 0 : i32
    %c0_i32_0 = arith.constant 0 : i32
    %c0_i32_1 = arith.constant 0 : i32
    return %c0_i32, %c0_i32_0 : i32, i32
  }
  func.func @transform_8(%arg0: i32, %arg1: i32, %arg2: i32) -> (i32, i32, i32) {
    %c0_i32 = arith.constant 0 : i32
    %c0_i32_0 = arith.constant 0 : i32
    return %arg0, %arg1, %c0_i32 : i32, i32, i32
  }
}

module attributes {stable_mosaic.version = 11 : i64} {
  func.func @_ffn_res_ln_kernel(%arg0: i32, %arg1: memref<16x256xf32, #tpu.memory_space<vmem>>, %arg2: memref<256x512xbf16, #tpu.memory_space<vmem>>, %arg3: memref<1x512xf32, #tpu.memory_space<vmem>>, %arg4: memref<512x256xbf16, #tpu.memory_space<vmem>>, %arg5: memref<1x256xf32, #tpu.memory_space<vmem>>, %arg6: memref<1x256xf32, #tpu.memory_space<vmem>>, %arg7: memref<1x256xf32, #tpu.memory_space<vmem>>, %arg8: memref<16x256xf32, #tpu.memory_space<vmem>>) attributes {dimension_semantics = [#tpu.dimension_semantics<parallel>], iteration_bounds = array<i64: 1>, scalar_prefetch = 0 : i64, scratch_operands = 0 : i64, tpu.core_type = #tpu.core_type<tc>, window_params = [{transform_indices = @transform_0, window_bounds = array<i64: 16, 256>}, {pipeline_mode = #tpu.pipeline_mode<synchronous>, transform_indices = @transform_1, window_bounds = array<i64: 256, 512>}, {pipeline_mode = #tpu.pipeline_mode<synchronous>, transform_indices = @transform_2, window_bounds = array<i64: 1, 512>}, {pipeline_mode = #tpu.pipeline_mode<synchronous>, transform_indices = @transform_3, window_bounds = array<i64: 512, 256>}, {pipeline_mode = #tpu.pipeline_mode<synchronous>, transform_indices = @transform_4, window_bounds = array<i64: 1, 256>}, {pipeline_mode = #tpu.pipeline_mode<synchronous>, transform_indices = @transform_5, window_bounds = array<i64: 1, 256>}, {pipeline_mode = #tpu.pipeline_mode<synchronous>, transform_indices = @transform_6, window_bounds = array<i64: 1, 256>}, {transform_indices = @transform_7, window_bounds = array<i64: 16, 256>}]} {
    %c0 = arith.constant 0 : index
    %c0_0 = arith.constant 0 : index
    %0 = vector.load %arg1[%c0, %c0_0] : memref<16x256xf32, #tpu.memory_space<vmem>>, vector<16x256xf32>
    %1 = arith.truncf %0 : vector<16x256xf32> to vector<16x256xbf16>
    %c0_1 = arith.constant 0 : index
    %c0_2 = arith.constant 0 : index
    %2 = vector.load %arg2[%c0_1, %c0_2] : memref<256x512xbf16, #tpu.memory_space<vmem>>, vector<256x512xbf16>
    %cst = arith.constant dense<0.000000e+00> : vector<16x512xf32>
    %3 = tpu.matmul %1, %2, %cst {dimension_numbers = #tpu.dot_dimension_numbers<[1], [0], [0], [1], [0, 0, 1, 1], [], []>} : vector<16x256xbf16>, vector<256x512xbf16>, vector<16x512xf32> -> vector<16x512xf32>
    %c0_3 = arith.constant 0 : index
    %c0_4 = arith.constant 0 : index
    %4 = vector.load %arg3[%c0_3, %c0_4] : memref<1x512xf32, #tpu.memory_space<vmem>>, vector<1x512xf32>
    %5 = vector.broadcast %4 : vector<1x512xf32> to vector<16x512xf32>
    %6 = arith.addf %3, %5 : vector<16x512xf32>
    %cst_5 = arith.constant 0.000000e+00 : f32
    %7 = vector.broadcast %cst_5 : f32 to vector<16x512xf32>
    %8 = arith.maximumf %6, %7 : vector<16x512xf32>
    %9 = arith.truncf %8 : vector<16x512xf32> to vector<16x512xbf16>
    %c0_6 = arith.constant 0 : index
    %c0_7 = arith.constant 0 : index
    %10 = vector.load %arg4[%c0_6, %c0_7] : memref<512x256xbf16, #tpu.memory_space<vmem>>, vector<512x256xbf16>
    %cst_8 = arith.constant dense<0.000000e+00> : vector<16x256xf32>
    %11 = tpu.matmul %9, %10, %cst_8 {dimension_numbers = #tpu.dot_dimension_numbers<[1], [0], [0], [1], [0, 0, 1, 1], [], []>} : vector<16x512xbf16>, vector<512x256xbf16>, vector<16x256xf32> -> vector<16x256xf32>
    %c0_9 = arith.constant 0 : index
    %c0_10 = arith.constant 0 : index
    %12 = vector.load %arg5[%c0_9, %c0_10] : memref<1x256xf32, #tpu.memory_space<vmem>>, vector<1x256xf32>
    %13 = vector.broadcast %12 : vector<1x256xf32> to vector<16x256xf32>
    %14 = arith.addf %11, %13 : vector<16x256xf32>
    %15 = arith.addf %0, %14 : vector<16x256xf32>
    %cst_11 = arith.constant dense<0.000000e+00> : vector<16xf32>
    %16 = vector.multi_reduction <add>, %15, %cst_11 [1] : vector<16x256xf32> to vector<16xf32>
    %17 = vector.shape_cast %16 : vector<16xf32> to vector<16x1xf32>
    %cst_12 = arith.constant 2.560000e+02 : f32
    %18 = vector.broadcast %cst_12 : f32 to vector<16x1xf32>
    %19 = arith.divf %17, %18 : vector<16x1xf32>
    %20 = vector.broadcast %19 : vector<16x1xf32> to vector<16x256xf32>
    %21 = arith.subf %15, %20 : vector<16x256xf32>
    %22 = arith.mulf %21, %21 : vector<16x256xf32>
    %cst_13 = arith.constant dense<0.000000e+00> : vector<16xf32>
    %23 = vector.multi_reduction <add>, %22, %cst_13 [1] : vector<16x256xf32> to vector<16xf32>
    %24 = vector.shape_cast %23 : vector<16xf32> to vector<16x1xf32>
    %cst_14 = arith.constant 2.560000e+02 : f32
    %25 = vector.broadcast %cst_14 : f32 to vector<16x1xf32>
    %26 = arith.divf %24, %25 : vector<16x1xf32>
    %27 = vector.broadcast %19 : vector<16x1xf32> to vector<16x256xf32>
    %28 = arith.subf %15, %27 : vector<16x256xf32>
    %cst_15 = arith.constant 9.99999974E-6 : f32
    %29 = vector.broadcast %cst_15 : f32 to vector<16x1xf32>
    %30 = arith.addf %26, %29 : vector<16x1xf32>
    %31 = math.rsqrt %30 : vector<16x1xf32>
    %32 = vector.broadcast %31 : vector<16x1xf32> to vector<16x256xf32>
    %33 = arith.mulf %28, %32 : vector<16x256xf32>
    %c0_16 = arith.constant 0 : index
    %c0_17 = arith.constant 0 : index
    %34 = vector.load %arg6[%c0_16, %c0_17] : memref<1x256xf32, #tpu.memory_space<vmem>>, vector<1x256xf32>
    %35 = vector.broadcast %34 : vector<1x256xf32> to vector<16x256xf32>
    %36 = arith.mulf %33, %35 : vector<16x256xf32>
    %c0_18 = arith.constant 0 : index
    %c0_19 = arith.constant 0 : index
    %37 = vector.load %arg7[%c0_18, %c0_19] : memref<1x256xf32, #tpu.memory_space<vmem>>, vector<1x256xf32>
    %38 = vector.broadcast %37 : vector<1x256xf32> to vector<16x256xf32>
    %39 = arith.addf %36, %38 : vector<16x256xf32>
    %c0_20 = arith.constant 0 : index
    %c0_21 = arith.constant 0 : index
    %40 = vector.load %arg8[%c0_20, %c0_21] : memref<16x256xf32, #tpu.memory_space<vmem>>, vector<16x256xf32>
    tpu.vector_store %arg8[%c0_20, %c0_21], %39 {strides = array<i32>} : memref<16x256xf32, #tpu.memory_space<vmem>>, vector<16x256xf32>,
    return
  }
  func.func @transform_0(%arg0: i32) -> (i32, i32) {
    %c0_i32 = arith.constant 0 : i32
    %c0_i32_0 = arith.constant 0 : i32
    return %arg0, %c0_i32 : i32, i32
  }
  func.func @transform_1(%arg0: i32) -> (i32, i32) {
    %c0_i32 = arith.constant 0 : i32
    %c0_i32_0 = arith.constant 0 : i32
    %c0_i32_1 = arith.constant 0 : i32
    return %c0_i32, %c0_i32_0 : i32, i32
  }
  func.func @transform_2(%arg0: i32) -> (i32, i32) {
    %c0_i32 = arith.constant 0 : i32
    %c0_i32_0 = arith.constant 0 : i32
    %c0_i32_1 = arith.constant 0 : i32
    return %c0_i32, %c0_i32_0 : i32, i32
  }
  func.func @transform_3(%arg0: i32) -> (i32, i32) {
    %c0_i32 = arith.constant 0 : i32
    %c0_i32_0 = arith.constant 0 : i32
    %c0_i32_1 = arith.constant 0 : i32
    return %c0_i32, %c0_i32_0 : i32, i32
  }
  func.func @transform_4(%arg0: i32) -> (i32, i32) {
    %c0_i32 = arith.constant 0 : i32
    %c0_i32_0 = arith.constant 0 : i32
    %c0_i32_1 = arith.constant 0 : i32
    return %c0_i32, %c0_i32_0 : i32, i32
  }
  func.func @transform_5(%arg0: i32) -> (i32, i32) {
    %c0_i32 = arith.constant 0 : i32
    %c0_i32_0 = arith.constant 0 : i32
    %c0_i32_1 = arith.constant 0 : i32
    return %c0_i32, %c0_i32_0 : i32, i32
  }
  func.func @transform_6(%arg0: i32) -> (i32, i32) {
    %c0_i32 = arith.constant 0 : i32
    %c0_i32_0 = arith.constant 0 : i32
    %c0_i32_1 = arith.constant 0 : i32
    return %c0_i32, %c0_i32_0 : i32, i32
  }
  func.func @transform_7(%arg0: i32) -> (i32, i32) {
    %c0_i32 = arith.constant 0 : i32
    %c0_i32_0 = arith.constant 0 : i32
    return %arg0, %c0_i32 : i32, i32
  }
}

module attributes {stable_mosaic.version = 11 : i64} {
  func.func @_linear_kernel(%arg0: i32, %arg1: i32, %arg2: i32, %arg3: memref<16x256xf32, #tpu.memory_space<vmem>>, %arg4: memref<256x16xbf16, #tpu.memory_space<vmem>>, %arg5: memref<1x16xf32, #tpu.memory_space<vmem>>, %arg6: memref<16x16xf32, #tpu.memory_space<vmem>>, %arg7: memref<16x16xf32, #tpu.memory_space<vmem>>) attributes {dimension_semantics = [#tpu.dimension_semantics<parallel>, #tpu.dimension_semantics<parallel>, #tpu.dimension_semantics<arbitrary>], iteration_bounds = array<i64: 1, 1, 1>, scalar_prefetch = 0 : i64, scratch_operands = 1 : i64, tpu.core_type = #tpu.core_type<tc>, window_params = [{transform_indices = @transform_0, window_bounds = array<i64: 16, 256>}, {transform_indices = @transform_1, window_bounds = array<i64: 256, 16>}, {transform_indices = @transform_2, window_bounds = array<i64: 1, 16>}, {transform_indices = @transform_3, window_bounds = array<i64: 16, 16>}]} {
    %c0_i32 = arith.constant 0 : i32
    %0 = arith.cmpi eq, %arg2, %c0_i32 : i32
    %1 = arith.extui %0 : i1 to i32
    %c0_i32_0 = arith.constant 0 : i32
    %2 = arith.cmpi ne, %1, %c0_i32_0 : i32
    scf.if %2 {
      %cst_10 = arith.constant 0.000000e+00 : f32
      %13 = vector.broadcast %cst_10 : f32 to vector<16x16xf32>
      %c0_11 = arith.constant 0 : index
      %c0_12 = arith.constant 0 : index
      %14 = vector.load %arg7[%c0_11, %c0_12] : memref<16x16xf32, #tpu.memory_space<vmem>>, vector<16x16xf32>
      tpu.vector_store %arg7[%c0_11, %c0_12], %13 {strides = array<i32>} : memref<16x16xf32, #tpu.memory_space<vmem>>, vector<16x16xf32>,
    } else {
    }
    %c0 = arith.constant 0 : index
    %c0_1 = arith.constant 0 : index
    %3 = vector.load %arg7[%c0, %c0_1] : memref<16x16xf32, #tpu.memory_space<vmem>>, vector<16x16xf32>
    %c0_2 = arith.constant 0 : index
    %c0_3 = arith.constant 0 : index
    %4 = vector.load %arg3[%c0_2, %c0_3] : memref<16x256xf32, #tpu.memory_space<vmem>>, vector<16x256xf32>
    %5 = arith.truncf %4 : vector<16x256xf32> to vector<16x256xbf16>
    %c0_4 = arith.constant 0 : index
    %c0_5 = arith.constant 0 : index
    %6 = vector.load %arg4[%c0_4, %c0_5] : memref<256x16xbf16, #tpu.memory_space<vmem>>, vector<256x16xbf16>
    %cst = arith.constant dense<0.000000e+00> : vector<16x16xf32>
    %7 = tpu.matmul %5, %6, %cst {dimension_numbers = #tpu.dot_dimension_numbers<[1], [0], [0], [1], [0, 0, 1, 1], [], []>} : vector<16x256xbf16>, vector<256x16xbf16>, vector<16x16xf32> -> vector<16x16xf32>
    %8 = arith.addf %3, %7 : vector<16x16xf32>
    %c0_6 = arith.constant 0 : index
    %c0_7 = arith.constant 0 : index
    %9 = vector.load %arg7[%c0_6, %c0_7] : memref<16x16xf32, #tpu.memory_space<vmem>>, vector<16x16xf32>
    tpu.vector_store %arg7[%c0_6, %c0_7], %8 {strides = array<i32>} : memref<16x16xf32, #tpu.memory_space<vmem>>, vector<16x16xf32>,
    %c0_i32_8 = arith.constant 0 : i32
    %10 = arith.cmpi eq, %arg2, %c0_i32_8 : i32
    %11 = arith.extui %10 : i1 to i32
    %c0_i32_9 = arith.constant 0 : i32
    %12 = arith.cmpi ne, %11, %c0_i32_9 : i32
    scf.if %12 {
      %c0_10 = arith.constant 0 : index
      %c0_11 = arith.constant 0 : index
      %13 = vector.load %arg7[%c0_10, %c0_11] : memref<16x16xf32, #tpu.memory_space<vmem>>, vector<16x16xf32>
      %c0_12 = arith.constant 0 : index
      %c0_13 = arith.constant 0 : index
      %14 = vector.load %arg5[%c0_12, %c0_13] : memref<1x16xf32, #tpu.memory_space<vmem>>, vector<1x16xf32>
      %15 = vector.broadcast %14 : vector<1x16xf32> to vector<16x16xf32>
      %16 = arith.addf %13, %15 : vector<16x16xf32>
      %c0_14 = arith.constant 0 : index
      %c0_15 = arith.constant 0 : index
      %17 = vector.load %arg6[%c0_14, %c0_15] : memref<16x16xf32, #tpu.memory_space<vmem>>, vector<16x16xf32>
      tpu.vector_store %arg6[%c0_14, %c0_15], %16 {strides = array<i32>} : memref<16x16xf32, #tpu.memory_space<vmem>>, vector<16x16xf32>,
    } else {
    }
    return
  }
  func.func @transform_0(%arg0: i32, %arg1: i32, %arg2: i32) -> (i32, i32) {
    %c0_i32 = arith.constant 0 : i32
    return %arg0, %arg2 : i32, i32
  }
  func.func @transform_1(%arg0: i32, %arg1: i32, %arg2: i32) -> (i32, i32) {
    %c0_i32 = arith.constant 0 : i32
    return %arg2, %arg1 : i32, i32
  }
  func.func @transform_2(%arg0: i32, %arg1: i32, %arg2: i32) -> (i32, i32) {
    %c0_i32 = arith.constant 0 : i32
    %c0_i32_0 = arith.constant 0 : i32
    return %c0_i32, %arg1 : i32, i32
  }
  func.func @transform_3(%arg0: i32, %arg1: i32, %arg2: i32) -> (i32, i32) {
    %c0_i32 = arith.constant 0 : i32
    return %arg0, %arg1 : i32, i32
  }
}

module attributes {stable_mosaic.version = 11 : i64} {
  func.func @_flash_attn_kernel(%arg0: i32, %arg1: i32, %arg2: i32, %arg3: memref<1x8x256xbf16, #tpu.memory_space<vmem>>, %arg4: memref<1x8x256xbf16, #tpu.memory_space<vmem>>, %arg5: memref<1x8x256xbf16, #tpu.memory_space<vmem>>, %arg6: memref<256x256xbf16, #tpu.memory_space<vmem>>, %arg7: memref<1x256xf32, #tpu.memory_space<vmem>>, %arg8: memref<1x8x256xf32, #tpu.memory_space<vmem>>, %arg9: memref<1x256xf32, #tpu.memory_space<vmem>>, %arg10: memref<1x256xf32, #tpu.memory_space<vmem>>, %arg11: memref<1x8x256xf32, #tpu.memory_space<vmem>>, %arg12: memref<2x8x1xf32, #tpu.memory_space<vmem>>, %arg13: memref<2x8x1xf32, #tpu.memory_space<vmem>>, %arg14: memref<2x8x128xf32, #tpu.memory_space<vmem>>, %arg15: memref<8x256xf32, #tpu.memory_space<vmem>>) attributes {dimension_semantics = [#tpu.dimension_semantics<parallel>, #tpu.dimension_semantics<parallel>, #tpu.dimension_semantics<arbitrary>], iteration_bounds = array<i64: 2, 1, 1>, scalar_prefetch = 0 : i64, scratch_operands = 4 : i64, tpu.core_type = #tpu.core_type<tc>, window_params = [{transform_indices = @transform_0, window_bounds = array<i64: 1, 8, 256>}, {transform_indices = @transform_1, window_bounds = array<i64: 1, 8, 256>}, {transform_indices = @transform_2, window_bounds = array<i64: 1, 8, 256>}, {pipeline_mode = #tpu.pipeline_mode<synchronous>, transform_indices = @transform_3, window_bounds = array<i64: 256, 256>}, {pipeline_mode = #tpu.pipeline_mode<synchronous>, transform_indices = @transform_4, window_bounds = array<i64: 1, 256>}, {transform_indices = @transform_5, window_bounds = array<i64: 1, 8, 256>}, {pipeline_mode = #tpu.pipeline_mode<synchronous>, transform_indices = @transform_6, window_bounds = array<i64: 1, 256>}, {pipeline_mode = #tpu.pipeline_mode<synchronous>, transform_indices = @transform_7, window_bounds = array<i64: 1, 256>}, {transform_indices = @transform_8, window_bounds = array<i64: 1, 8, 256>}]} {
    %c0_i32 = arith.constant 0 : i32
    %0 = arith.cmpi eq, %arg2, %c0_i32 : i32
    %1 = arith.extui %0 : i1 to i32
    %c0_i32_0 = arith.constant 0 : i32
    %2 = arith.cmpi ne, %1, %c0_i32_0 : i32
    scf.if %2 {
      %cst_53 = arith.constant -1.000000e+30 : f32
      %84 = vector.broadcast %cst_53 : f32 to vector<2x8x1xf32>
      %c0_54 = arith.constant 0 : index
      %c0_55 = arith.constant 0 : index
      %c0_56 = arith.constant 0 : index
      %85 = vector.load %arg12[%c0_54, %c0_55, %c0_56] : memref<2x8x1xf32, #tpu.memory_space<vmem>>, vector<2x8x1xf32>
      tpu.vector_store %arg12[%c0_54, %c0_55, %c0_56], %84 {strides = array<i32>} : memref<2x8x1xf32, #tpu.memory_space<vmem>>, vector<2x8x1xf32>,
      %cst_57 = arith.constant 0.000000e+00 : f32
      %86 = vector.broadcast %cst_57 : f32 to vector<2x8x1xf32>
      %c0_58 = arith.constant 0 : index
      %c0_59 = arith.constant 0 : index
      %c0_60 = arith.constant 0 : index
      %87 = vector.load %arg13[%c0_58, %c0_59, %c0_60] : memref<2x8x1xf32, #tpu.memory_space<vmem>>, vector<2x8x1xf32>
      tpu.vector_store %arg13[%c0_58, %c0_59, %c0_60], %86 {strides = array<i32>} : memref<2x8x1xf32, #tpu.memory_space<vmem>>, vector<2x8x1xf32>,
      %cst_61 = arith.constant 0.000000e+00 : f32
      %88 = vector.broadcast %cst_61 : f32 to vector<2x8x128xf32>
      %c0_62 = arith.constant 0 : index
      %c0_63 = arith.constant 0 : index
      %c0_64 = arith.constant 0 : index
      %89 = vector.load %arg14[%c0_62, %c0_63, %c0_64] : memref<2x8x128xf32, #tpu.memory_space<vmem>>, vector<2x8x128xf32>
      tpu.vector_store %arg14[%c0_62, %c0_63, %c0_64], %88 {strides = array<i32>} : memref<2x8x128xf32, #tpu.memory_space<vmem>>, vector<2x8x128xf32>,
    } else {
    }
    %c0 = arith.constant 0 : index
    %c0_1 = arith.constant 0 : index
    %c0_2 = arith.constant 0 : index
    %3 = vector.load %arg3[%c0, %c0_1, %c0_2] : memref<1x8x256xbf16, #tpu.memory_space<vmem>>, vector<1x8x256xbf16>
    %4 = vector.shape_cast %3 : vector<1x8x256xbf16> to vector<8x256xbf16>
    %c0_3 = arith.constant 0 : index
    %c0_4 = arith.constant 0 : index
    %c0_5 = arith.constant 0 : index
    %5 = vector.load %arg4[%c0_3, %c0_4, %c0_5] : memref<1x8x256xbf16, #tpu.memory_space<vmem>>, vector<1x8x256xbf16>
    %6 = vector.shape_cast %5 : vector<1x8x256xbf16> to vector<8x256xbf16>
    %c0_6 = arith.constant 0 : index
    %c0_7 = arith.constant 0 : index
    %c0_8 = arith.constant 0 : index
    %7 = vector.load %arg5[%c0_6, %c0_7, %c0_8] : memref<1x8x256xbf16, #tpu.memory_space<vmem>>, vector<1x8x256xbf16>
    %8 = vector.shape_cast %7 : vector<1x8x256xbf16> to vector<8x256xbf16>
    %9 = vector.extract_strided_slice %4 {offsets = [0, 0], sizes = [8, 128], strides = [1, 1]} : vector<8x256xbf16> to vector<8x128xbf16>
    %10 = vector.extract_strided_slice %6 {offsets = [0, 0], sizes = [8, 128], strides = [1, 1]} : vector<8x256xbf16> to vector<8x128xbf16>
    %cst = arith.constant dense<0.000000e+00> : vector<8x8xf32>
    %11 = tpu.matmul %9, %10, %cst {dimension_numbers = #tpu.dot_dimension_numbers<[1], [1], [0], [0], [0, 0, 1, 0], [], []>} : vector<8x128xbf16>, vector<8x128xbf16>, vector<8x8xf32> -> vector<8x8xf32>
    %c0_9 = arith.constant 0 : index
    %c0_10 = arith.constant 0 : index
    %c0_11 = arith.constant 0 : index
    %12 = vector.load %arg12[%c0_9, %c0_10, %c0_11] : memref<2x8x1xf32, #tpu.memory_space<vmem>>, vector<1x8x1xf32>
    %13 = vector.shape_cast %12 : vector<1x8x1xf32> to vector<8x1xf32>
    %cst_12 = arith.constant dense<0xFF800000> : vector<8xf32>
    %14 = vector.multi_reduction <maximumf>, %11, %cst_12 [1] : vector<8x8xf32> to vector<8xf32>
    %15 = vector.shape_cast %14 : vector<8xf32> to vector<8x1xf32>
    %16 = arith.maximumf %13, %15 : vector<8x1xf32>
    %17 = arith.subf %13, %16 : vector<8x1xf32>
    %18 = math.exp %17 : vector<8x1xf32>
    %19 = vector.broadcast %16 : vector<8x1xf32> to vector<8x8xf32>
    %20 = arith.subf %11, %19 : vector<8x8xf32>
    %21 = math.exp %20 : vector<8x8xf32>
    %c0_13 = arith.constant 0 : index
    %c0_14 = arith.constant 0 : index
    %c0_15 = arith.constant 0 : index
    %22 = vector.load %arg13[%c0_13, %c0_14, %c0_15] : memref<2x8x1xf32, #tpu.memory_space<vmem>>, vector<1x8x1xf32>
    %23 = vector.shape_cast %22 : vector<1x8x1xf32> to vector<8x1xf32>
    %24 = arith.mulf %18, %23 : vector<8x1xf32>
    %cst_16 = arith.constant dense<0.000000e+00> : vector<8xf32>
    %25 = vector.multi_reduction <add>, %21, %cst_16 [1] : vector<8x8xf32> to vector<8xf32>
    %26 = vector.shape_cast %25 : vector<8xf32> to vector<8x1xf32>
    %27 = arith.addf %24, %26 : vector<8x1xf32>
    %c0_17 = arith.constant 0 : index
    %c0_18 = arith.constant 0 : index
    %c0_19 = arith.constant 0 : index
    %28 = vector.load %arg13[%c0_17, %c0_18, %c0_19] : memref<2x8x1xf32, #tpu.memory_space<vmem>>, vector<1x8x1xf32>
    %29 = vector.shape_cast %28 : vector<1x8x1xf32> to vector<8x1xf32>
    %30 = vector.shape_cast %27 : vector<8x1xf32> to vector<1x8x1xf32>
    tpu.vector_store %arg13[%c0_17, %c0_18, %c0_19], %30 {strides = array<i32>} : memref<2x8x1xf32, #tpu.memory_space<vmem>>, vector<1x8x1xf32>,
    %c0_20 = arith.constant 0 : index
    %c0_21 = arith.constant 0 : index
    %c0_22 = arith.constant 0 : index
    %31 = vector.load %arg14[%c0_20, %c0_21, %c0_22] : memref<2x8x128xf32, #tpu.memory_space<vmem>>, vector<1x8x128xf32>
    %32 = vector.shape_cast %31 : vector<1x8x128xf32> to vector<8x128xf32>
    %33 = vector.broadcast %18 : vector<8x1xf32> to vector<8x128xf32>
    %34 = arith.mulf %33, %32 : vector<8x128xf32>
    %35 = arith.truncf %21 : vector<8x8xf32> to vector<8x8xbf16>
    %36 = vector.extract_strided_slice %8 {offsets = [0, 0], sizes = [8, 128], strides = [1, 1]} : vector<8x256xbf16> to vector<8x128xbf16>
    %cst_23 = arith.constant dense<0.000000e+00> : vector<8x128xf32>
    %37 = tpu.matmul %35, %36, %cst_23 {dimension_numbers = #tpu.dot_dimension_numbers<[1], [0], [0], [1], [0, 0, 1, 1], [], []>} : vector<8x8xbf16>, vector<8x128xbf16>, vector<8x128xf32> -> vector<8x128xf32>
    %38 = arith.addf %34, %37 : vector<8x128xf32>
    %c0_24 = arith.constant 0 : index
    %c0_25 = arith.constant 0 : index
    %c0_26 = arith.constant 0 : index
    %39 = vector.load %arg14[%c0_24, %c0_25, %c0_26] : memref<2x8x128xf32, #tpu.memory_space<vmem>>, vector<1x8x128xf32>
    %40 = vector.shape_cast %39 : vector<1x8x128xf32> to vector<8x128xf32>
    %41 = vector.shape_cast %38 : vector<8x128xf32> to vector<1x8x128xf32>
    tpu.vector_store %arg14[%c0_24, %c0_25, %c0_26], %41 {strides = array<i32>} : memref<2x8x128xf32, #tpu.memory_space<vmem>>, vector<1x8x128xf32>,
    %c0_27 = arith.constant 0 : index
    %c0_28 = arith.constant 0 : index
    %c0_29 = arith.constant 0 : index
    %42 = vector.load %arg12[%c0_27, %c0_28, %c0_29] : memref<2x8x1xf32, #tpu.memory_space<vmem>>, vector<1x8x1xf32>
    %43 = vector.shape_cast %42 : vector<1x8x1xf32> to vector<8x1xf32>
    %44 = vector.shape_cast %16 : vector<8x1xf32> to vector<1x8x1xf32>
    tpu.vector_store %arg12[%c0_27, %c0_28, %c0_29], %44 {strides = array<i32>} : memref<2x8x1xf32, #tpu.memory_space<vmem>>, vector<1x8x1xf32>,
    %45 = vector.extract_strided_slice %4 {offsets = [0, 128], sizes = [8, 128], strides = [1, 1]} : vector<8x256xbf16> to vector<8x128xbf16>
    %46 = vector.extract_strided_slice %6 {offsets = [0, 128], sizes = [8, 128], strides = [1, 1]} : vector<8x256xbf16> to vector<8x128xbf16>
    %cst_30 = arith.constant dense<0.000000e+00> : vector<8x8xf32>
    %47 = tpu.matmul %45, %46, %cst_30 {dimension_numbers = #tpu.dot_dimension_numbers<[1], [1], [0], [0], [0, 0, 1, 0], [], []>} : vector<8x128xbf16>, vector<8x128xbf16>, vector<8x8xf32> -> vector<8x8xf32>
    %c1 = arith.constant 1 : index
    %c0_31 = arith.constant 0 : index
    %c0_32 = arith.constant 0 : index
    %48 = vector.load %arg12[%c1, %c0_31, %c0_32] : memref<2x8x1xf32, #tpu.memory_space<vmem>>, vector<1x8x1xf32>
    %49 = vector.shape_cast %48 : vector<1x8x1xf32> to vector<8x1xf32>
    %cst_33 = arith.constant dense<0xFF800000> : vector<8xf32>
    %50 = vector.multi_reduction <maximumf>, %47, %cst_33 [1] : vector<8x8xf32> to vector<8xf32>
    %51 = vector.shape_cast %50 : vector<8xf32> to vector<8x1xf32>
    %52 = arith.maximumf %49, %51 : vector<8x1xf32>
    %53 = arith.subf %49, %52 : vector<8x1xf32>
    %54 = math.exp %53 : vector<8x1xf32>
    %55 = vector.broadcast %52 : vector<8x1xf32> to vector<8x8xf32>
    %56 = arith.subf %47, %55 : vector<8x8xf32>
    %57 = math.exp %56 : vector<8x8xf32>
    %c1_34 = arith.constant 1 : index
    %c0_35 = arith.constant 0 : index
    %c0_36 = arith.constant 0 : index
    %58 = vector.load %arg13[%c1_34, %c0_35, %c0_36] : memref<2x8x1xf32, #tpu.memory_space<vmem>>, vector<1x8x1xf32>
    %59 = vector.shape_cast %58 : vector<1x8x1xf32> to vector<8x1xf32>
    %60 = arith.mulf %54, %59 : vector<8x1xf32>
    %cst_37 = arith.constant dense<0.000000e+00> : vector<8xf32>
    %61 = vector.multi_reduction <add>, %57, %cst_37 [1] : vector<8x8xf32> to vector<8xf32>
    %62 = vector.shape_cast %61 : vector<8xf32> to vector<8x1xf32>
    %63 = arith.addf %60, %62 : vector<8x1xf32>
    %c1_38 = arith.constant 1 : index
    %c0_39 = arith.constant 0 : index
    %c0_40 = arith.constant 0 : index
    %64 = vector.load %arg13[%c1_38, %c0_39, %c0_40] : memref<2x8x1xf32, #tpu.memory_space<vmem>>, vector<1x8x1xf32>
    %65 = vector.shape_cast %64 : vector<1x8x1xf32> to vector<8x1xf32>
    %66 = vector.shape_cast %63 : vector<8x1xf32> to vector<1x8x1xf32>
    tpu.vector_store %arg13[%c1_38, %c0_39, %c0_40], %66 {strides = array<i32>} : memref<2x8x1xf32, #tpu.memory_space<vmem>>, vector<1x8x1xf32>,
    %c1_41 = arith.constant 1 : index
    %c0_42 = arith.constant 0 : index
    %c0_43 = arith.constant 0 : index
    %67 = vector.load %arg14[%c1_41, %c0_42, %c0_43] : memref<2x8x128xf32, #tpu.memory_space<vmem>>, vector<1x8x128xf32>
    %68 = vector.shape_cast %67 : vector<1x8x128xf32> to vector<8x128xf32>
    %69 = vector.broadcast %54 : vector<8x1xf32> to vector<8x128xf32>
    %70 = arith.mulf %69, %68 : vector<8x128xf32>
    %71 = arith.truncf %57 : vector<8x8xf32> to vector<8x8xbf16>
    %72 = vector.extract_strided_slice %8 {offsets = [0, 128], sizes = [8, 128], strides = [1, 1]} : vector<8x256xbf16> to vector<8x128xbf16>
    %cst_44 = arith.constant dense<0.000000e+00> : vector<8x128xf32>
    %73 = tpu.matmul %71, %72, %cst_44 {dimension_numbers = #tpu.dot_dimension_numbers<[1], [0], [0], [1], [0, 0, 1, 1], [], []>} : vector<8x8xbf16>, vector<8x128xbf16>, vector<8x128xf32> -> vector<8x128xf32>
    %74 = arith.addf %70, %73 : vector<8x128xf32>
    %c1_45 = arith.constant 1 : index
    %c0_46 = arith.constant 0 : index
    %c0_47 = arith.constant 0 : index
    %75 = vector.load %arg14[%c1_45, %c0_46, %c0_47] : memref<2x8x128xf32, #tpu.memory_space<vmem>>, vector<1x8x128xf32>
    %76 = vector.shape_cast %75 : vector<1x8x128xf32> to vector<8x128xf32>
    %77 = vector.shape_cast %74 : vector<8x128xf32> to vector<1x8x128xf32>
    tpu.vector_store %arg14[%c1_45, %c0_46, %c0_47], %77 {strides = array<i32>} : memref<2x8x128xf32, #tpu.memory_space<vmem>>, vector<1x8x128xf32>,
    %c1_48 = arith.constant 1 : index
    %c0_49 = arith.constant 0 : index
    %c0_50 = arith.constant 0 : index
    %78 = vector.load %arg12[%c1_48, %c0_49, %c0_50] : memref<2x8x1xf32, #tpu.memory_space<vmem>>, vector<1x8x1xf32>
    %79 = vector.shape_cast %78 : vector<1x8x1xf32> to vector<8x1xf32>
    %80 = vector.shape_cast %52 : vector<8x1xf32> to vector<1x8x1xf32>
    tpu.vector_store %arg12[%c1_48, %c0_49, %c0_50], %80 {strides = array<i32>} : memref<2x8x1xf32, #tpu.memory_space<vmem>>, vector<1x8x1xf32>,
    %c0_i32_51 = arith.constant 0 : i32
    %81 = arith.cmpi eq, %arg2, %c0_i32_51 : i32
    %82 = arith.extui %81 : i1 to i32
    %c0_i32_52 = arith.constant 0 : i32
    %83 = arith.cmpi ne, %82, %c0_i32_52 : i32
    scf.if %83 {
      %c0_53 = arith.constant 0 : index
      %c0_54 = arith.constant 0 : index
      %c0_55 = arith.constant 0 : index
      %84 = vector.load %arg13[%c0_53, %c0_54, %c0_55] : memref<2x8x1xf32, #tpu.memory_space<vmem>>, vector<1x8x1xf32>
      %85 = vector.shape_cast %84 : vector<1x8x1xf32> to vector<8x1xf32>
      %cst_56 = arith.constant 0.000000e+00 : f32
      %86 = vector.broadcast %cst_56 : f32 to vector<8x1xf32>
      %87 = arith.cmpf oeq, %85, %86 : vector<8x1xf32>
      %cst_57 = arith.constant 1.000000e+00 : f32
      %88 = vector.broadcast %cst_57 : f32 to vector<8x1xf32>
      %89 = arith.select %87, %88, %85 : vector<8x1xi1>, vector<8x1xf32>
      %c0_58 = arith.constant 0 : index
      %c0_59 = arith.constant 0 : index
      %c0_60 = arith.constant 0 : index
      %90 = vector.load %arg14[%c0_58, %c0_59, %c0_60] : memref<2x8x128xf32, #tpu.memory_space<vmem>>, vector<1x8x128xf32>
      %91 = vector.shape_cast %90 : vector<1x8x128xf32> to vector<8x128xf32>
      %92 = tpu.reciprocal %89 {approx = true} : vector<8x1xf32> -> vector<8x1xf32>
      %93 = vector.broadcast %92 : vector<8x1xf32> to vector<8x128xf32>
      %94 = arith.mulf %91, %93 : vector<8x128xf32>
      %c0_61 = arith.constant 0 : index
      %c0_62 = arith.constant 0 : index
      %95 = vector.load %arg15[%c0_61, %c0_62] : memref<8x256xf32, #tpu.memory_space<vmem>>, vector<8x128xf32>
      tpu.vector_store %arg15[%c0_61, %c0_62], %94 {strides = array<i32>} : memref<8x256xf32, #tpu.memory_space<vmem>>, vector<8x128xf32>,
      %c1_63 = arith.constant 1 : index
      %c0_64 = arith.constant 0 : index
      %c0_65 = arith.constant 0 : index
      %96 = vector.load %arg13[%c1_63, %c0_64, %c0_65] : memref<2x8x1xf32, #tpu.memory_space<vmem>>, vector<1x8x1xf32>
      %97 = vector.shape_cast %96 : vector<1x8x1xf32> to vector<8x1xf32>
      %cst_66 = arith.constant 0.000000e+00 : f32
      %98 = vector.broadcast %cst_66 : f32 to vector<8x1xf32>
      %99 = arith.cmpf oeq, %97, %98 : vector<8x1xf32>
      %cst_67 = arith.constant 1.000000e+00 : f32
      %100 = vector.broadcast %cst_67 : f32 to vector<8x1xf32>
      %101 = arith.select %99, %100, %97 : vector<8x1xi1>, vector<8x1xf32>
      %c1_68 = arith.constant 1 : index
      %c0_69 = arith.constant 0 : index
      %c0_70 = arith.constant 0 : index
      %102 = vector.load %arg14[%c1_68, %c0_69, %c0_70] : memref<2x8x128xf32, #tpu.memory_space<vmem>>, vector<1x8x128xf32>
      %103 = vector.shape_cast %102 : vector<1x8x128xf32> to vector<8x128xf32>
      %104 = tpu.reciprocal %101 {approx = true} : vector<8x1xf32> -> vector<8x1xf32>
      %105 = vector.broadcast %104 : vector<8x1xf32> to vector<8x128xf32>
      %106 = arith.mulf %103, %105 : vector<8x128xf32>
      %c0_71 = arith.constant 0 : index
      %c128 = arith.constant 128 : index
      %107 = vector.load %arg15[%c0_71, %c128] : memref<8x256xf32, #tpu.memory_space<vmem>>, vector<8x128xf32>
      tpu.vector_store %arg15[%c0_71, %c128], %106 {strides = array<i32>} : memref<8x256xf32, #tpu.memory_space<vmem>>, vector<8x128xf32>,
      %c0_72 = arith.constant 0 : index
      %c0_73 = arith.constant 0 : index
      %108 = vector.load %arg15[%c0_72, %c0_73] : memref<8x256xf32, #tpu.memory_space<vmem>>, vector<8x256xf32>
      %109 = arith.truncf %108 : vector<8x256xf32> to vector<8x256xbf16>
      %c0_74 = arith.constant 0 : index
      %c0_75 = arith.constant 0 : index
      %110 = vector.load %arg6[%c0_74, %c0_75] : memref<256x256xbf16, #tpu.memory_space<vmem>>, vector<256x256xbf16>
      %cst_76 = arith.constant dense<0.000000e+00> : vector<8x256xf32>
      %111 = tpu.matmul %109, %110, %cst_76 {dimension_numbers = #tpu.dot_dimension_numbers<[1], [0], [0], [1], [0, 0, 1, 1], [], []>} : vector<8x256xbf16>, vector<256x256xbf16>, vector<8x256xf32> -> vector<8x256xf32>
      %c0_77 = arith.constant 0 : index
      %c0_78 = arith.constant 0 : index
      %112 = vector.load %arg7[%c0_77, %c0_78] : memref<1x256xf32, #tpu.memory_space<vmem>>, vector<1x256xf32>
      %113 = vector.broadcast %112 : vector<1x256xf32> to vector<8x256xf32>
      %114 = arith.addf %111, %113 : vector<8x256xf32>
      %c0_79 = arith.constant 0 : index
      %c0_80 = arith.constant 0 : index
      %c0_81 = arith.constant 0 : index
      %115 = vector.load %arg8[%c0_79, %c0_80, %c0_81] : memref<1x8x256xf32, #tpu.memory_space<vmem>>, vector<1x8x256xf32>
      %116 = vector.shape_cast %115 : vector<1x8x256xf32> to vector<8x256xf32>
      %117 = arith.addf %116, %114 : vector<8x256xf32>
      %cst_82 = arith.constant dense<0.000000e+00> : vector<8xf32>
      %118 = vector.multi_reduction <add>, %117, %cst_82 [1] : vector<8x256xf32> to vector<8xf32>
      %119 = vector.shape_cast %118 : vector<8xf32> to vector<8x1xf32>
      %cst_83 = arith.constant 2.560000e+02 : f32
      %120 = vector.broadcast %cst_83 : f32 to vector<8x1xf32>
      %121 = arith.divf %119, %120 : vector<8x1xf32>
      %122 = vector.broadcast %121 : vector<8x1xf32> to vector<8x256xf32>
      %123 = arith.subf %117, %122 : vector<8x256xf32>
      %124 = arith.mulf %123, %123 : vector<8x256xf32>
      %cst_84 = arith.constant dense<0.000000e+00> : vector<8xf32>
      %125 = vector.multi_reduction <add>, %124, %cst_84 [1] : vector<8x256xf32> to vector<8xf32>
      %126 = vector.shape_cast %125 : vector<8xf32> to vector<8x1xf32>
      %cst_85 = arith.constant 2.560000e+02 : f32
      %127 = vector.broadcast %cst_85 : f32 to vector<8x1xf32>
      %128 = arith.divf %126, %127 : vector<8x1xf32>
      %129 = vector.broadcast %121 : vector<8x1xf32> to vector<8x256xf32>
      %130 = arith.subf %117, %129 : vector<8x256xf32>
      %cst_86 = arith.constant 9.99999974E-6 : f32
      %131 = vector.broadcast %cst_86 : f32 to vector<8x1xf32>
      %132 = arith.addf %128, %131 : vector<8x1xf32>
      %133 = math.rsqrt %132 : vector<8x1xf32>
      %134 = vector.broadcast %133 : vector<8x1xf32> to vector<8x256xf32>
      %135 = arith.mulf %130, %134 : vector<8x256xf32>
      %c0_87 = arith.constant 0 : index
      %c0_88 = arith.constant 0 : index
      %136 = vector.load %arg9[%c0_87, %c0_88] : memref<1x256xf32, #tpu.memory_space<vmem>>, vector<1x256xf32>
      %137 = vector.broadcast %136 : vector<1x256xf32> to vector<8x256xf32>
      %138 = arith.mulf %135, %137 : vector<8x256xf32>
      %c0_89 = arith.constant 0 : index
      %c0_90 = arith.constant 0 : index
      %139 = vector.load %arg10[%c0_89, %c0_90] : memref<1x256xf32, #tpu.memory_space<vmem>>, vector<1x256xf32>
      %140 = vector.broadcast %139 : vector<1x256xf32> to vector<8x256xf32>
      %141 = arith.addf %138, %140 : vector<8x256xf32>
      %c0_91 = arith.constant 0 : index
      %c0_92 = arith.constant 0 : index
      %c0_93 = arith.constant 0 : index
      %142 = vector.load %arg11[%c0_91, %c0_92, %c0_93] : memref<1x8x256xf32, #tpu.memory_space<vmem>>, vector<1x8x256xf32>
      %143 = vector.shape_cast %142 : vector<1x8x256xf32> to vector<8x256xf32>
      %144 = vector.shape_cast %141 : vector<8x256xf32> to vector<1x8x256xf32>
      tpu.vector_store %arg11[%c0_91, %c0_92, %c0_93], %144 {strides = array<i32>} : memref<1x8x256xf32, #tpu.memory_space<vmem>>, vector<1x8x256xf32>,
    } else {
    }
    return
  }
  func.func @transform_0(%arg0: i32, %arg1: i32, %arg2: i32) -> (i32, i32, i32) {
    %c0_i32 = arith.constant 0 : i32
    %c0_i32_0 = arith.constant 0 : i32
    return %arg0, %arg1, %c0_i32 : i32, i32, i32
  }
  func.func @transform_1(%arg0: i32, %arg1: i32, %arg2: i32) -> (i32, i32, i32) {
    %c0_i32 = arith.constant 0 : i32
    %c0_i32_0 = arith.constant 0 : i32
    return %arg0, %arg2, %c0_i32 : i32, i32, i32
  }
  func.func @transform_2(%arg0: i32, %arg1: i32, %arg2: i32) -> (i32, i32, i32) {
    %c0_i32 = arith.constant 0 : i32
    %c0_i32_0 = arith.constant 0 : i32
    return %arg0, %arg2, %c0_i32 : i32, i32, i32
  }
  func.func @transform_3(%arg0: i32, %arg1: i32, %arg2: i32) -> (i32, i32) {
    %c0_i32 = arith.constant 0 : i32
    %c0_i32_0 = arith.constant 0 : i32
    %c0_i32_1 = arith.constant 0 : i32
    return %c0_i32, %c0_i32_0 : i32, i32
  }
  func.func @transform_4(%arg0: i32, %arg1: i32, %arg2: i32) -> (i32, i32) {
    %c0_i32 = arith.constant 0 : i32
    %c0_i32_0 = arith.constant 0 : i32
    %c0_i32_1 = arith.constant 0 : i32
    return %c0_i32, %c0_i32_0 : i32, i32
  }
  func.func @transform_5(%arg0: i32, %arg1: i32, %arg2: i32) -> (i32, i32, i32) {
    %c0_i32 = arith.constant 0 : i32
    %c0_i32_0 = arith.constant 0 : i32
    return %arg0, %arg1, %c0_i32 : i32, i32, i32
  }
  func.func @transform_6(%arg0: i32, %arg1: i32, %arg2: i32) -> (i32, i32) {
    %c0_i32 = arith.constant 0 : i32
    %c0_i32_0 = arith.constant 0 : i32
    %c0_i32_1 = arith.constant 0 : i32
    return %c0_i32, %c0_i32_0 : i32, i32
  }
  func.func @transform_7(%arg0: i32, %arg1: i32, %arg2: i32) -> (i32, i32) {
    %c0_i32 = arith.constant 0 : i32
    %c0_i32_0 = arith.constant 0 : i32
    %c0_i32_1 = arith.constant 0 : i32
    return %c0_i32, %c0_i32_0 : i32, i32
  }
  func.func @transform_8(%arg0: i32, %arg1: i32, %arg2: i32) -> (i32, i32, i32) {
    %c0_i32 = arith.constant 0 : i32
    %c0_i32_0 = arith.constant 0 : i32
    return %arg0, %arg1, %c0_i32 : i32, i32, i32
  }
}

module attributes {stable_mosaic.version = 11 : i64} {
  func.func @_linear_kernel(%arg0: i32, %arg1: i32, %arg2: i32, %arg3: memref<16x256xbf16, #tpu.memory_space<vmem>>, %arg4: memref<256x256xbf16, #tpu.memory_space<vmem>>, %arg5: memref<1x256xf32, #tpu.memory_space<vmem>>, %arg6: memref<16x256xbf16, #tpu.memory_space<vmem>>, %arg7: memref<16x256xf32, #tpu.memory_space<vmem>>) attributes {dimension_semantics = [#tpu.dimension_semantics<parallel>, #tpu.dimension_semantics<parallel>, #tpu.dimension_semantics<arbitrary>], iteration_bounds = array<i64: 1, 2, 1>, scalar_prefetch = 0 : i64, scratch_operands = 1 : i64, tpu.core_type = #tpu.core_type<tc>, window_params = [{transform_indices = @transform_0, window_bounds = array<i64: 16, 256>}, {transform_indices = @transform_1, window_bounds = array<i64: 256, 256>}, {transform_indices = @transform_2, window_bounds = array<i64: 1, 256>}, {transform_indices = @transform_3, window_bounds = array<i64: 16, 256>}]} {
    %c0_i32 = arith.constant 0 : i32
    %0 = arith.cmpi eq, %arg2, %c0_i32 : i32
    %1 = arith.extui %0 : i1 to i32
    %c0_i32_0 = arith.constant 0 : i32
    %2 = arith.cmpi ne, %1, %c0_i32_0 : i32
    scf.if %2 {
      %cst_10 = arith.constant 0.000000e+00 : f32
      %12 = vector.broadcast %cst_10 : f32 to vector<16x256xf32>
      %c0_11 = arith.constant 0 : index
      %c0_12 = arith.constant 0 : index
      %13 = vector.load %arg7[%c0_11, %c0_12] : memref<16x256xf32, #tpu.memory_space<vmem>>, vector<16x256xf32>
      tpu.vector_store %arg7[%c0_11, %c0_12], %12 {strides = array<i32>} : memref<16x256xf32, #tpu.memory_space<vmem>>, vector<16x256xf32>,
    } else {
    }
    %c0 = arith.constant 0 : index
    %c0_1 = arith.constant 0 : index
    %3 = vector.load %arg7[%c0, %c0_1] : memref<16x256xf32, #tpu.memory_space<vmem>>, vector<16x256xf32>
    %c0_2 = arith.constant 0 : index
    %c0_3 = arith.constant 0 : index
    %4 = vector.load %arg3[%c0_2, %c0_3] : memref<16x256xbf16, #tpu.memory_space<vmem>>, vector<16x256xbf16>
    %c0_4 = arith.constant 0 : index
    %c0_5 = arith.constant 0 : index
    %5 = vector.load %arg4[%c0_4, %c0_5] : memref<256x256xbf16, #tpu.memory_space<vmem>>, vector<256x256xbf16>
    %cst = arith.constant dense<0.000000e+00> : vector<16x256xf32>
    %6 = tpu.matmul %4, %5, %cst {dimension_numbers = #tpu.dot_dimension_numbers<[1], [0], [0], [1], [0, 0, 1, 1], [], []>} : vector<16x256xbf16>, vector<256x256xbf16>, vector<16x256xf32> -> vector<16x256xf32>
    %7 = arith.addf %3, %6 : vector<16x256xf32>
    %c0_6 = arith.constant 0 : index
    %c0_7 = arith.constant 0 : index
    %8 = vector.load %arg7[%c0_6, %c0_7] : memref<16x256xf32, #tpu.memory_space<vmem>>, vector<16x256xf32>
    tpu.vector_store %arg7[%c0_6, %c0_7], %7 {strides = array<i32>} : memref<16x256xf32, #tpu.memory_space<vmem>>, vector<16x256xf32>,
    %c0_i32_8 = arith.constant 0 : i32
    %9 = arith.cmpi eq, %arg2, %c0_i32_8 : i32
    %10 = arith.extui %9 : i1 to i32
    %c0_i32_9 = arith.constant 0 : i32
    %11 = arith.cmpi ne, %10, %c0_i32_9 : i32
    scf.if %11 {
      %c0_10 = arith.constant 0 : index
      %c0_11 = arith.constant 0 : index
      %12 = vector.load %arg7[%c0_10, %c0_11] : memref<16x256xf32, #tpu.memory_space<vmem>>, vector<16x256xf32>
      %c0_12 = arith.constant 0 : index
      %c0_13 = arith.constant 0 : index
      %13 = vector.load %arg5[%c0_12, %c0_13] : memref<1x256xf32, #tpu.memory_space<vmem>>, vector<1x256xf32>
      %14 = vector.broadcast %13 : vector<1x256xf32> to vector<16x256xf32>
      %15 = arith.addf %12, %14 : vector<16x256xf32>
      %16 = arith.truncf %15 : vector<16x256xf32> to vector<16x256xbf16>
      %c0_14 = arith.constant 0 : index
      %c0_15 = arith.constant 0 : index
      %17 = vector.load %arg6[%c0_14, %c0_15] : memref<16x256xbf16, #tpu.memory_space<vmem>>, vector<16x256xbf16>
      tpu.vector_store %arg6[%c0_14, %c0_15], %16 {strides = array<i32>} : memref<16x256xbf16, #tpu.memory_space<vmem>>, vector<16x256xbf16>,
    } else {
    }
    return
  }
  func.func @transform_0(%arg0: i32, %arg1: i32, %arg2: i32) -> (i32, i32) {
    %c0_i32 = arith.constant 0 : i32
    return %arg0, %arg2 : i32, i32
  }
  func.func @transform_1(%arg0: i32, %arg1: i32, %arg2: i32) -> (i32, i32) {
    %c0_i32 = arith.constant 0 : i32
    return %arg2, %arg1 : i32, i32
  }
  func.func @transform_2(%arg0: i32, %arg1: i32, %arg2: i32) -> (i32, i32) {
    %c0_i32 = arith.constant 0 : i32
    %c0_i32_0 = arith.constant 0 : i32
    return %c0_i32, %arg1 : i32, i32
  }
  func.func @transform_3(%arg0: i32, %arg1: i32, %arg2: i32) -> (i32, i32) {
    %c0_i32 = arith.constant 0 : i32
    return %arg0, %arg1 : i32, i32
  }
}

</mosaic_0001>

<bundles_post_ra>
// kernel: forward.18
= control target key start
LH: loop header
LB: loop body
LE: loop exit
PB: predicated region body
PF: predicated region fallthrough
CT: control target
= control target key end

     0   :  { %v284_v38 = vlaneseq  ;;  %s537_s1 = inlined_call_operand.vmem [shape: bf16[256,256], index: 1, kind: input, shape index: {}]   ;;  %s538_s0 = inlined_call_operand.vmem [shape: f32[16,256], index: 0, kind: input, shape index: {}]   ;;  %s539_s2 = inlined_call_operand.vmem [shape: f32[1,256], index: 2, kind: input, shape index: {}]   ;;  %s540_s3 = inlined_call_operand.vmem [shape: bf16[16,256], index: 3, kind: output, shape index: {}]  }
   0x1   :  { %v352_v0 = vld [vmem:[%s537_s1 + $0x74] ss:$8 sps:$4 sm:$0xff]   ;;  %v354_v1 = vld [vmem:[%s537_s1 + $0x70] ss:$8 sps:$4 sm:$0xff]   ;;  %v355_v2 = vld [vmem:[%s537_s1 + $0x64] ss:$8 sps:$4 sm:$0xff]  }
   0x2   :  { %224 = vmatprep.subr.bf16.mxu0 %v352_v0  ;;  %v357_v3 = vld [vmem:[%s537_s1 + $0x60] ss:$8 sps:$4 sm:$0xff]   ;;  %v358_v4 = vld [vmem:[%s537_s1 + $0x54] ss:$8 sps:$4 sm:$0xff]   ;;  %v360_v5 = vld [vmem:[%s537_s1 + $0x50] ss:$8 sps:$4 sm:$0xff]  }
   0x3   :  { %225 = vmatpush1.bf16.msra.mxu0 %v354_v1  ;;  %v361_v6 = vld [vmem:[%s537_s1 + $0x44] ss:$8 sps:$4 sm:$0xff]   ;;  %v363_v7 = vld [vmem:[%s537_s1 + $0x40] ss:$8 sps:$4 sm:$0xff]   ;;  %v364_v8 = vld [vmem:[%s537_s1 + $0x34] ss:$8 sps:$4 sm:$0xff]  }
   0x4   :  { %226 = vmatprep.subr.bf16.mxu0 %v355_v2  ;;  %v366_v9 = vld [vmem:[%s537_s1 + $0x30] ss:$8 sps:$4 sm:$0xff]   ;;  %v367_v10 = vld [vmem:[%s537_s1 + $0x24] ss:$8 sps:$4 sm:$0xff]   ;;  %v369_v11 = vld [vmem:[%s537_s1 + $0x20] ss:$8 sps:$4 sm:$0xff]  }
   0x5   :  { %v370_v12 = vld [vmem:[%s537_s1 + $0x14] ss:$8 sps:$4 sm:$0xff]   ;;  %v27_v13 = vld [vmem:[%s538_s0 + $0x8] sm:$0xff]  ;;  %v372_v16 = vld [vmem:[%s537_s1 + $0x10] ss:$8 sps:$4 sm:$0xff]   ;;  %v285_v39 = vshrl.u32 %v284_v38, 7 }
   0x6   :  { %v29_v14 = vld [vmem:[%s538_s0 + $0x18] sm:$0xff]  ;;  %v373_v17 = vld [vmem:[%s537_s1 + $0x4] ss:$8 sps:$4 sm:$0xff]   ;;  %v375_v18 = vld [vmem:[%s537_s1] ss:$8 sps:$4 sm:$0xff]  }
   0x7   :  { %227 = vmatpush1.bf16.msra.mxu0 %v357_v3  ;;  %v31_v15 = vpack.c.bf16 %v29_v14, %v27_v13  ;;  %v376_v19 = vld [vmem:[%s537_s1 + $0xf4] ss:$8 sps:$4 sm:$0xff]   ;;  %v378_v20 = vld [vmem:[%s537_s1 + $0xf0] ss:$8 sps:$4 sm:$0xff]   ;;  %v379_v21 = vld [vmem:[%s537_s1 + $0xe4] ss:$8 sps:$4 sm:$0xff]  }
   0x8   :  { %228 = vmatprep.subr.bf16.mxu0 %v358_v4  ;;  %v381_v22 = vld [vmem:[%s537_s1 + $0xe0] ss:$8 sps:$4 sm:$0xff]   ;;  %v382_v23 = vld [vmem:[%s537_s1 + $0xd4] ss:$8 sps:$4 sm:$0xff]   ;;  %v384_v24 = vld [vmem:[%s537_s1 + $0xd0] ss:$8 sps:$4 sm:$0xff]  }
   0x9   :  { %256 = vmatprep.mubr.bf16.mxu0 %v31_v15  ;;  %v385_v25 = vld [vmem:[%s537_s1 + $0xc4] ss:$8 sps:$4 sm:$0xff]   ;;  %v387_v26 = vld [vmem:[%s537_s1 + $0xc0] ss:$8 sps:$4 sm:$0xff]   ;;  %v388_v27 = vld [vmem:[%s537_s1 + $0xb4] ss:$8 sps:$4 sm:$0xff]  }
   0xa   :  { %v390_v28 = vld [vmem:[%s537_s1 + $0xb0] ss:$8 sps:$4 sm:$0xff]   ;;  %v391_v29 = vld [vmem:[%s537_s1 + $0xa4] ss:$8 sps:$4 sm:$0xff]   ;;  %v393_v30 = vld [vmem:[%s537_s1 + $0xa0] ss:$8 sps:$4 sm:$0xff]  }
   0xb   :  { %229 = vmatpush1.bf16.msra.mxu0 %v360_v5  ;;  %v394_v31 = vld [vmem:[%s537_s1 + $0x94] ss:$8 sps:$4 sm:$0xff]   ;;  %v396_v32 = vld [vmem:[%s537_s1 + $0x90] ss:$8 sps:$4 sm:$0xff]   ;;  %v397_v33 = vld [vmem:[%s537_s1 + $0x84] ss:$8 sps:$4 sm:$0xff]  }
   0xc   :  { %230 = vmatprep.subr.bf16.mxu0 %v361_v6  ;;  %v399_v34 = vld [vmem:[%s537_s1 + $0x80] ss:$8 sps:$4 sm:$0xff]   ;;  %v28_v36 = vld [vmem:[%s538_s0 + $0x10] sm:$0xff]  ;;  %v286_v40 = vsub.s32 0, %v285_v39  ;;  %v290_v41 = vsub.s32 1, %v285_v39 }
   0xd   :  { %v26_v35 = vld [vmem:[%s538_s0] sm:$0xff] }
   0xe   :  { %v30_v37 = vpack.c.bf16 %v28_v36, %v26_v35  ;;  %v282_v42 = vld [vmem:[%s539_s2] sm:$0x3] }
   0xf   :  { %231 = vmatpush1.bf16.msra.mxu0 %v363_v7  ;;  %v287_v43 = vrot.slane %v282_v42, %v286_v40  ;;  %v291_v44 = vrot.slane %v282_v42, %v290_v41 }
  0x10   :  { %232 = vmatprep.subr.bf16.mxu0 %v364_v8 }
  0x13   :  { %233 = vmatpush1.bf16.msra.mxu0 %v366_v9 }
  0x14   :  { %234 = vmatprep.subr.bf16.mxu0 %v367_v10 }
  0x17   :  { %235 = vmatpush1.bf16.msra.mxu0 %v369_v11 }
  0x18   :  { %236 = vmatprep.subr.bf16.mxu0 %v370_v12 }
  0x1b   :  { %237 = vmatpush1.bf16.msra.mxu0 %v372_v16 }
  0x1c   :  { %238 = vmatprep.subr.bf16.mxu0 %v373_v17 }
  0x1f   :  { %239 = vmatpush1.bf16.msra.mxu0 %v375_v18 }
  0x20   :  { %240 = vmatprep.subr.bf16.mxu0 %v376_v19 }
  0x23   :  { %241 = vmatpush2.bf16.msra.mxu0 %v378_v20 }
  0x24   :  { %242 = vmatprep.subr.bf16.mxu0 %v379_v21 }
  0x27   :  { %243 = vmatpush2.bf16.msra.mxu0 %v381_v22 }
  0x28   :  { %244 = vmatprep.subr.bf16.mxu0 %v382_v23 }
  0x2b   :  { %245 = vmatpush2.bf16.msra.mxu0 %v384_v24 }
  0x2c   :  { %246 = vmatprep.subr.bf16.mxu0 %v385_v25 }
  0x2f   :  { %247 = vmatpush2.bf16.msra.mxu0 %v387_v26 }
  0x30   :  { %248 = vmatprep.subr.bf16.mxu0 %v388_v27 }
  0x33   :  { %249 = vmatpush2.bf16.msra.mxu0 %v390_v28 }
  0x34   :  { %250 = vmatprep.subr.bf16.mxu0 %v391_v29 }
  0x37   :  { %251 = vmatpush2.bf16.msra.mxu0 %v393_v30 }
  0x38   :  { %252 = vmatprep.subr.bf16.mxu0 %v394_v31 }
  0x3b   :  { %253 = vmatpush2.bf16.msra.mxu0 %v396_v32 }
  0x3c   :  { %254 = vmatprep.subr.bf16.mxu0 %v397_v33 }
  0x3f   :  { %255 = vmatpush2.bf16.msra.mxu0 %v399_v34 }
  0x42   :  { %257 = vmatmul.mubr.bf16.vlgmr.msra.gmra.mxu0 %v30_v37 }
 0x102   :  { %v258_v45 = vpop.f32.mrf.mxu0 }
 0x103   :  { %v294_v47 = vadd.f32 %v287_v43, %v258_v45 }
 0x104   :  { %v260_v46 = vpop.f32.mrf.mxu0 }
 0x105   :  { %v295_v48 = vadd.f32 %v291_v44, %v260_v46 }
 0x106   :  { %v262_v49 = vpop.f32.mrf.mxu0 }
 0x107   :  { %v350_v50 = vpack.c.bf16 %v295_v48, %v294_v47  ;;  %v296_v52 = vadd.f32 %v287_v43, %v262_v49 }
 0x108   :  { %v264_v51 = vpop.f32.mrf.mxu0 }
 0x109   :  { %310 = vst [vmem:[%s540_s3] sm:$0xff] %v350_v50  ;;  %v297_v53 = vadd.f32 %v291_v44, %v264_v51 }
 0x10b   :  { %v351_v54 = vpack.c.bf16 %v297_v53, %v296_v52 }
 0x10d   :  { %311 = vst [vmem:[%s540_s3 + $0x8] sm:$0xff] %v351_v54 }

// kernel: forward.15
= control target key start
LH: loop header
LB: loop body
LE: loop exit
PB: predicated region body
PF: predicated region fallthrough
CT: control target
= control target key end

     0   :  { %s1070_s12 = smov 0   ;;  %s1072_s13 = smov 0   ;;  %s1264_s0 = inlined_call_operand.vmem [shape: f32[16,256], index: 0, kind: input, shape index: {}]   ;;  %s1265_s1 = inlined_call_operand.vmem [shape: bf16[256,768], index: 1, kind: input, shape index: {}]   ;;  %s1266_s2 = inlined_call_operand.vmem [shape: f32[1,768], index: 2, kind: input, shape index: {}]   ;;  %s1267_s3 = inlined_call_operand.vmem [shape: bf16[16,768], index: 3, kind: output, shape index: {}]  }
   0x1   :  { %s1074_s14 = smov 0   ;;  %s1076_s15 = smov 0  }
   0x2   :  { %s1078_s16 = smov 0  }
   0x3 LB: > { %s28_s17 = sadd.s32 1, %s1044_s15  ;;  %s867_s18 = sadd.s32 4294967295, %s1048_s16   ;;  %s1048_s16 = sphi %s1078_s16, %s13_s16   ;;  %s1044_s15 = sphi %s1076_s15, %s1272_s15   ;;  %s1040_s14 = sphi %s1074_s14, %s1271_s14   ;;  %s1036_s13 = sphi %s1072_s13, %s1270_s13   ;;  %s1032_s12 = sphi %s1070_s12, %s1269_s12  }
   0x4   : > { %p30_p0 = scmp.ge.s32.totalorder %s28_s17, 3  ;;  %p76_p1 = scmp.ne.s32.totalorder %s1036_s13, %s1032_s12 }
   0x5   : > { %p77_p2 = scmp.eq.s32.totalorder %s1048_s16, 0  ;;  %p134_p4 = scmp.eq.s32.totalorder %s867_s18, 2 }
   0x6   : > { %s1274_s17 = smov (%p30_p0, %s28_s17), 0  ;;  %s69_s20 = sadd.s32 1, %s1036_s13 }
   0x7   : > { %p78_p3 = por %p77_p2, %p76_p1  ;;  %s65_s19 = ssub.s32 %s1044_s15, %s1274_s17 }
   0x8   : > { %p67_p5 = scmp.eq.s32.totalorder %s65_s19, 0  ;;  %p1105_p6 = por %p134_p4, %p76_p1 }
   0x9   : > { %p871_p7 = scmp.ge.s32.totalorder %s1048_s16, 3 }
   0xa   : > { %s1110_s22 = scalar_select %p67_p5, %s1036_s13, %s69_s20  }
   0xb   : > { %171 = sbr.rel (%p871_p7) target bundleno = 36 (0x24), region = 20 }
  0x10   : > { %174 = sbr.rel (!%p78_p3) target bundleno = 36 (0x24), region = 24  ;;  %s176_s23 = sand.u32 (%p78_p3), 1, %s1036_s13  }
  0x11   : > { %s918_s24 = sshll.u32 (%p78_p3), %s1044_s15, 3  ;;  %s872_s25 = sshll.u32 (%p78_p3), %s176_s23, 8 }
  0x12   : > { %s1118_s28 = scalar_lea.vmem (%p78_p3), %s1265_s1, %s918_s24  ;;  %s1123_s29 = scalar_lea.vmem (%p78_p3), [#allocation3], %s872_s25 }
  0x13   : > { %v275_v0 = vld [vmem:[%s1118_s28] sm:$0xff] (%p78_p3)  ;;  %v277_v1 = vld [vmem:[%s1118_s28 + $0x18] sm:$0xff] (%p78_p3)  ;;  %v279_v2 = vld [vmem:[%s1118_s28 + $0x30] sm:$0xff] (%p78_p3) }
  0x14   : > { %276 = vst [vmem:[%s1123_s29] sm:$0xff] (%p78_p3), %v275_v0  ;;  %278 = vst [vmem:[%s1123_s29 + $0x8] sm:$0xff] (%p78_p3), %v277_v1  ;;  %v281_v3 = vld [vmem:[%s1118_s28 + $0x48] sm:$0xff] (%p78_p3)  ;;  %v283_v4 = vld [vmem:[%s1118_s28 + $0x60] sm:$0xff] (%p78_p3) }
  0x15   : > { %280 = vst [vmem:[%s1123_s29 + $0x10] sm:$0xff] %v279_v2  ;;  %v285_v5 = vld [vmem:[%s1118_s28 + $0x78] sm:$0xff]  ;;  %282 = vst [vmem:[%s1123_s29 + $0x18] sm:$0xff] %v281_v3  ;;  %v287_v6 = vld [vmem:[%s1118_s28 + $0x90] sm:$0xff] }
  0x16   : > { %284 = vst [vmem:[%s1123_s29 + $0x20] sm:$0xff] %v283_v4  ;;  %286 = vst [vmem:[%s1123_s29 + $0x28] sm:$0xff] %v285_v5  ;;  %v289_v7 = vld [vmem:[%s1118_s28 + $0xa8] sm:$0xff]  ;;  %v291_v8 = vld [vmem:[%s1118_s28 + $0xc0] sm:$0xff] }
  0x17   : > { %288 = vst [vmem:[%s1123_s29 + $0x30] sm:$0xff] %v287_v6  ;;  %290 = vst [vmem:[%s1123_s29 + $0x38] sm:$0xff] %v289_v7  ;;  %v293_v9 = vld [vmem:[%s1118_s28 + $0xd8] sm:$0xff]  ;;  %v295_v10 = vld [vmem:[%s1118_s28 + $0xf0] sm:$0xff] }
  0x18   : > { %292 = vst [vmem:[%s1123_s29 + $0x40] sm:$0xff] %v291_v8  ;;  %v297_v11 = vld [vmem:[%s1118_s28 + $0x108] sm:$0xff]  ;;  %294 = vst [vmem:[%s1123_s29 + $0x48] sm:$0xff] %v293_v9  ;;  %v299_v12 = vld [vmem:[%s1118_s28 + $0x120] sm:$0xff] }
  0x19   : > { %296 = vst [vmem:[%s1123_s29 + $0x50] sm:$0xff] %v295_v10  ;;  %298 = vst [vmem:[%s1123_s29 + $0x58] sm:$0xff] %v297_v11  ;;  %v301_v13 = vld [vmem:[%s1118_s28 + $0x138] sm:$0xff]  ;;  %v303_v14 = vld [vmem:[%s1118_s28 + $0x150] sm:$0xff] }
  0x1a   : > { %300 = vst [vmem:[%s1123_s29 + $0x60] sm:$0xff] %v299_v12  ;;  %302 = vst [vmem:[%s1123_s29 + $0x68] sm:$0xff] %v301_v13  ;;  %v305_v15 = vld [vmem:[%s1118_s28 + $0x168] sm:$0xff]  ;;  %v307_v16 = vld [vmem:[%s1118_s28 + $0x180] sm:$0xff] }
  0x1b   : > { %304 = vst [vmem:[%s1123_s29 + $0x70] sm:$0xff] %v303_v14  ;;  %v309_v17 = vld [vmem:[%s1118_s28 + $0x198] sm:$0xff]  ;;  %306 = vst [vmem:[%s1123_s29 + $0x78] sm:$0xff] %v305_v15  ;;  %v311_v18 = vld [vmem:[%s1118_s28 + $0x1b0] sm:$0xff] }
  0x1c   : > { %308 = vst [vmem:[%s1123_s29 + $0x80] sm:$0xff] %v307_v16  ;;  %310 = vst [vmem:[%s1123_s29 + $0x88] sm:$0xff] %v309_v17  ;;  %v313_v19 = vld [vmem:[%s1118_s28 + $0x1c8] sm:$0xff]  ;;  %v315_v20 = vld [vmem:[%s1118_s28 + $0x1e0] sm:$0xff] }
  0x1d   : > { %312 = vst [vmem:[%s1123_s29 + $0x90] sm:$0xff] %v311_v18  ;;  %314 = vst [vmem:[%s1123_s29 + $0x98] sm:$0xff] %v313_v19  ;;  %v317_v21 = vld [vmem:[%s1118_s28 + $0x1f8] sm:$0xff]  ;;  %v319_v22 = vld [vmem:[%s1118_s28 + $0x210] sm:$0xff] }
  0x1e   : > { %316 = vst [vmem:[%s1123_s29 + $0xa0] sm:$0xff] %v315_v20  ;;  %v321_v23 = vld [vmem:[%s1118_s28 + $0x228] sm:$0xff]  ;;  %318 = vst [vmem:[%s1123_s29 + $0xa8] sm:$0xff] %v317_v21  ;;  %v323_v24 = vld [vmem:[%s1118_s28 + $0x240] sm:$0xff] }
  0x1f   : > { %320 = vst [vmem:[%s1123_s29 + $0xb0] sm:$0xff] %v319_v22  ;;  %322 = vst [vmem:[%s1123_s29 + $0xb8] sm:$0xff] %v321_v23  ;;  %v325_v25 = vld [vmem:[%s1118_s28 + $0x258] sm:$0xff]  ;;  %v327_v26 = vld [vmem:[%s1118_s28 + $0x270] sm:$0xff] }
  0x20   : > { %324 = vst [vmem:[%s1123_s29 + $0xc0] sm:$0xff] %v323_v24  ;;  %326 = vst [vmem:[%s1123_s29 + $0xc8] sm:$0xff] %v325_v25  ;;  %v329_v27 = vld [vmem:[%s1118_s28 + $0x288] sm:$0xff]  ;;  %v331_v28 = vld [vmem:[%s1118_s28 + $0x2a0] sm:$0xff] }
  0x21   : > { %328 = vst [vmem:[%s1123_s29 + $0xd0] sm:$0xff] %v327_v26  ;;  %v333_v29 = vld [vmem:[%s1118_s28 + $0x2b8] sm:$0xff]  ;;  %330 = vst [vmem:[%s1123_s29 + $0xd8] sm:$0xff] %v329_v27  ;;  %v335_v30 = vld [vmem:[%s1118_s28 + $0x2d0] sm:$0xff] }
  0x22   : > { %332 = vst [vmem:[%s1123_s29 + $0xe0] sm:$0xff] %v331_v28  ;;  %334 = vst [vmem:[%s1123_s29 + $0xe8] sm:$0xff] %v333_v29  ;;  %v337_v31 = vld [vmem:[%s1118_s28 + $0x2e8] sm:$0xff] }
  0x23   : > { %336 = vst [vmem:[%s1123_s29 + $0xf0] sm:$0xff] %v335_v30  ;;  %338 = vst [vmem:[%s1123_s29 + $0xf8] sm:$0xff] %v337_v31 }
  0x24 PF: > { %p875_p8 = scmp.ge.s32.totalorder %s1048_s16, 1  ;;  %p351_p9 = scmp.lt.s32.totalorder %s1048_s16, 4 }
  0x26   : > { %p352_p10 = pnand %p875_p8, %p351_p9 }
  0x27   : > { %s358_s30 = sand.u32 (!%p352_p10), 1, %s1032_s12   ;;  %s878_s20 = sshll.u32 (!%p352_p10), %s1040_s14, 1 }
  0x28   : > { %355 = sbr.rel (%p352_p10) target bundleno = 323 (0x143), region = 66  ;;  %s876_s8 = sshll.u32 (!%p352_p10), %s358_s30, 8 }
  0x29   : > { %s1197_s9 = scalar_lea.vmem (!%p352_p10), [#allocation3], %s876_s8  ;;  %p409_p11 = scmp.lt.s32.totalorder (!%p352_p10), %s878_s20, 5 }
  0x2a   : > { %s877_s26 = sshll.u32 (!%p352_p10), %s358_s30, 4 }
  0x2b   : > { %s393_s27 = scalar_lea.vmem (!%p352_p10), [#allocation4], %s877_s26 }
  0x2d   : > { %v428_v32 = vld [vmem:[%s1264_s0 + $0x8] sm:$0xff]  ;;  %v430_v33 = vld [vmem:[%s1264_s0 + $0x18] sm:$0xff]  ;;  %v427_v3 = vld [vmem:[%s1264_s0] sm:$0xff]  ;;  %v685_v6 = vlaneseq  ;;  %s1276_s20 = smov (!%p409_p11, %s878_s20), 5  ;;  %s921_s28 = sshll.u32 (%p1105_p6), %s1040_s14, 3 }
  0x2e   : > { %v432_v34 = vpack.c.bf16 %v430_v33, %v428_v32  ;;  %v962_v35 = vld [vmem:[%s1197_s9 + $0x74] ss:$8 sps:$4 sm:$0xff]   ;;  %v964_v36 = vld [vmem:[%s1197_s9 + $0x70] ss:$8 sps:$4 sm:$0xff]   ;;  %v965_v37 = vld [vmem:[%s1197_s9 + $0x64] ss:$8 sps:$4 sm:$0xff]   ;;  %s411_s25 = scalar_lea.vmem %s1266_s2, %s1276_s20  ;;  %s725_s30 = scalar_lea.vmem (%p1105_p6), %s1267_s3, %s921_s28 }
  0x2f   : > { %625 = vmatprep.subr.bf16.mxu0 %v962_v35  ;;  %v967_v38 = vld [vmem:[%s1197_s9 + $0x60] ss:$8 sps:$4 sm:$0xff]   ;;  %v968_v39 = vld [vmem:[%s1197_s9 + $0x54] ss:$8 sps:$4 sm:$0xff]   ;;  %v970_v40 = vld [vmem:[%s1197_s9 + $0x50] ss:$8 sps:$4 sm:$0xff]  }
  0x30   : > { %657 = vmatprep.mubr.bf16.mxu0 %v432_v34  ;;  %626 = vmatpush1.bf16.msra.mxu0 %v964_v36  ;;  %v971_v41 = vld [vmem:[%s1197_s9 + $0x44] ss:$8 sps:$4 sm:$0xff]   ;;  %v973_v42 = vld [vmem:[%s1197_s9 + $0x40] ss:$8 sps:$4 sm:$0xff]   ;;  %v974_v43 = vld [vmem:[%s1197_s9 + $0x34] ss:$8 sps:$4 sm:$0xff]  }
  0x31   : > { %627 = vmatprep.subr.bf16.mxu0 %v965_v37  ;;  %v976_v44 = vld [vmem:[%s1197_s9 + $0x30] ss:$8 sps:$4 sm:$0xff]   ;;  %v977_v45 = vld [vmem:[%s1197_s9 + $0x24] ss:$8 sps:$4 sm:$0xff]   ;;  %v979_v46 = vld [vmem:[%s1197_s9 + $0x20] ss:$8 sps:$4 sm:$0xff]  }
  0x32   : > { %v980_v47 = vld [vmem:[%s1197_s9 + $0x14] ss:$8 sps:$4 sm:$0xff]   ;;  %v982_v48 = vld [vmem:[%s1197_s9 + $0x10] ss:$8 sps:$4 sm:$0xff]   ;;  %v983_v49 = vld [vmem:[%s1197_s9 + $0x4] ss:$8 sps:$4 sm:$0xff]  }
  0x33   : > { %v985_v50 = vld [vmem:[%s1197_s9] ss:$8 sps:$4 sm:$0xff]   ;;  %v986_v51 = vld [vmem:[%s1197_s9 + $0xf4] ss:$8 sps:$4 sm:$0xff]   ;;  %v988_v52 = vld [vmem:[%s1197_s9 + $0xf0] ss:$8 sps:$4 sm:$0xff]  }
  0x34   : > { %628 = vmatpush1.bf16.msra.mxu0 %v967_v38  ;;  %v989_v53 = vld [vmem:[%s1197_s9 + $0xe4] ss:$8 sps:$4 sm:$0xff]   ;;  %v991_v54 = vld [vmem:[%s1197_s9 + $0xe0] ss:$8 sps:$4 sm:$0xff]   ;;  %v992_v55 = vld [vmem:[%s1197_s9 + $0xd4] ss:$8 sps:$4 sm:$0xff]  }
  0x35   : > { %629 = vmatprep.subr.bf16.mxu0 %v968_v39  ;;  %v994_v56 = vld [vmem:[%s1197_s9 + $0xd0] ss:$8 sps:$4 sm:$0xff]   ;;  %v995_v57 = vld [vmem:[%s1197_s9 + $0xc4] ss:$8 sps:$4 sm:$0xff]   ;;  %v997_v58 = vld [vmem:[%s1197_s9 + $0xc0] ss:$8 sps:$4 sm:$0xff]  }
  0x36   : > { %v998_v59 = vld [vmem:[%s1197_s9 + $0xb4] ss:$8 sps:$4 sm:$0xff]   ;;  %v1000_v60 = vld [vmem:[%s1197_s9 + $0xb0] ss:$8 sps:$4 sm:$0xff]   ;;  %v1001_v61 = vld [vmem:[%s1197_s9 + $0xa4] ss:$8 sps:$4 sm:$0xff]  }
  0x37   : > { %v1003_v62 = vld [vmem:[%s1197_s9 + $0xa0] ss:$8 sps:$4 sm:$0xff]   ;;  %v1004_v63 = vld [vmem:[%s1197_s9 + $0x94] ss:$8 sps:$4 sm:$0xff]   ;;  %v1006_v0 = vld [vmem:[%s1197_s9 + $0x90] ss:$8 sps:$4 sm:$0xff]  }
  0x38   : > { %630 = vmatpush1.bf16.msra.mxu0 %v970_v40  ;;  %v1007_v1 = vld [vmem:[%s1197_s9 + $0x84] ss:$8 sps:$4 sm:$0xff]   ;;  %v1009_v2 = vld [vmem:[%s1197_s9 + $0x80] ss:$8 sps:$4 sm:$0xff]   ;;  %v429_v4 = vld [vmem:[%s1264_s0 + $0x10] sm:$0xff]  ;;  %v686_v7 = vshrl.u32 %v685_v6, 7 }
  0x39   : > { %631 = vmatprep.subr.bf16.mxu0 %v971_v41  ;;  %v431_v5 = vpack.c.bf16 %v429_v4, %v427_v3  ;;  %v683_v10 = vld [vmem:[%s411_s25] sm:$0x3] }
  0x3a   : > { %v687_v8 = vsub.s32 0, %v686_v7  ;;  %v691_v9 = vsub.s32 1, %v686_v7 }
  0x3c   : > { %632 = vmatpush1.bf16.msra.mxu0 %v973_v42  ;;  %v688_v11 = vrot.slane %v683_v10, %v687_v8  ;;  %v692_v12 = vrot.slane %v683_v10, %v691_v9 }
  0x3d   : > { %633 = vmatprep.subr.bf16.mxu0 %v974_v43 }
  0x40   : > { %634 = vmatpush1.bf16.msra.mxu0 %v976_v44 }
  0x41   : > { %635 = vmatprep.subr.bf16.mxu0 %v977_v45 }
  0x44   : > { %636 = vmatpush1.bf16.msra.mxu0 %v979_v46 }
  0x45   : > { %637 = vmatprep.subr.bf16.mxu0 %v980_v47 }
  0x48   : > { %638 = vmatpush1.bf16.msra.mxu0 %v982_v48 }
  0x49   : > { %639 = vmatprep.subr.bf16.mxu0 %v983_v49 }
  0x4c   : > { %640 = vmatpush1.bf16.msra.mxu0 %v985_v50 }
  0x4d   : > { %641 = vmatprep.subr.bf16.mxu0 %v986_v51 }
  0x50   : > { %642 = vmatpush2.bf16.msra.mxu0 %v988_v52 }
  0x51   : > { %643 = vmatprep.subr.bf16.mxu0 %v989_v53 }
  0x54   : > { %644 = vmatpush2.bf16.msra.mxu0 %v991_v54 }
  0x55   : > { %645 = vmatprep.subr.bf16.mxu0 %v992_v55 }
  0x58   : > { %646 = vmatpush2.bf16.msra.mxu0 %v994_v56 }
  0x59   : > { %647 = vmatprep.subr.bf16.mxu0 %v995_v57 }
  0x5c   : > { %648 = vmatpush2.bf16.msra.mxu0 %v997_v58 }
  0x5d   : > { %649 = vmatprep.subr.bf16.mxu0 %v998_v59 }
  0x60   : > { %650 = vmatpush2.bf16.msra.mxu0 %v1000_v60 }
  0x61   : > { %651 = vmatprep.subr.bf16.mxu0 %v1001_v61 }
  0x64   : > { %652 = vmatpush2.bf16.msra.mxu0 %v1003_v62 }
  0x65   : > { %653 = vmatprep.subr.bf16.mxu0 %v1004_v63 }
  0x68   : > { %654 = vmatpush2.bf16.msra.mxu0 %v1006_v0 }
  0x69   : > { %655 = vmatprep.subr.bf16.mxu0 %v1007_v1 }
  0x6c   : > { %656 = vmatpush2.bf16.msra.mxu0 %v1009_v2 }
  0x6f   : > { %658 = vmatmul.mubr.bf16.vlgmr.msra.gmra.mxu0 %v431_v5 }
 0x12f   : > { %v659_v13 = vpop.f32.mrf.mxu0 }
 0x130   : > { %v695_v15 = vadd.f32 %v688_v11, %v659_v13 }
 0x131   : > { %v661_v14 = vpop.f32.mrf.mxu0 }
 0x132   : > { %v696_v16 = vadd.f32 %v692_v12, %v661_v14 }
 0x133   : > { %v663_v17 = vpop.f32.mrf.mxu0 }
 0x134   : > { %v919_v18 = vpack.c.bf16 %v696_v16, %v695_v15  ;;  %v697_v20 = vadd.f32 %v688_v11, %v663_v17 }
 0x135   : > { %v665_v19 = vpop.f32.mrf.mxu0 }
 0x136   : > { %711 = vst [vmem:[%s393_s27] sm:$0xff] %v919_v18  ;;  %v698_v21 = vadd.f32 %v692_v12, %v665_v19  ;;  %719 = sbr.rel (!%p1105_p6) target bundleno = 323 (0x143), region = 82 }
 0x138   : > { %v920_v22 = vpack.c.bf16 %v698_v21, %v697_v20 }
 0x13a   : > { %712 = vst [vmem:[%s393_s27 + $0x8] sm:$0xff] %v920_v22 }
 0x13d   : > { %v756_v23 = vld [vmem:[%s393_s27] sm:$0xff] }
 0x13e   : > { %757 = vst [vmem:[%s725_s30] sm:$0xff] %v756_v23 }
 0x141   : > { %v758_v24 = vld [vmem:[%s393_s27 + $0x8] sm:$0xff] }
 0x142   : > { %759 = vst [vmem:[%s725_s30 + $0x18] sm:$0xff] %v758_v24 }
 0x143 PF: > { %s13_s16 = sadd.s32 1, %s1048_s16   ;;  %s1269_s12 = smov %s1036_s13 }
 0x144   : > { %p10_p12 = scmp.ge.s32.totalorder %s13_s16, 5   ;;  %s1270_s13 = smov %s1110_s22 }
 0x145   : > { %s1271_s14 = smov %s1044_s15  ;;  %s1272_s15 = smov %s1274_s17 }
 0x146   :  { %12 = sbr.rel (!%p10_p12) target bundleno = 3 (0x3), region = 157 }

// kernel: forward.14
= control target key start
LH: loop header
LB: loop body
LE: loop exit
PB: predicated region body
PF: predicated region fallthrough
CT: control target
= control target key end

     0   :  { %8 = vsyncpa [#allocation5], 0  ;;  %s1138_s0 = inlined_call_operand.vmem [shape: f32[16,1280], index: 0, kind: input, shape index: {}]   ;;  %s1139_s1 = inlined_call_operand.hbm [shape: bf16[1280,256], index: 1, kind: input, shape index: {}]   ;;  %s1140_s2 = inlined_call_operand.vmem [shape: f32[1,256], index: 2, kind: input, shape index: {}]   ;;  %s1141_s3 = inlined_call_operand.vmem [shape: bf16[16,256], index: 3, kind: output, shape index: {}]  }
   0x1   :  { %10 = vsyncpa [#allocation5 + $0x1], 0  ;;  %s995_s12 = smov 0   ;;  %s997_s13 = smov 0  }
   0x2   :  { %s999_s14 = smov 0   ;;  %s1001_s15 = smov 0  }
   0x3   :  { %s1003_s16 = smov 0   ;;  %s1005_s17 = smov 0  }
   0x4 LB: > { %s733_s18 = sadd.s32 4294967295, %s969_s17   ;;  %s28_s19 = sadd.s32 1, %s965_s16  ;;  %s969_s17 = sphi %s1005_s17, %s16_s17   ;;  %s965_s16 = sphi %s1003_s16, %s1148_s16   ;;  %s961_s15 = sphi %s1001_s15, %s1147_s15   ;;  %s957_s14 = sphi %s999_s14, %s1146_s14   ;;  %s953_s13 = sphi %s997_s13, %s1145_s13   ;;  %s949_s12 = sphi %s995_s12, %s1144_s12  }
   0x5   : > { %p29_p0 = scmp.ge.s32.totalorder %s28_s19, 5  ;;  %s44_s20 = sadd.s32 1, %s957_s14 }
   0x6   : > { %p51_p1 = scmp.ne.s32.totalorder %s957_s14, %s953_s13  ;;  %p52_p2 = scmp.eq.s32.totalorder %s969_s17, 0 }
   0x7   : > { %s1150_s19 = smov (%p29_p0, %s28_s19), 0  ;;  %p85_p4 = scmp.ne.s32.totalorder %s953_s13, %s949_s12 }
   0x8   : > { %p1031_p3 = por %p52_p2, %p51_p1  ;;  %s40_s22 = ssub.s32 %s965_s16, %s1150_s19 }
   0x9   : > { %p86_p5 = scmp.eq.s32.totalorder %s733_s18, 0  ;;  %p42_p6 = scmp.eq.s32.totalorder %s40_s22, 0 }
   0xa   : > { %p736_p8 = scmp.ge.s32.totalorder %s969_s17, 5 }
   0xb   : > { %p1038_p7 = por %p86_p5, %p85_p4 }
   0xc   : > { %s1043_s24 = scalar_select %p42_p6, %s957_s14, %s44_s20  }
   0xd   : > { %167 = sbr.rel (%p736_p8) target bundleno = 40 (0x28), region = 20 }
  0x12   : > { %170 = sbr.rel (!%p1031_p3) target bundleno = 24 (0x18), region = 24  ;;  %s172_s25 = sand.u32 (%p1031_p3), 1, %s957_s14  }
  0x13   : > { %s787_s26 = sshll.u32 (%p1031_p3), %s965_s16, 4  ;;  %s737_s27 = sshll.u32 (%p1031_p3), %s172_s25, 5 }
  0x14   : > { %s180_s30 = scalar_lea.vmem (%p1031_p3), %s1138_s0, %s787_s26  ;;  %s174_s4 = scalar_lea.vmem (%p1031_p3), [#allocation3], %s737_s27 }
  0x15   : > { %v193_v0 = vld [vmem:[%s180_s30] sm:$0xff] (%p1031_p3)  ;;  %v195_v1 = vld [vmem:[%s180_s30 + $0x8] sm:$0xff] (%p1031_p3)  ;;  %v197_v2 = vld [vmem:[%s180_s30 + $0x50] sm:$0xff] (%p1031_p3) }
  0x16   : > { %194 = vst [vmem:[%s174_s4] sm:$0xff] (%p1031_p3), %v193_v0  ;;  %196 = vst [vmem:[%s174_s4 + $0x8] sm:$0xff] (%p1031_p3), %v195_v1  ;;  %v199_v3 = vld [vmem:[%s180_s30 + $0x58] sm:$0xff] (%p1031_p3) }
  0x17   : > { %198 = vst [vmem:[%s174_s4 + $0x10] sm:$0xff] %v197_v2  ;;  %200 = vst [vmem:[%s174_s4 + $0x18] sm:$0xff] %v199_v3 }
  0x18 PF: > { %s207_s5 = sand.u32 1, %s957_s14   ;;  %s789_s6 = sshll.u32 %s965_s16, 12 }
  0x19   : > { %s740_s7 = sshll.u32 %s207_s5, 8  ;;  %s220_s10 = scalar_lea.hbm %s1139_s1, %s789_s6 }
  0x1a   : > { %s211_s11 = scalar_lea.vmem [#allocation4], %s740_s7  ;;  %s208_s18 = scalar_lea.sflag [#allocation5], %s207_s5 }
  0x1b   : > { %s221_s12 = sshll.u32 %s211_s11, 4  ;;  %s971_s22 = smov [#allocation4]   ;;  %s222_s12 = int_to_ptr.vmem [resolvable:$true] %s221_s12 }
  0x1c   : > { %s905_s20 = scalar_lea.vmem %s222_s12, 4096  ;;  %s909_s25 = sshll.u32 %s971_s22, 4  ;;  %s910_s25 = int_to_ptr.vmem [resolvable:$false] %s909_s25 }
  0x1d   : > { %p906_p9 = scmp.ne.s32.totalorder %s222_s12, %s905_s20  ;;  %s911_s26 = scalar_lea.vmem %s910_s25, 8192 }
  0x1e   : > { %p912_p12 = scmp.lt.s32.totalorder %s222_s12, %s910_s25  ;;  %p913_p13 = scmp.lt.s32.totalorder %s911_s26, %s905_s20 }
  0x1f   : > { %p907_p10 = pnand %p906_p9, %p1031_p3 }
  0x20   : > { %p914_p0 = por %p913_p13, %p912_p12 }
  0x21   : > { %p908_p11 = pneg %p907_p10 }
  0x23   : > { %p915_p1 = pnand %p914_p0, %p908_p11 }
  0x25   : > { %918 = shalt.err (!%p915_p1)
}
  0x26   : > { %s972_s27 = smov 128   ;;  %s973_s28 = smov 8  }
  0x27   : > { %792 = dma.hbm_to_vmem [thread:$0]  (%p1031_p3), %s220_s10, 4096, %s222_s12, %s208_s18, %s972_s27, %s972_s27, %s973_s28  }
  0x28 PF: > { %p744_p2 = scmp.ge.s32.totalorder %s969_s17, 1  ;;  %p229_p4 = scmp.lt.s32.totalorder %s969_s17, 6 }
  0x2a   : > { %p230_p5 = pnand %p744_p2, %p229_p4 }
  0x2b   : > { %s236_s29 = sand.u32 (!%p230_p5), 1, %s953_s13  }
  0x2c   : > { %233 = sbr.rel (%p230_p5) target bundleno = 340 (0x154), region = 51  ;;  %s745_s30 = sshll.u32 (!%p230_p5), %s236_s29, 5 }
  0x2d   : > { %s746_s4 = sshll.u32 (!%p230_p5), %s236_s29, 8  ;;  %s1065_s5 = scalar_lea.vmem (!%p230_p5), [#allocation3], %s745_s30 }
  0x2e   : > { %s243_s6 = scalar_lea.sflag (!%p230_p5), [#allocation5], %s236_s29  ;;  %s1067_s7 = scalar_lea.vmem (!%p230_p5), [#allocation4], %s746_s4 }
  0x31   : > { %944 = dma.done.wait (%p1038_p7), %s243_s6, 4096  }
  0x32   : > { %946 = vsyncadd (%p1038_p7), %s243_s6, 4294963200  ;;  %p747_p3 = scmp.ne.s32.totalorder %s961_s15, 0 }
  0x34   : > { %306 = sbr.rel (%p747_p3) target bundleno = 60 (0x3c), region = 63 }
  0x39   : > { %v974_v4 = vmov 0.0  }
  0x3a   : > { %307 = vst [vmem:[#allocation2 + $0x10] sm:$0xff] %v974_v4  ;;  %308 = vst [vmem:[#allocation2] sm:$0xff] %v974_v4 }
  0x3b   : > { %309 = vst [vmem:[#allocation2 + $0x18] sm:$0xff] %v974_v4  ;;  %310 = vst [vmem:[#allocation2 + $0x8] sm:$0xff] %v974_v4 }
  0x3c PF: > { %v845_v5 = vld [vmem:[%s1067_s7 + $0x74] ss:$8 sps:$4 sm:$0xff]   ;;  %v847_v6 = vld [vmem:[%s1067_s7 + $0x70] ss:$8 sps:$4 sm:$0xff]   ;;  %v848_v7 = vld [vmem:[%s1067_s7 + $0x64] ss:$8 sps:$4 sm:$0xff]  }
  0x3d   : > { %513 = vmatprep.subr.bf16.mxu0 %v845_v5  ;;  %v850_v8 = vld [vmem:[%s1067_s7 + $0x60] ss:$8 sps:$4 sm:$0xff]   ;;  %v851_v9 = vld [vmem:[%s1067_s7 + $0x54] ss:$8 sps:$4 sm:$0xff]   ;;  %v853_v10 = vld [vmem:[%s1067_s7 + $0x50] ss:$8 sps:$4 sm:$0xff]  }
  0x3e   : > { %514 = vmatpush1.bf16.msra.mxu0 %v847_v6  ;;  %v854_v11 = vld [vmem:[%s1067_s7 + $0x44] ss:$8 sps:$4 sm:$0xff]   ;;  %v856_v12 = vld [vmem:[%s1067_s7 + $0x40] ss:$8 sps:$4 sm:$0xff]   ;;  %v857_v13 = vld [vmem:[%s1067_s7 + $0x34] ss:$8 sps:$4 sm:$0xff]  }
  0x3f   : > { %515 = vmatprep.subr.bf16.mxu0 %v848_v7  ;;  %v859_v14 = vld [vmem:[%s1067_s7 + $0x30] ss:$8 sps:$4 sm:$0xff]   ;;  %v860_v15 = vld [vmem:[%s1067_s7 + $0x24] ss:$8 sps:$4 sm:$0xff]   ;;  %v862_v16 = vld [vmem:[%s1067_s7 + $0x20] ss:$8 sps:$4 sm:$0xff]  }
  0x40   : > { %v863_v17 = vld [vmem:[%s1067_s7 + $0x14] ss:$8 sps:$4 sm:$0xff]   ;;  %v316_v18 = vld [vmem:[%s1065_s5 + $0x8] sm:$0xff]  ;;  %v865_v21 = vld [vmem:[%s1067_s7 + $0x10] ss:$8 sps:$4 sm:$0xff]   ;;  %p780_p6 = scmp.ne.s32.totalorder %s961_s15, 4 }
  0x41   : > { %v318_v19 = vld [vmem:[%s1065_s5 + $0x18] sm:$0xff]  ;;  %v866_v22 = vld [vmem:[%s1067_s7 + $0x4] ss:$8 sps:$4 sm:$0xff]   ;;  %v868_v23 = vld [vmem:[%s1067_s7] ss:$8 sps:$4 sm:$0xff]  }
  0x42   : > { %516 = vmatpush1.bf16.msra.mxu0 %v850_v8  ;;  %v320_v20 = vpack.c.bf16 %v318_v19, %v316_v18  ;;  %v869_v24 = vld [vmem:[%s1067_s7 + $0xf4] ss:$8 sps:$4 sm:$0xff]   ;;  %v871_v25 = vld [vmem:[%s1067_s7 + $0xf0] ss:$8 sps:$4 sm:$0xff]   ;;  %v872_v26 = vld [vmem:[%s1067_s7 + $0xe4] ss:$8 sps:$4 sm:$0xff]  }
  0x43   : > { %517 = vmatprep.subr.bf16.mxu0 %v851_v9  ;;  %v874_v27 = vld [vmem:[%s1067_s7 + $0xe0] ss:$8 sps:$4 sm:$0xff]   ;;  %v875_v28 = vld [vmem:[%s1067_s7 + $0xd4] ss:$8 sps:$4 sm:$0xff]   ;;  %v877_v29 = vld [vmem:[%s1067_s7 + $0xd0] ss:$8 sps:$4 sm:$0xff]  }
  0x44   : > { %545 = vmatprep.mubr.bf16.mxu0 %v320_v20  ;;  %v878_v30 = vld [vmem:[%s1067_s7 + $0xc4] ss:$8 sps:$4 sm:$0xff]   ;;  %v880_v31 = vld [vmem:[%s1067_s7 + $0xc0] ss:$8 sps:$4 sm:$0xff]   ;;  %v881_v32 = vld [vmem:[%s1067_s7 + $0xb4] ss:$8 sps:$4 sm:$0xff]  }
  0x45   : > { %v883_v33 = vld [vmem:[%s1067_s7 + $0xb0] ss:$8 sps:$4 sm:$0xff]   ;;  %v884_v34 = vld [vmem:[%s1067_s7 + $0xa4] ss:$8 sps:$4 sm:$0xff]   ;;  %v886_v35 = vld [vmem:[%s1067_s7 + $0xa0] ss:$8 sps:$4 sm:$0xff]  }
  0x46   : > { %518 = vmatpush1.bf16.msra.mxu0 %v853_v10  ;;  %v887_v36 = vld [vmem:[%s1067_s7 + $0x94] ss:$8 sps:$4 sm:$0xff]   ;;  %v889_v37 = vld [vmem:[%s1067_s7 + $0x90] ss:$8 sps:$4 sm:$0xff]   ;;  %v890_v38 = vld [vmem:[%s1067_s7 + $0x84] ss:$8 sps:$4 sm:$0xff]  }
  0x47   : > { %519 = vmatprep.subr.bf16.mxu0 %v854_v11  ;;  %v892_v39 = vld [vmem:[%s1067_s7 + $0x80] ss:$8 sps:$4 sm:$0xff]   ;;  %v317_v41 = vld [vmem:[%s1065_s5 + $0x10] sm:$0xff]  ;;  %v313_v48 = vld [vmem:[#allocation2 + $0x18] sm:$0xff] }
  0x48   : > { %v315_v40 = vld [vmem:[%s1065_s5] sm:$0xff]  ;;  %v311_v43 = vld [vmem:[#allocation2 + $0x10] sm:$0xff]  ;;  %v314_v51 = vld [vmem:[#allocation2 + $0x8] sm:$0xff] }
  0x49   : > { %v319_v42 = vpack.c.bf16 %v317_v41, %v315_v40  ;;  %v312_v45 = vld [vmem:[#allocation2] sm:$0xff] }
  0x4a   : > { %520 = vmatpush1.bf16.msra.mxu0 %v856_v12 }
  0x4b   : > { %521 = vmatprep.subr.bf16.mxu0 %v857_v13 }
  0x4e   : > { %522 = vmatpush1.bf16.msra.mxu0 %v859_v14 }
  0x4f   : > { %523 = vmatprep.subr.bf16.mxu0 %v860_v15 }
  0x52   : > { %524 = vmatpush1.bf16.msra.mxu0 %v862_v16 }
  0x53   : > { %525 = vmatprep.subr.bf16.mxu0 %v863_v17 }
  0x56   : > { %526 = vmatpush1.bf16.msra.mxu0 %v865_v21 }
  0x57   : > { %527 = vmatprep.subr.bf16.mxu0 %v866_v22 }
  0x5a   : > { %528 = vmatpush1.bf16.msra.mxu0 %v868_v23 }
  0x5b   : > { %529 = vmatprep.subr.bf16.mxu0 %v869_v24 }
  0x5e   : > { %530 = vmatpush2.bf16.msra.mxu0 %v871_v25 }
  0x5f   : > { %531 = vmatprep.subr.bf16.mxu0 %v872_v26 }
  0x62   : > { %532 = vmatpush2.bf16.msra.mxu0 %v874_v27 }
  0x63   : > { %533 = vmatprep.subr.bf16.mxu0 %v875_v28 }
  0x66   : > { %534 = vmatpush2.bf16.msra.mxu0 %v877_v29 }
  0x67   : > { %535 = vmatprep.subr.bf16.mxu0 %v878_v30 }
  0x6a   : > { %536 = vmatpush2.bf16.msra.mxu0 %v880_v31 }
  0x6b   : > { %537 = vmatprep.subr.bf16.mxu0 %v881_v32 }
  0x6e   : > { %538 = vmatpush2.bf16.msra.mxu0 %v883_v33 }
  0x6f   : > { %539 = vmatprep.subr.bf16.mxu0 %v884_v34 }
  0x72   : > { %540 = vmatpush2.bf16.msra.mxu0 %v886_v35 }
  0x73   : > { %541 = vmatprep.subr.bf16.mxu0 %v887_v36 }
  0x76   : > { %542 = vmatpush2.bf16.msra.mxu0 %v889_v37 }
  0x77   : > { %543 = vmatprep.subr.bf16.mxu0 %v890_v38 }
  0x7a   : > { %544 = vmatpush2.bf16.msra.mxu0 %v892_v39 }
  0x7d   : > { %546 = vmatmul.mubr.bf16.vlgmr.msra.gmra.mxu0 %v319_v42 }
 0x13d   : > { %v547_v44 = vpop.f32.mrf.mxu0 }
 0x13e   : > { %v556_v46 = vadd.f32 %v547_v44, %v311_v43 }
 0x13f   : > { %v549_v47 = vpop.f32.mrf.mxu0 }
 0x140   : > { %560 = vst [vmem:[#allocation2 + $0x10] sm:$0xff] %v556_v46  ;;  %v557_v49 = vadd.f32 %v549_v47, %v312_v45 }
 0x141   : > { %v551_v50 = vpop.f32.mrf.mxu0 }
 0x142   : > { %561 = vst [vmem:[#allocation2] sm:$0xff] %v557_v49  ;;  %v558_v52 = vadd.f32 %v551_v50, %v313_v48  ;;  %567 = sbr.rel (%p780_p6) target bundleno = 340 (0x154), region = 67 }
 0x143   : > { %v553_v53 = vpop.f32.mrf.mxu0 }
 0x144   : > { %562 = vst [vmem:[#allocation2 + $0x18] sm:$0xff] %v558_v52  ;;  %v559_v54 = vadd.f32 %v553_v53, %v314_v51 }
 0x146   : > { %563 = vst [vmem:[#allocation2 + $0x8] sm:$0xff] %v559_v54 }
 0x147   : > { %v574_v55 = vlaneseq  ;;  %v572_v57 = vld [vmem:[%s1140_s2] sm:$0x3]  ;;  %v568_v58 = vld [vmem:[#allocation2 + $0x10] sm:$0xff] }
 0x149   : > { %v575_v56 = vshrl.u32 %v574_v55, 7  ;;  %v569_v61 = vld [vmem:[#allocation2] sm:$0xff] }
 0x14b   : > { %v576_v59 = vsub.s32 0, %v575_v56  ;;  %v580_v60 = vsub.s32 1, %v575_v56  ;;  %v570_v62 = vld [vmem:[#allocation2 + $0x18] sm:$0xff] }
 0x14d   : > { %v571_v63 = vld [vmem:[#allocation2 + $0x8] sm:$0xff]  ;;  %v577_v0 = vrot.slane %v572_v57, %v576_v59  ;;  %v581_v1 = vrot.slane %v572_v57, %v580_v60 }
 0x14f   : > { %v584_v2 = vadd.f32 %v577_v0, %v568_v58  ;;  %v585_v3 = vadd.f32 %v581_v1, %v569_v61  ;;  %v586_v4 = vadd.f32 %v577_v0, %v570_v62  ;;  %v587_v5 = vadd.f32 %v581_v1, %v571_v63 }
 0x151   : > { %v790_v6 = vpack.c.bf16 %v585_v3, %v584_v2  ;;  %v791_v7 = vpack.c.bf16 %v587_v5, %v586_v4 }
 0x153   : > { %600 = vst [vmem:[%s1141_s3] sm:$0xff] %v790_v6  ;;  %601 = vst [vmem:[%s1141_s3 + $0x8] sm:$0xff] %v791_v7 }
 0x154 PF: > { %s16_s17 = sadd.s32 1, %s969_s17   ;;  %s1144_s12 = smov %s953_s13 }
 0x155   : > { %p13_p7 = scmp.ge.s32.totalorder %s16_s17, 7   ;;  %s1145_s13 = smov %s957_s14 }
 0x156   : > { %s1146_s14 = smov %s1043_s24  ;;  %s1147_s15 = smov %s965_s16 }
 0x157   : > { %s1148_s16 = smov %s1150_s19  ;;  %15 = sbr.rel (!%p13_p7) target bundleno = 4 (0x4), region = 114 }
 0x15c   :  { %635 = vsyncpa [#allocation5], 1 }
 0x15d   :  { %637 = vsyncpa [#allocation5 + $0x1], 1 }

// kernel: forward.16
= control target key start
LH: loop header
LB: loop body
LE: loop exit
PB: predicated region body
PF: predicated region fallthrough
CT: control target
= control target key end

     0   :  { %s1487_s27 = smov 0   ;;  %s1489_s28 = smov 0   ;;  %s1683_s0 = inlined_call_operand.vmem [shape: bf16[2,8,256], index: 0, kind: input, shape index: {}]   ;;  %s1684_s1 = inlined_call_operand.vmem [shape: bf16[2,8,256], index: 1, kind: input, shape index: {}]   ;;  %s1685_s2 = inlined_call_operand.vmem [shape: bf16[2,8,256], index: 2, kind: input, shape index: {}]   ;;  %s1686_s3 = inlined_call_operand.vmem [shape: bf16[256,256], index: 3, kind: input, shape index: {}]   ;;  %s1687_s4 = inlined_call_operand.vmem [shape: f32[1,256], index: 4, kind: input, shape index: {}]   ;;  %s1688_s5 = inlined_call_operand.vmem [shape: f32[2,8,256], index: 5, kind: input, shape index: {}]   ;;  %s1689_s6 = inlined_call_operand.vmem [shape: f32[1,256], index: 6, kind: input, shape index: {}]   ;;  %s1690_s7 = inlined_call_operand.vmem [shape: f32[1,256], index: 7, kind: input, shape index: {}]   ;;  %s1691_s8 = inlined_call_operand.vmem [shape: f32[2,8,256], index: 8, kind: output, shape index: {}]  }
   0x1   :  { %s1491_s29 = smov 0  }
   0x2 LB: > { %s37_s30 = sadd.s32 1, %s1432_s28  ;;  %p1233_p0 = scmp.ge.s32.totalorder %s1436_s29, 1  ;;  %s1436_s29 = sphi %s1491_s29, %s18_s29   ;;  %s1432_s28 = sphi %s1489_s28, %s1693_s28   ;;  %s1428_s27 = sphi %s1487_s27, %s1692_s27  }
   0x3   : > { %p39_p1 = scmp.ge.s32.totalorder %s37_s30, 2  ;;  %p337_p2 = scmp.lt.s32.totalorder %s1436_s29, 3 }
   0x5   : > { %s1695_s30 = smov (%p39_p1, %s37_s30), 0  ;;  %p338_p3 = pnand %p1233_p0, %p337_p2 }
   0x6   : > { %p406_p4 = scmp.lt.s32.totalorder (!%p338_p3), %s1428_s27, 1 }
   0x7   : > { %341 = sbr.rel (%p338_p3) target bundleno = 1791 (0x6ff), region = 52 }
   0xc   : > { %v1438_v0 = vmov 0.0   ;;  %vm1439_vm0 = vmmov 0   ;;  %s1697_s27 = smov (!%p406_p4, %s1428_s27), 1  ;;  %vm456_vm1 = vcmask 7168   ;;  %v1440_v3 = vmov -1e+30  }
   0xd   : > { %1296 = vmatprep.subr.bf16.mxu0 %v1438_v0  ;;  %1298 = vmatprep.mubr.msk.bf16.mxu0 %vm1439_vm0, %v1438_v0  ;;  %s1509_s9 = sshll.u32 %s1697_s27, 3  ;;  %457 = vst.msk [vmem:[#allocation2] sm:$0xff] %vm456_vm1, %v1440_v3  ;;  %458 = vst.msk [vmem:[#allocation2 + $0x8] sm:$0xff] %vm456_vm1, %v1440_v3  ;;  %v474_v4 = vlaneseq  ;;  %vm525_vm3 = vcmask 64512   ;;  %v1441_v13 = vmov 0   ;;  %vm560_vm4 = vcmask 1043456  }
   0xe   : > { %s423_s12 = scalar_lea.vmem %s1684_s1, %s1509_s9  ;;  %s414_s15 = scalar_lea.vmem %s1683_s0, %s1509_s9  ;;  %459 = vst.msk [vmem:[#allocation3] sm:$0xff] %vm456_vm1, %v1438_v0  ;;  %460 = vst.msk [vmem:[#allocation3 + $0x8] sm:$0xff] %vm456_vm1, %v1438_v0  ;;  %1348 = vset.pattern.permute.xlu0 %v1441_v13  ;;  %1349 = vset.pattern.permute.xlu1 %v1441_v13  ;;  %v1352_v61 = vld [vmem:[%s1686_s3 + $0x74] ss:$8 sps:$4 sm:$0xff]   ;;  %v1354_v62 = vld [vmem:[%s1686_s3 + $0x70] ss:$8 sps:$4 sm:$0xff]  }
   0xf   : > { %v471_v1 = vld [vmem:[%s423_s12] sm:$0xff]  ;;  %v1524_v5 = vshrl.u32 %v474_v4, 7  ;;  %v479_v6 = vand.u32 127, %v474_v4  ;;  %s432_s18 = scalar_lea.vmem %s1685_s2, %s1509_s9  ;;  %979 = vmatprep.subr.bf16.mxu1 %v1352_v61  ;;  %s1286_s13 = sshll.u32 %s1697_s27, 4 }
  0x10   : > { %1297 = vmatpush3.bf16.xpose.msra.mxu0 %v471_v1  ;;  %v470_v2 = vld [vmem:[%s414_s15] sm:$0xff]  ;;  %v1246_v24 = vcombine.high %v471_v1, %v471_v1  ;;  %980 = vmatpush1.bf16.msra.mxu1 %v1354_v62  ;;  %v1358_v1 = vld [vmem:[%s1686_s3 + $0x54] ss:$8 sps:$4 sm:$0xff]   ;;  %s441_s16 = scalar_lea.vmem %s1688_s5, %s1286_s13  ;;  %s450_s23 = scalar_lea.vmem %s1691_s8, %s1286_s13 }
  0x11   : > { %1302 = vmatprep.subr.bf16.mxu0 %v1438_v0  ;;  %vm482_vm2 = vcmp.gt.s32.totalorder %v479_v6, %v1524_v5  ;;  %v472_v18 = vld [vmem:[%s432_s18] sm:$0xff]  ;;  %v1245_v27 = vcombine.high %v470_v2, %v470_v2  ;;  %v1364_v6 = vld [vmem:[%s1686_s3 + $0x34] ss:$8 sps:$4 sm:$0xff]   ;;  %v1021_v62 = vld [vmem:[%s441_s16 + $0x8] sm:$0xff] }
  0x12   : > { %v562_v19 = vsel %vm560_vm4, %v472_v18, 0  ;;  %v1247_v51 = vcombine.high %v472_v18, %v472_v18  ;;  %v1355_v63 = vld [vmem:[%s1686_s3 + $0x64] ss:$8 sps:$4 sm:$0xff]   ;;  %v1363_v4 = vld [vmem:[%s1686_s3 + $0x40] ss:$8 sps:$4 sm:$0xff]  }
  0x13   : > { %981 = vmatprep.subr.bf16.mxu1 %v1355_v63  ;;  %v1361_v3 = vld [vmem:[%s1686_s3 + $0x44] ss:$8 sps:$4 sm:$0xff]   ;;  %v1375_v13 = vld [vmem:[%s1686_s3] ss:$8 sps:$4 sm:$0xff]   ;;  %v1382_v18 = vld [vmem:[%s1686_s3 + $0xd4] ss:$8 sps:$4 sm:$0xff]  }
  0x14   : > { %v524_v14 = vld [vmem:[#allocation2] sm:$0xff]  ;;  %v657_v47 = vld [vmem:[#allocation2 + $0x8] sm:$0xff]  ;;  %v697_v52 = vsel %vm560_vm4, %v1247_v51, 0 }
  0x15   : > { %v541_v30 = vld [vmem:[#allocation3] sm:$0xff] }
  0x17   : > { %1299 = vmatmul.mubr.bf16.vlgmr.msra.gmra.mxu0 %v470_v2  ;;  %v1360_v2 = vld [vmem:[%s1686_s3 + $0x50] ss:$8 sps:$4 sm:$0xff]  }
  0x18   : > { %1304 = vmatprep.mubr.msk.bf16.mxu0 %vm1439_vm0, %v1438_v0  ;;  %1303 = vmatpush3.bf16.msra.mxu0 %v562_v19  ;;  %v1384_v19 = vld [vmem:[%s1686_s3 + $0xd0] ss:$8 sps:$4 sm:$0xff]  }
  0x19   : > { %1308 = vmatprep.subr.bf16.mxu0 %v1438_v0 }
  0xd7   : > { %v517_v7 = vpop.f32.mrf.mxu0 }
  0xd8   : > { %v523_v8 = vsel %vm482_vm2, -1e+30, %v517_v7  ;;  %v1366_v7 = vld [vmem:[%s1686_s3 + $0x30] ss:$8 sps:$4 sm:$0xff]  }
  0xd9   : > { %v1300_v9 = vpop.f32.mrf.mxu0  ;;  %v526_v10 = vsel %vm525_vm3, %v523_v8, -inf }
  0xda   : > { %527 = vmax.xlane.f32.xlu0 %v526_v10  ;;  %v1369_v9 = vld [vmem:[%s1686_s3 + $0x20] ss:$8 sps:$4 sm:$0xff]   ;;  %v1370_v10 = vld [vmem:[%s1686_s3 + $0x14] ss:$8 sps:$4 sm:$0xff]  }
  0xdb   : > { %v520_v11 = vpop.f32.mrf.mxu0 }
  0xdc   : > { %v1372_v11 = vld [vmem:[%s1686_s3 + $0x10] ss:$8 sps:$4 sm:$0xff]  }
  0xdd   : > { %v1301_v12 = vpop.f32.mrf.mxu0 }
  0xde   : > { %v1373_v12 = vld [vmem:[%s1686_s3 + $0x4] ss:$8 sps:$4 sm:$0xff]  }
 0x163   : > { %v528_v15 = vpop.xlane.xlu0 %527 }
 0x164   : > { %v529_v16 = vmax.f32 %v524_v14, %v528_v15  ;;  %v1378_v15 = vld [vmem:[%s1686_s3 + $0xf0] ss:$8 sps:$4 sm:$0xff]  }
 0x166   : > { %v530_v17 = vsub.f32 %v524_v14, %v529_v16  ;;  %606 = vst.msk [vmem:[#allocation2] sm:$0xff] %vm456_vm1, %v529_v16  ;;  %535 = vperm.xlu0 %1348, %v529_v16   ;;  %v1376_v14 = vld [vmem:[%s1686_s3 + $0xf4] ss:$8 sps:$4 sm:$0xff]   ;;  %v1379_v16 = vld [vmem:[%s1686_s3 + $0xe4] ss:$8 sps:$4 sm:$0xff]  }
 0x168   : > { %v531_v28 = vmul.f32 1.442695, %v530_v17  ;;  %v1381_v17 = vld [vmem:[%s1686_s3 + $0xe0] ss:$8 sps:$4 sm:$0xff]  }
 0x1e1   : > { %v536_v20 = vpop.permute.xlu0 %535 }
 0x1e2   : > { %v538_v21 = vsub.f32 %v523_v8, %v536_v20  ;;  %v1367_v8 = vld [vmem:[%s1686_s3 + $0x24] ss:$8 sps:$4 sm:$0xff]  }
 0x1e3   : > { %v1385_v20 = vld [vmem:[%s1686_s3 + $0xc4] ss:$8 sps:$4 sm:$0xff]  }
 0x1e4   : > { %v539_v22 = vmul.f32 1.442695, %v538_v21  ;;  %v1387_v21 = vld [vmem:[%s1686_s3 + $0xc0] ss:$8 sps:$4 sm:$0xff]  }
 0x1e6   : > { %1400 = vpow2.f32 %v539_v22  ;;  %v1388_v22 = vld [vmem:[%s1686_s3 + $0xb4] ss:$8 sps:$4 sm:$0xff]  }
 0x1e7   : > { %1402 = vpow2.f32 %v531_v28  ;;  %v674_v28 = vld [vmem:[#allocation3 + $0x8] sm:$0xff] }
 0x1f3   : > { %v1401_v23 = vpop.eup %1400 }
 0x1f4   : > { %v543_v25 = vsel %vm525_vm3, %v1401_v23, 0.0  ;;  %v556_v26 = vpack.c.bf16 %v1401_v23, %v1401_v23  ;;  %v1403_v29 = vpop.eup %1402  ;;  %v1390_v23 = vld [vmem:[%s1686_s3 + $0xb0] ss:$8 sps:$4 sm:$0xff]  }
 0x1f5   : > { %544 = vadd.xlane.f32.xlu0 %v543_v25  ;;  %v542_v31 = vmul.f32 %v1403_v29, %v541_v30  ;;  %v1393_v25 = vld [vmem:[%s1686_s3 + $0xa0] ss:$8 sps:$4 sm:$0xff]  }
 0x1f6   : > { %1305 = vmatmul.mubr.msk.bf16.vlgmr.msra.gmra.mxu0 %vm525_vm3, %v556_v26  ;;  %v1394_v26 = vld [vmem:[%s1686_s3 + $0x94] ss:$8 sps:$4 sm:$0xff]  }
 0x1f7   : > { %1309 = vmatpush3.bf16.xpose.msra.mxu0 %v1246_v24  ;;  %1310 = vmatprep.mubr.msk.bf16.mxu0 %vm1439_vm0, %v1438_v0  ;;  %v1391_v24 = vld [vmem:[%s1686_s3 + $0xa4] ss:$8 sps:$4 sm:$0xff]  }
 0x1f8   : > { %1314 = vmatprep.subr.bf16.mxu0 %v1438_v0 }
 0x1fe   : > { %1311 = vmatmul.mubr.bf16.vlgmr.msra.gmra.mxu0 %v1245_v27  ;;  %v1396_v27 = vld [vmem:[%s1686_s3 + $0x90] ss:$8 sps:$4 sm:$0xff]  }
 0x1ff   : > { %1316 = vmatprep.mubr.msk.bf16.mxu0 %vm1439_vm0, %v1438_v0  ;;  %1315 = vmatpush3.bf16.msra.mxu0 %v697_v52  ;;  %v1357_v0 = vld [vmem:[%s1686_s3 + $0x60] ss:$8 sps:$4 sm:$0xff]  }
 0x200   : > { %982 = vmatpush1.bf16.msra.mxu1 %v1357_v0 }
 0x201   : > { %983 = vmatprep.subr.bf16.mxu1 %v1358_v1 }
 0x204   : > { %984 = vmatpush1.bf16.msra.mxu1 %v1360_v2 }
 0x205   : > { %985 = vmatprep.subr.bf16.mxu1 %v1361_v3 }
 0x208   : > { %986 = vmatpush1.bf16.msra.mxu1 %v1363_v4 }
 0x209   : > { %987 = vmatprep.subr.bf16.mxu1 %v1364_v6 }
 0x20c   : > { %988 = vmatpush1.bf16.msra.mxu1 %v1366_v7 }
 0x20d   : > { %989 = vmatprep.subr.bf16.mxu1 %v1367_v8 }
 0x210   : > { %990 = vmatpush1.bf16.msra.mxu1 %v1369_v9 }
 0x211   : > { %991 = vmatprep.subr.bf16.mxu1 %v1370_v10 }
 0x214   : > { %992 = vmatpush1.bf16.msra.mxu1 %v1372_v11 }
 0x215   : > { %993 = vmatprep.subr.bf16.mxu1 %v1373_v12 }
 0x218   : > { %994 = vmatpush1.bf16.msra.mxu1 %v1375_v13 }
 0x219   : > { %995 = vmatprep.subr.bf16.mxu1 %v1376_v14 }
 0x21c   : > { %996 = vmatpush2.bf16.msra.mxu1 %v1378_v15  ;;  %v1041_v15 = vld [vmem:[%s1689_s6] sm:$0x3] }
 0x21d   : > { %997 = vmatprep.subr.bf16.mxu1 %v1379_v16  ;;  %v1055_v16 = vld [vmem:[%s1690_s7] sm:$0x3] }
 0x220   : > { %998 = vmatpush2.bf16.msra.mxu1 %v1381_v17 }
 0x221   : > { %999 = vmatprep.subr.bf16.mxu1 %v1382_v18 }
 0x224   : > { %1000 = vmatpush2.bf16.msra.mxu1 %v1384_v19 }
 0x225   : > { %1001 = vmatprep.subr.bf16.mxu1 %v1385_v20 }
 0x228   : > { %1002 = vmatpush2.bf16.msra.mxu1 %v1387_v21 }
 0x229   : > { %1003 = vmatprep.subr.bf16.mxu1 %v1388_v22 }
 0x22c   : > { %1004 = vmatpush2.bf16.msra.mxu1 %v1390_v23 }
 0x22d   : > { %1005 = vmatprep.subr.bf16.mxu1 %v1391_v24 }
 0x230   : > { %1006 = vmatpush2.bf16.msra.mxu1 %v1393_v25 }
 0x231   : > { %1007 = vmatprep.subr.bf16.mxu1 %v1394_v26 }
 0x234   : > { %1008 = vmatpush2.bf16.msra.mxu1 %v1396_v27 }
 0x27e   : > { %v545_v32 = vpop.xlane.xlu0 %544 }
 0x27f   : > { %v546_v33 = vadd.f32 %v545_v32, %v542_v31 }
 0x281   : > { %548 = vst.msk [vmem:[#allocation3] sm:$0xff] %vm456_vm1, %v546_v33 }
 0x288   : > { %v745_v34 = vld [vmem:[#allocation3] sm:$0xff] }
 0x289   : > { %vm746_vm5 = vcmp.eq.f32.partialorder %v745_v34, 0.0 }
 0x28a   : > { %v747_v35 = vsel %vm746_vm5, 1.0, %v745_v34  ;;  %v1397_v34 = vld [vmem:[%s1686_s3 + $0x84] ss:$8 sps:$4 sm:$0xff]  }
 0x28b   : > { %1404 = vrcp.f32 %v747_v35  ;;  %v1399_v35 = vld [vmem:[%s1686_s3 + $0x80] ss:$8 sps:$4 sm:$0xff]   ;;  %1009 = vmatprep.subr.bf16.mxu1 %v1397_v34 }
 0x28c   : > { %1010 = vmatpush2.bf16.msra.mxu1 %v1399_v35 }
 0x298   : > { %v1405_v36 = vpop.eup %1404 }
 0x299   : > { %752 = vperm.xlu0 %1348, %v1405_v36  }
 0x2b6   : > { %v1541_v37 = vpop.f32.mrf.mxu0 }
 0x2b8   : > { %v1306_v38 = vpop.f32.mrf.mxu0 }
 0x2ba   : > { %v601_v39 = vpop.f32.mrf.mxu0 }
 0x2bc   : > { %v1307_v40 = vpop.f32.mrf.mxu0 }
 0x2be   : > { %v649_v41 = vpop.f32.mrf.mxu0 }
 0x2bf   : > { %v655_v42 = vsel %vm482_vm2, -1e+30, %v649_v41 }
 0x2c0   : > { %v1312_v43 = vpop.f32.mrf.mxu0  ;;  %v658_v44 = vsel %vm525_vm3, %v655_v42, -inf }
 0x2c1   : > { %659 = vmax.xlane.f32.xlu1 %v658_v44 }
 0x2c2   : > { %v652_v45 = vpop.f32.mrf.mxu0 }
 0x2c4   : > { %v1313_v46 = vpop.f32.mrf.mxu0 }
 0x34a   : > { %v660_v48 = vpop.xlane.xlu1 %659 }
 0x34b   : > { %v661_v49 = vmax.f32 %v657_v47, %v660_v48 }
 0x34d   : > { %v662_v50 = vsub.f32 %v657_v47, %v661_v49  ;;  %741 = vst.msk [vmem:[#allocation2 + $0x8] sm:$0xff] %vm456_vm1, %v661_v49  ;;  %667 = vperm.xlu1 %1349, %v661_v49   ;;  %v753_v47 = vpop.permute.xlu0 %752 }
 0x34f   : > { %v663_v57 = vmul.f32 1.442695, %v662_v50 }
 0x3c8   : > { %v668_v53 = vpop.permute.xlu1 %667 }
 0x3c9   : > { %v670_v54 = vsub.f32 %v655_v42, %v668_v53 }
 0x3cb   : > { %v671_v55 = vmul.f32 1.442695, %v670_v54  ;;  %v811_v54 = vsub.s32 0, %v1524_v5 }
 0x3cd   : > { %1406 = vpow2.f32 %v671_v55  ;;  %v807_v55 = vld [vmem:[%s1687_s4] sm:$0x3]  ;;  %v1046_v17 = vrot.slane %v1041_v15, %v811_v54  ;;  %v1060_v20 = vrot.slane %v1055_v16, %v811_v54 }
 0x3ce   : > { %1408 = vpow2.f32 %v663_v57 }
 0x3da   : > { %v1407_v56 = vpop.eup %1406 }
 0x3db   : > { %v676_v58 = vsel %vm525_vm3, %v1407_v56, 0.0  ;;  %v689_v59 = vpack.c.bf16 %v1407_v56, %v1407_v56  ;;  %v1550_v60 = vpop.eup %1408  ;;  %v815_v56 = vsub.s32 1, %v1524_v5 }
 0x3dc   : > { %677 = vadd.xlane.f32.xlu1 %v676_v58 }
 0x3dd   : > { %1317 = vmatmul.mubr.msk.bf16.vlgmr.msra.gmra.mxu0 %vm525_vm3, %v689_v59  ;;  %v816_v57 = vrot.slane %v807_v55, %v815_v56  ;;  %v1050_v18 = vrot.slane %v1041_v15, %v815_v56  ;;  %v1064_v21 = vrot.slane %v1055_v16, %v815_v56 }
 0x3ed   : > { %685 = vperm.xlu1 %1349, %v1550_v60  }
 0x3f1   : > { %552 = vperm.xlu1 %1349, %v1403_v29   ;;  %v675_v29 = vmul.f32 %v1550_v60, %v674_v28  ;;  %v1020_v60 = vld [vmem:[%s441_s16] sm:$0xff] }
 0x465   : > { %v678_v30 = vpop.xlane.xlu1 %677 }
 0x466   : > { %v679_v31 = vadd.f32 %v678_v30, %v675_v29 }
 0x468   : > { %680 = vst.msk [vmem:[#allocation3 + $0x8] sm:$0xff] %vm456_vm1, %v679_v31 }
 0x469   : > { %v686_v42 = vpop.permute.xlu1 %685 }
 0x46a   : > { %v688_v46 = vmul.f32 0.0, %v686_v42 }
 0x46d   : > { %v553_v43 = vpop.permute.xlu1 %552 }
 0x46e   : > { %v555_v44 = vmul.f32 0.0, %v553_v43 }
 0x46f   : > { %v758_v32 = vld [vmem:[#allocation3 + $0x8] sm:$0xff] }
 0x470   : > { %vm759_vm6 = vcmp.eq.f32.partialorder %v758_v32, 0.0  ;;  %v604_v45 = vadd.f32 %v1541_v37, %v555_v44  ;;  %v812_v37 = vrot.slane %v807_v55, %v811_v54 }
 0x471   : > { %v760_v33 = vsel %vm759_vm6, 1.0, %v758_v32 }
 0x472   : > { %1410 = vrcp.f32 %v760_v33  ;;  %v755_v50 = vmul.f32 %v753_v47, %v604_v45 }
 0x474   : > { %v773_v53 = vpack.c.bf16 %v755_v50, %v755_v50 }
 0x47f   : > { %v1411_v36 = vpop.eup %1410 }
 0x480   : > { %766 = vperm.xlu1 %1349, %v1411_v36  }
 0x49d   : > { %v733_v38 = vpop.f32.mrf.mxu0 }
 0x49e   : > { %v739_v48 = vadd.f32 %v733_v38, %v688_v46 }
 0x49f   : > { %v1318_v39 = vpop.f32.mrf.mxu0 }
 0x4a1   : > { %v736_v40 = vpop.f32.mrf.mxu0 }
 0x4a3   : > { %v1319_v41 = vpop.f32.mrf.mxu0 }
 0x4fb   : > { %v767_v49 = vpop.permute.xlu1 %766 }
 0x4fc   : > { %v769_v51 = vmul.f32 %v767_v49, %v739_v48 }
 0x4fe   : > { %v774_v52 = vpack.c.bf16 %v769_v51, %v769_v51 }
 0x500   : > { %1011 = vmatprep.mubr.bf16.mxu1 %v774_v52 }
 0x501   : > { %1012 = vmatmul.mubr.bf16.vlgmr.msra.gmra.mxu1 %v773_v53 }
 0x5c1   : > { %v1013_v58 = vpop.f32.mrf.mxu1 }
 0x5c2   : > { %v1014_v59 = vadd.f32 %v1013_v58, %v812_v37 }
 0x5c3   : > { %v1015_v61 = vpop.f32.mrf.mxu1 }
 0x5c4   : > { %v1016_v63 = vadd.f32 %v1015_v61, %v816_v57  ;;  %v1022_v1 = vadd.f32 %v1020_v60, %v1014_v59 }
 0x5c5   : > { %v1017_v0 = vpop.f32.mrf.mxu1 }
 0x5c6   : > { %v1023_v2 = vadd.f32 %v1021_v62, %v1016_v63 }
 0x5c7   : > { %v1018_v3 = vpop.f32.mrf.mxu1 }
 0x5c8   : > { %v1024_v4 = vadd.f32 %v1023_v2, %v1022_v1 }
 0x5ca   : > { %1025 = vadd.xlane.f32.xlu1 %v1024_v4 }
 0x653   : > { %v1026_v5 = vpop.xlane.xlu1 %1025 }
 0x654   : > { %v1028_v6 = vmul.f32 0.00390625, %v1026_v5 }
 0x656   : > { %v1029_v7 = vsub.f32 %v1022_v1, %v1028_v6  ;;  %v1030_v8 = vsub.f32 %v1023_v2, %v1028_v6 }
 0x658   : > { %v1031_v9 = vmul.f32 %v1029_v7, %v1029_v7  ;;  %v1032_v10 = vmul.f32 %v1030_v8, %v1030_v8 }
 0x65a   : > { %v1033_v11 = vadd.f32 %v1032_v10, %v1031_v9 }
 0x65c   : > { %1034 = vadd.xlane.f32.xlu0 %v1033_v11 }
 0x6e5   : > { %v1035_v12 = vpop.xlane.xlu0 %1034 }
 0x6e6   : > { %v1036_v13 = vmul.f32 0.00390625, %v1035_v12 }
 0x6e8   : > { %v1037_v14 = vadd.f32 1e-05, %v1036_v13 }
 0x6ea   : > { %1412 = vrsqrt.f32 %v1037_v14 }
 0x6f7   : > { %v1413_v19 = vpop.eup %1412 }
 0x6f8   : > { %v1039_v22 = vmul.f32 %v1413_v19, %v1029_v7  ;;  %v1040_v23 = vmul.f32 %v1413_v19, %v1030_v8 }
 0x6fa   : > { %v1053_v24 = vmul.f32 %v1046_v17, %v1039_v22  ;;  %v1054_v25 = vmul.f32 %v1050_v18, %v1040_v23 }
 0x6fc   : > { %v1067_v26 = vadd.f32 %v1060_v20, %v1053_v24  ;;  %v1068_v27 = vadd.f32 %v1064_v21, %v1054_v25 }
 0x6fe   : > { %1069 = vst [vmem:[%s450_s23] sm:$0xff] %v1067_v26  ;;  %1070 = vst [vmem:[%s450_s23 + $0x8] sm:$0xff] %v1068_v27 }
 0x6ff PF: > { %s18_s29 = sadd.s32 1, %s1436_s29   ;;  %s1692_s27 = smov %s1432_s28 }
 0x700   : > { %p15_p5 = scmp.ge.s32.totalorder %s18_s29, 4   ;;  %s1693_s28 = smov %s1695_s30 }
 0x702   :  { %17 = sbr.rel (!%p15_p5) target bundleno = 2 (0x2), region = 108 }

// kernel: forward.27
= control target key start
LH: loop header
LB: loop body
LE: loop exit
PB: predicated region body
PF: predicated region fallthrough
CT: control target
= control target key end

     0   :  { %s414_s0 = inlined_call_operand.vmem [shape: f32[16,256], index: 0, kind: input, shape index: {}]   ;;  %s415_s1 = inlined_call_operand.vmem [shape: bf16[256,16], index: 1, kind: input, shape index: {}]   ;;  %s416_s2 = inlined_call_operand.vmem [shape: f32[1,16], index: 2, kind: input, shape index: {}]   ;;  %s417_s3 = inlined_call_operand.hbm [shape: f32[16,16], index: 3, kind: output, shape index: {}]  }
   0x1   :  { %v280_v0 = vld [vmem:[%s415_s1 + $0x78] sm:$0xff]   ;;  %v282_v2 = vld [vmem:[%s415_s1 + $0x70] sm:$0xff]   ;;  %v284_v4 = vld [vmem:[%s415_s1 + $0x68] sm:$0xff]  }
   0x2   :  { %v281_v1 = vld [vmem:[%s415_s1 + $0x38] sm:$0xff]   ;;  %254 = vmatprep.subr.bf16.mxu0 %v280_v0  ;;  %v283_v3 = vld [vmem:[%s415_s1 + $0x30] sm:$0xff]   ;;  %v285_v5 = vld [vmem:[%s415_s1 + $0x28] sm:$0xff]  }
   0x3   :  { %255 = vmatpush3.bf16.msra.mxu0 %v281_v1  ;;  %v286_v6 = vld [vmem:[%s415_s1 + $0x60] sm:$0xff]   ;;  %v288_v8 = vld [vmem:[%s415_s1 + $0x58] sm:$0xff]   ;;  %v290_v10 = vld [vmem:[%s415_s1 + $0x50] sm:$0xff]  }
   0x4   :  { %256 = vmatprep.subr.bf16.mxu0 %v282_v2  ;;  %v287_v7 = vld [vmem:[%s415_s1 + $0x20] sm:$0xff]   ;;  %v289_v9 = vld [vmem:[%s415_s1 + $0x18] sm:$0xff]   ;;  %v26_v11 = vld [vmem:[%s414_s0 + $0x8] sm:$0xff] }
   0x5   :  { %v28_v12 = vld [vmem:[%s414_s0 + $0x18] sm:$0xff] }
   0x6   :  { %v30_v13 = vpack.c.bf16 %v28_v12, %v26_v11 }
   0x7   :  { %257 = vmatpush3.bf16.msra.mxu0 %v283_v3 }
   0x8   :  { %258 = vmatprep.subr.bf16.mxu0 %v284_v4 }
   0xb   :  { %259 = vmatpush3.bf16.msra.mxu0 %v285_v5 }
   0xc   :  { %260 = vmatprep.subr.bf16.mxu0 %v286_v6 }
   0xf   :  { %261 = vmatpush3.bf16.msra.mxu0 %v287_v7 }
  0x10   :  { %262 = vmatprep.subr.bf16.mxu0 %v288_v8 }
  0x11   :  { %8 = vsyncpa [#allocation4], 0  ;;  %v291_v14 = vld [vmem:[%s415_s1 + $0x10] sm:$0xff]   ;;  %191 = vmatprep.mubr.bf16.mxu0 %v30_v13  ;;  %v292_v15 = vld [vmem:[%s415_s1 + $0x48] sm:$0xff]   ;;  %vm20_vm0 = vcmask 130048   ;;  %v318_v22 = vmov 0.0  }
  0x12   :  { %v293_v16 = vld [vmem:[%s415_s1 + $0x8] sm:$0xff]   ;;  %v294_v17 = vld [vmem:[%s415_s1 + $0x40] sm:$0xff]   ;;  %v27_v20 = vld [vmem:[%s414_s0 + $0x10] sm:$0xff]  ;;  %21 = vst.msk [vmem:[#allocation2] sm:$0xff] %vm20_vm0, %v318_v22  ;;  %s319_s25 = smov [#allocation3]  }
  0x13   :  { %263 = vmatpush3.bf16.msra.mxu0 %v289_v9  ;;  %v295_v18 = vld [vmem:[%s415_s1] sm:$0xff]   ;;  %22 = vst.msk [vmem:[#allocation2 + $0x8] sm:$0xff] %vm20_vm0, %v318_v22  ;;  %s226_s26 = sshll.u32 %s319_s25, 4  ;;  %s227_s26 = int_to_ptr.vmem [resolvable:$true] %s226_s26 }
  0x14   :  { %264 = vmatprep.subr.bf16.mxu0 %v290_v10  ;;  %v25_v19 = vld [vmem:[%s414_s0] sm:$0xff]  ;;  %s296_s27 = scalar_lea.vmem %s227_s26, 256  ;;  %p301_p1 = scmp.lt.s32.totalorder %s227_s26, %s227_s26 }
  0x15   :  { %v29_v21 = vpack.c.bf16 %v27_v20, %v25_v19  ;;  %v253_v33 = vld [vmem:[%s416_s2] ss:$0 sm:$0xff]  ;;  %p297_p0 = scmp.ne.s32.totalorder %s227_s26, %s296_s27  ;;  %p302_p2 = scmp.lt.s32.totalorder %s296_s27, %s296_s27 }
  0x17   :  { %265 = vmatpush3.bf16.msra.mxu0 %v291_v14  ;;  %p303_p3 = por %p302_p2, %p301_p1 }
  0x18   :  { %266 = vmatprep.subr.bf16.mxu0 %v292_v15 }
  0x19   :  { %v23_v24 = vld [vmem:[#allocation2] sm:$0xff]  ;;  %p304_p4 = pnand %p303_p3, %p297_p0 }
  0x1a   :  { %v24_v29 = vld [vmem:[#allocation2 + $0x8] sm:$0xff] }
  0x1b   :  { %267 = vmatpush3.bf16.msra.mxu0 %v293_v16 }
  0x1c   :  { %268 = vmatprep.subr.bf16.mxu0 %v294_v17 }
  0x1f   :  { %269 = vmatpush3.bf16.msra.mxu0 %v295_v18 }
  0x22   :  { %192 = vmatmul.mubr.bf16.vlgmr.msra.gmra.mxu0 %v29_v21 }
  0xe2   :  { %v270_v23 = vpop.f32.mrf.mxu0 }
  0xe4   :  { %v271_v25 = vpop.f32.mrf.mxu0 }
  0xe5   :  { %v272_v26 = vadd.f32 %v271_v25, %v270_v23 }
  0xe6   :  { %v273_v27 = vpop.f32.mrf.mxu0 }
  0xe7   :  { %v200_v28 = vadd.f32 %v272_v26, %v23_v24 }
  0xe8   :  { %v274_v30 = vpop.f32.mrf.mxu0 }
  0xe9   :  { %203 = vst.msk [vmem:[#allocation2] sm:$0xff] %vm20_vm0, %v200_v28  ;;  %v275_v31 = vadd.f32 %v274_v30, %v273_v27 }
  0xeb   :  { %v201_v32 = vadd.f32 %v275_v31, %v24_v29 }
  0xed   :  { %204 = vst.msk [vmem:[#allocation2 + $0x8] sm:$0xff] %vm20_vm0, %v201_v32 }
  0xf0   :  { %v208_v34 = vld [vmem:[#allocation2] sm:$0xff] }
  0xf1   :  { %v217_v35 = vadd.f32 %v253_v33, %v208_v34 }
  0xf3   :  { %219 = vst.msk [vmem:[#allocation3] sm:$0xff] %vm20_vm0, %v217_v35 }
  0xf4   :  { %v209_v36 = vld [vmem:[#allocation2 + $0x8] sm:$0xff] }
  0xf5   :  { %v218_v37 = vadd.f32 %v253_v33, %v209_v36 }
  0xf7   :  { %220 = vst.msk [vmem:[#allocation3 + $0x8] sm:$0xff] %vm20_vm0, %v218_v37 }
  0xf8   :  { %307 = shalt.err (!%p304_p4)
}
  0xf9   :  { %s320_s28 = smov 128   ;;  %s321_s2 = smov 8  }
  0xfa   :  { %232 = dma.vmem_to_hbm [thread:$0]  %s227_s26, 256, %s417_s3, [#allocation4], %s320_s28, %s320_s28, %s321_s2  }
  0xfb   :  { %316 = dma.done.wait [#allocation4], 256  }
  0xfc   :  { %317 = vsyncadd [#allocation4], 4294967040 }
  0xfd   :  { %236 = vsyncpa [#allocation4], 1 }

// kernel: forward.23
= control target key start
LH: loop header
LB: loop body
LE: loop exit
PB: predicated region body
PF: predicated region fallthrough
CT: control target
= control target key end

     0   :  { %s1081_s12 = smov 0   ;;  %s1083_s13 = smov 0   ;;  %s1269_s0 = inlined_call_operand.vmem [shape: bf16[16,256], index: 0, kind: input, shape index: {}]   ;;  %s1270_s1 = inlined_call_operand.vmem [shape: bf16[256,512], index: 1, kind: input, shape index: {}]   ;;  %s1271_s2 = inlined_call_operand.vmem [shape: f32[1,512], index: 2, kind: input, shape index: {}]   ;;  %s1272_s3 = inlined_call_operand.vmem [shape: bf16[16,512], index: 3, kind: output, shape index: {}]  }
   0x1   :  { %s1085_s14 = smov 0   ;;  %s1087_s15 = smov 0  }
   0x2   :  { %s1089_s16 = smov 0  }
   0x3 LB: > { %s28_s17 = sadd.s32 1, %s1055_s15  ;;  %s873_s18 = sadd.s32 4294967295, %s1059_s16   ;;  %s1059_s16 = sphi %s1089_s16, %s13_s16   ;;  %s1055_s15 = sphi %s1087_s15, %s1277_s15   ;;  %s1051_s14 = sphi %s1085_s14, %s1276_s14   ;;  %s1047_s13 = sphi %s1083_s13, %s1275_s13   ;;  %s1043_s12 = sphi %s1081_s12, %s1274_s12  }
   0x4   : > { %p30_p0 = scmp.ge.s32.totalorder %s28_s17, 2  ;;  %p76_p1 = scmp.ne.s32.totalorder %s1047_s13, %s1043_s12 }
   0x5   : > { %p77_p2 = scmp.eq.s32.totalorder %s1059_s16, 0  ;;  %p134_p4 = scmp.eq.s32.totalorder %s873_s18, 1 }
   0x6   : > { %s1279_s17 = smov (%p30_p0, %s28_s17), 0  ;;  %s69_s20 = sadd.s32 1, %s1047_s13 }
   0x7   : > { %p78_p3 = por %p77_p2, %p76_p1  ;;  %s65_s19 = ssub.s32 %s1055_s15, %s1279_s17 }
   0x8   : > { %p67_p5 = scmp.eq.s32.totalorder %s65_s19, 0  ;;  %p1116_p6 = por %p134_p4, %p76_p1 }
   0x9   : > { %p877_p7 = scmp.ge.s32.totalorder %s1059_s16, 2 }
   0xa   : > { %s1121_s22 = scalar_select %p67_p5, %s1047_s13, %s69_s20  }
   0xb   : > { %171 = sbr.rel (%p877_p7) target bundleno = 36 (0x24), region = 20 }
  0x10   : > { %174 = sbr.rel (!%p78_p3) target bundleno = 36 (0x24), region = 24  ;;  %s176_s23 = sand.u32 (%p78_p3), 1, %s1047_s13  }
  0x11   : > { %s926_s24 = sshll.u32 (%p78_p3), %s1055_s15, 3  ;;  %s878_s25 = sshll.u32 (%p78_p3), %s176_s23, 8 }
  0x12   : > { %s1129_s28 = scalar_lea.vmem (%p78_p3), %s1270_s1, %s926_s24  ;;  %s1134_s29 = scalar_lea.vmem (%p78_p3), [#allocation3], %s878_s25 }
  0x13   : > { %v275_v0 = vld [vmem:[%s1129_s28] sm:$0xff] (%p78_p3)  ;;  %v277_v1 = vld [vmem:[%s1129_s28 + $0x10] sm:$0xff] (%p78_p3) }
  0x14   : > { %v279_v2 = vld [vmem:[%s1129_s28 + $0x20] sm:$0xff] (%p78_p3)  ;;  %276 = vst [vmem:[%s1134_s29] sm:$0xff] (%p78_p3), %v275_v0  ;;  %278 = vst [vmem:[%s1134_s29 + $0x8] sm:$0xff] (%p78_p3), %v277_v1  ;;  %v281_v3 = vld [vmem:[%s1129_s28 + $0x30] sm:$0xff] (%p78_p3) }
  0x15   : > { %280 = vst [vmem:[%s1134_s29 + $0x10] sm:$0xff] %v279_v2  ;;  %v283_v4 = vld [vmem:[%s1129_s28 + $0x40] sm:$0xff]  ;;  %v285_v5 = vld [vmem:[%s1129_s28 + $0x50] sm:$0xff]  ;;  %282 = vst [vmem:[%s1134_s29 + $0x18] sm:$0xff] %v281_v3 }
  0x16   : > { %284 = vst [vmem:[%s1134_s29 + $0x20] sm:$0xff] %v283_v4  ;;  %286 = vst [vmem:[%s1134_s29 + $0x28] sm:$0xff] %v285_v5  ;;  %v287_v6 = vld [vmem:[%s1129_s28 + $0x60] sm:$0xff]  ;;  %v289_v7 = vld [vmem:[%s1129_s28 + $0x70] sm:$0xff] }
  0x17   : > { %v291_v8 = vld [vmem:[%s1129_s28 + $0x80] sm:$0xff]  ;;  %288 = vst [vmem:[%s1134_s29 + $0x30] sm:$0xff] %v287_v6  ;;  %290 = vst [vmem:[%s1134_s29 + $0x38] sm:$0xff] %v289_v7  ;;  %v293_v9 = vld [vmem:[%s1129_s28 + $0x90] sm:$0xff] }
  0x18   : > { %292 = vst [vmem:[%s1134_s29 + $0x40] sm:$0xff] %v291_v8  ;;  %v295_v10 = vld [vmem:[%s1129_s28 + $0xa0] sm:$0xff]  ;;  %v297_v11 = vld [vmem:[%s1129_s28 + $0xb0] sm:$0xff]  ;;  %294 = vst [vmem:[%s1134_s29 + $0x48] sm:$0xff] %v293_v9 }
  0x19   : > { %296 = vst [vmem:[%s1134_s29 + $0x50] sm:$0xff] %v295_v10  ;;  %298 = vst [vmem:[%s1134_s29 + $0x58] sm:$0xff] %v297_v11  ;;  %v299_v12 = vld [vmem:[%s1129_s28 + $0xc0] sm:$0xff]  ;;  %v301_v13 = vld [vmem:[%s1129_s28 + $0xd0] sm:$0xff] }
  0x1a   : > { %v303_v14 = vld [vmem:[%s1129_s28 + $0xe0] sm:$0xff]  ;;  %300 = vst [vmem:[%s1134_s29 + $0x60] sm:$0xff] %v299_v12  ;;  %302 = vst [vmem:[%s1134_s29 + $0x68] sm:$0xff] %v301_v13  ;;  %v305_v15 = vld [vmem:[%s1129_s28 + $0xf0] sm:$0xff] }
  0x1b   : > { %304 = vst [vmem:[%s1134_s29 + $0x70] sm:$0xff] %v303_v14  ;;  %v307_v16 = vld [vmem:[%s1129_s28 + $0x100] sm:$0xff]  ;;  %v309_v17 = vld [vmem:[%s1129_s28 + $0x110] sm:$0xff]  ;;  %306 = vst [vmem:[%s1134_s29 + $0x78] sm:$0xff] %v305_v15 }
  0x1c   : > { %308 = vst [vmem:[%s1134_s29 + $0x80] sm:$0xff] %v307_v16  ;;  %310 = vst [vmem:[%s1134_s29 + $0x88] sm:$0xff] %v309_v17  ;;  %v311_v18 = vld [vmem:[%s1129_s28 + $0x120] sm:$0xff]  ;;  %v313_v19 = vld [vmem:[%s1129_s28 + $0x130] sm:$0xff] }
  0x1d   : > { %v315_v20 = vld [vmem:[%s1129_s28 + $0x140] sm:$0xff]  ;;  %312 = vst [vmem:[%s1134_s29 + $0x90] sm:$0xff] %v311_v18  ;;  %314 = vst [vmem:[%s1134_s29 + $0x98] sm:$0xff] %v313_v19  ;;  %v317_v21 = vld [vmem:[%s1129_s28 + $0x150] sm:$0xff] }
  0x1e   : > { %316 = vst [vmem:[%s1134_s29 + $0xa0] sm:$0xff] %v315_v20  ;;  %v319_v22 = vld [vmem:[%s1129_s28 + $0x160] sm:$0xff]  ;;  %v321_v23 = vld [vmem:[%s1129_s28 + $0x170] sm:$0xff]  ;;  %318 = vst [vmem:[%s1134_s29 + $0xa8] sm:$0xff] %v317_v21 }
  0x1f   : > { %320 = vst [vmem:[%s1134_s29 + $0xb0] sm:$0xff] %v319_v22  ;;  %322 = vst [vmem:[%s1134_s29 + $0xb8] sm:$0xff] %v321_v23  ;;  %v323_v24 = vld [vmem:[%s1129_s28 + $0x180] sm:$0xff]  ;;  %v325_v25 = vld [vmem:[%s1129_s28 + $0x190] sm:$0xff] }
  0x20   : > { %v327_v26 = vld [vmem:[%s1129_s28 + $0x1a0] sm:$0xff]  ;;  %324 = vst [vmem:[%s1134_s29 + $0xc0] sm:$0xff] %v323_v24  ;;  %326 = vst [vmem:[%s1134_s29 + $0xc8] sm:$0xff] %v325_v25  ;;  %v329_v27 = vld [vmem:[%s1129_s28 + $0x1b0] sm:$0xff] }
  0x21   : > { %328 = vst [vmem:[%s1134_s29 + $0xd0] sm:$0xff] %v327_v26  ;;  %v331_v28 = vld [vmem:[%s1129_s28 + $0x1c0] sm:$0xff]  ;;  %v333_v29 = vld [vmem:[%s1129_s28 + $0x1d0] sm:$0xff]  ;;  %330 = vst [vmem:[%s1134_s29 + $0xd8] sm:$0xff] %v329_v27 }
  0x22   : > { %332 = vst [vmem:[%s1134_s29 + $0xe0] sm:$0xff] %v331_v28  ;;  %334 = vst [vmem:[%s1134_s29 + $0xe8] sm:$0xff] %v333_v29  ;;  %v335_v30 = vld [vmem:[%s1129_s28 + $0x1e0] sm:$0xff]  ;;  %v337_v31 = vld [vmem:[%s1129_s28 + $0x1f0] sm:$0xff] }
  0x23   : > { %336 = vst [vmem:[%s1134_s29 + $0xf0] sm:$0xff] %v335_v30  ;;  %338 = vst [vmem:[%s1134_s29 + $0xf8] sm:$0xff] %v337_v31 }
  0x24 PF: > { %p881_p8 = scmp.ge.s32.totalorder %s1059_s16, 1  ;;  %p351_p9 = scmp.lt.s32.totalorder %s1059_s16, 3 }
  0x26   : > { %p352_p10 = pnand %p881_p8, %p351_p9 }
  0x27   : > { %s358_s30 = sand.u32 (!%p352_p10), 1, %s1043_s12   ;;  %s884_s10 = sshll.u32 (!%p352_p10), %s1051_s14, 1 }
  0x28   : > { %355 = sbr.rel (%p352_p10) target bundleno = 322 (0x142), region = 66  ;;  %s882_s4 = sshll.u32 (!%p352_p10), %s358_s30, 8 }
  0x29   : > { %s1205_s7 = scalar_lea.vmem (!%p352_p10), [#allocation3], %s882_s4  ;;  %p409_p11 = scmp.lt.s32.totalorder (!%p352_p10), %s884_s10, 3 }
  0x2a   : > { %s883_s20 = sshll.u32 (!%p352_p10), %s358_s30, 4 }
  0x2b   : > { %s393_s23 = scalar_lea.vmem (!%p352_p10), [#allocation4], %s883_s20 }
  0x2d   : > { %v1020_v32 = vld [vmem:[%s1269_s0 + $0x4] ss:$8 sps:$4 sm:$0xff]   ;;  %v970_v33 = vld [vmem:[%s1205_s7 + $0x74] ss:$8 sps:$4 sm:$0xff]   ;;  %v972_v34 = vld [vmem:[%s1205_s7 + $0x70] ss:$8 sps:$4 sm:$0xff]   ;;  %v691_v2 = vlaneseq }
  0x2e   : > { %663 = vmatprep.mubr.bf16.mxu0 %v1020_v32  ;;  %631 = vmatprep.subr.bf16.mxu0 %v970_v33  ;;  %v973_v35 = vld [vmem:[%s1205_s7 + $0x64] ss:$8 sps:$4 sm:$0xff]   ;;  %v975_v36 = vld [vmem:[%s1205_s7 + $0x60] ss:$8 sps:$4 sm:$0xff]   ;;  %v976_v37 = vld [vmem:[%s1205_s7 + $0x54] ss:$8 sps:$4 sm:$0xff]  }
  0x2f   : > { %632 = vmatpush1.bf16.msra.mxu0 %v972_v34  ;;  %v978_v38 = vld [vmem:[%s1205_s7 + $0x50] ss:$8 sps:$4 sm:$0xff]   ;;  %v979_v39 = vld [vmem:[%s1205_s7 + $0x44] ss:$8 sps:$4 sm:$0xff]   ;;  %v981_v40 = vld [vmem:[%s1205_s7 + $0x40] ss:$8 sps:$4 sm:$0xff]  }
  0x30   : > { %633 = vmatprep.subr.bf16.mxu0 %v973_v35  ;;  %v982_v41 = vld [vmem:[%s1205_s7 + $0x34] ss:$8 sps:$4 sm:$0xff]   ;;  %v984_v42 = vld [vmem:[%s1205_s7 + $0x30] ss:$8 sps:$4 sm:$0xff]   ;;  %v985_v43 = vld [vmem:[%s1205_s7 + $0x24] ss:$8 sps:$4 sm:$0xff]  }
  0x31   : > { %v987_v44 = vld [vmem:[%s1205_s7 + $0x20] ss:$8 sps:$4 sm:$0xff]   ;;  %v988_v45 = vld [vmem:[%s1205_s7 + $0x14] ss:$8 sps:$4 sm:$0xff]   ;;  %v990_v46 = vld [vmem:[%s1205_s7 + $0x10] ss:$8 sps:$4 sm:$0xff]  }
  0x32   : > { %v991_v47 = vld [vmem:[%s1205_s7 + $0x4] ss:$8 sps:$4 sm:$0xff]   ;;  %v993_v48 = vld [vmem:[%s1205_s7] ss:$8 sps:$4 sm:$0xff]   ;;  %v994_v49 = vld [vmem:[%s1205_s7 + $0xf4] ss:$8 sps:$4 sm:$0xff]  }
  0x33   : > { %634 = vmatpush1.bf16.msra.mxu0 %v975_v36  ;;  %v996_v50 = vld [vmem:[%s1205_s7 + $0xf0] ss:$8 sps:$4 sm:$0xff]   ;;  %v997_v51 = vld [vmem:[%s1205_s7 + $0xe4] ss:$8 sps:$4 sm:$0xff]   ;;  %v999_v52 = vld [vmem:[%s1205_s7 + $0xe0] ss:$8 sps:$4 sm:$0xff]  }
  0x34   : > { %635 = vmatprep.subr.bf16.mxu0 %v976_v37  ;;  %v1000_v53 = vld [vmem:[%s1205_s7 + $0xd4] ss:$8 sps:$4 sm:$0xff]   ;;  %v1002_v54 = vld [vmem:[%s1205_s7 + $0xd0] ss:$8 sps:$4 sm:$0xff]   ;;  %v1003_v55 = vld [vmem:[%s1205_s7 + $0xc4] ss:$8 sps:$4 sm:$0xff]  }
  0x35   : > { %v1005_v56 = vld [vmem:[%s1205_s7 + $0xc0] ss:$8 sps:$4 sm:$0xff]   ;;  %v1006_v57 = vld [vmem:[%s1205_s7 + $0xb4] ss:$8 sps:$4 sm:$0xff]   ;;  %v1008_v58 = vld [vmem:[%s1205_s7 + $0xb0] ss:$8 sps:$4 sm:$0xff]  }
  0x36   : > { %v1009_v59 = vld [vmem:[%s1205_s7 + $0xa4] ss:$8 sps:$4 sm:$0xff]   ;;  %v1011_v60 = vld [vmem:[%s1205_s7 + $0xa0] ss:$8 sps:$4 sm:$0xff]   ;;  %v1012_v61 = vld [vmem:[%s1205_s7 + $0x94] ss:$8 sps:$4 sm:$0xff]  }
  0x37   : > { %636 = vmatpush1.bf16.msra.mxu0 %v978_v38  ;;  %v1014_v62 = vld [vmem:[%s1205_s7 + $0x90] ss:$8 sps:$4 sm:$0xff]   ;;  %v1015_v63 = vld [vmem:[%s1205_s7 + $0x84] ss:$8 sps:$4 sm:$0xff]   ;;  %v1017_v0 = vld [vmem:[%s1205_s7 + $0x80] ss:$8 sps:$4 sm:$0xff]  }
  0x38   : > { %637 = vmatprep.subr.bf16.mxu0 %v979_v39  ;;  %v1018_v1 = vld [vmem:[%s1269_s0] ss:$8 sps:$4 sm:$0xff]   ;;  %s1281_s10 = smov (!%p409_p11, %s884_s10), 3  ;;  %v692_v3 = vshrl.u32 %v691_v2, 7  ;;  %s929_s24 = sshll.u32 (%p1116_p6), %s1051_s14, 3 }
  0x39   : > { %s411_s19 = scalar_lea.vmem %s1271_s2, %s1281_s10  ;;  %s731_s26 = scalar_lea.vmem (%p1116_p6), %s1272_s3, %s929_s24 }
  0x3a   : > { %v693_v4 = vsub.s32 0, %v692_v3  ;;  %v697_v5 = vsub.s32 1, %v692_v3  ;;  %v689_v6 = vld [vmem:[%s411_s19] sm:$0x3] }
  0x3b   : > { %638 = vmatpush1.bf16.msra.mxu0 %v981_v40 }
  0x3c   : > { %639 = vmatprep.subr.bf16.mxu0 %v982_v41  ;;  %v694_v7 = vrot.slane %v689_v6, %v693_v4  ;;  %v698_v8 = vrot.slane %v689_v6, %v697_v5 }
  0x3f   : > { %640 = vmatpush1.bf16.msra.mxu0 %v984_v42 }
  0x40   : > { %641 = vmatprep.subr.bf16.mxu0 %v985_v43 }
  0x43   : > { %642 = vmatpush1.bf16.msra.mxu0 %v987_v44 }
  0x44   : > { %643 = vmatprep.subr.bf16.mxu0 %v988_v45 }
  0x47   : > { %644 = vmatpush1.bf16.msra.mxu0 %v990_v46 }
  0x48   : > { %645 = vmatprep.subr.bf16.mxu0 %v991_v47 }
  0x4b   : > { %646 = vmatpush1.bf16.msra.mxu0 %v993_v48 }
  0x4c   : > { %647 = vmatprep.subr.bf16.mxu0 %v994_v49 }
  0x4f   : > { %648 = vmatpush2.bf16.msra.mxu0 %v996_v50 }
  0x50   : > { %649 = vmatprep.subr.bf16.mxu0 %v997_v51 }
  0x53   : > { %650 = vmatpush2.bf16.msra.mxu0 %v999_v52 }
  0x54   : > { %651 = vmatprep.subr.bf16.mxu0 %v1000_v53 }
  0x57   : > { %652 = vmatpush2.bf16.msra.mxu0 %v1002_v54 }
  0x58   : > { %653 = vmatprep.subr.bf16.mxu0 %v1003_v55 }
  0x5b   : > { %654 = vmatpush2.bf16.msra.mxu0 %v1005_v56 }
  0x5c   : > { %655 = vmatprep.subr.bf16.mxu0 %v1006_v57 }
  0x5f   : > { %656 = vmatpush2.bf16.msra.mxu0 %v1008_v58 }
  0x60   : > { %657 = vmatprep.subr.bf16.mxu0 %v1009_v59 }
  0x63   : > { %658 = vmatpush2.bf16.msra.mxu0 %v1011_v60 }
  0x64   : > { %659 = vmatprep.subr.bf16.mxu0 %v1012_v61 }
  0x67   : > { %660 = vmatpush2.bf16.msra.mxu0 %v1014_v62 }
  0x68   : > { %661 = vmatprep.subr.bf16.mxu0 %v1015_v63 }
  0x6b   : > { %662 = vmatpush2.bf16.msra.mxu0 %v1017_v0 }
  0x6e   : > { %664 = vmatmul.mubr.bf16.vlgmr.msra.gmra.mxu0 %v1018_v1 }
 0x12e   : > { %v665_v9 = vpop.f32.mrf.mxu0 }
 0x12f   : > { %v701_v11 = vadd.f32 %v694_v7, %v665_v9 }
 0x130   : > { %v667_v10 = vpop.f32.mrf.mxu0 }
 0x131   : > { %v702_v12 = vadd.f32 %v698_v8, %v667_v10 }
 0x132   : > { %v669_v13 = vpop.f32.mrf.mxu0 }
 0x133   : > { %v927_v14 = vpack.c.bf16 %v702_v12, %v701_v11  ;;  %v703_v16 = vadd.f32 %v694_v7, %v669_v13 }
 0x134   : > { %v671_v15 = vpop.f32.mrf.mxu0 }
 0x135   : > { %717 = vst [vmem:[%s393_s23] sm:$0xff] %v927_v14  ;;  %v704_v17 = vadd.f32 %v698_v8, %v671_v15  ;;  %725 = sbr.rel (!%p1116_p6) target bundleno = 322 (0x142), region = 82 }
 0x137   : > { %v928_v18 = vpack.c.bf16 %v704_v17, %v703_v16 }
 0x139   : > { %718 = vst [vmem:[%s393_s23 + $0x8] sm:$0xff] %v928_v18 }
 0x13c   : > { %v762_v19 = vld [vmem:[%s393_s23] sm:$0xff] }
 0x13d   : > { %763 = vst [vmem:[%s731_s26] sm:$0xff] %v762_v19 }
 0x140   : > { %v764_v20 = vld [vmem:[%s393_s23 + $0x8] sm:$0xff] }
 0x141   : > { %765 = vst [vmem:[%s731_s26 + $0x10] sm:$0xff] %v764_v20 }
 0x142 PF: > { %s13_s16 = sadd.s32 1, %s1059_s16   ;;  %s1274_s12 = smov %s1047_s13 }
 0x143   : > { %p10_p12 = scmp.ge.s32.totalorder %s13_s16, 4   ;;  %s1275_s13 = smov %s1121_s22 }
 0x144   : > { %s1276_s14 = smov %s1055_s15  ;;  %s1277_s15 = smov %s1279_s17 }
 0x145   :  { %12 = sbr.rel (!%p10_p12) target bundleno = 3 (0x3), region = 157 }

// kernel: forward.19
= control target key start
LH: loop header
LB: loop body
LE: loop exit
PB: predicated region body
PF: predicated region fallthrough
CT: control target
= control target key end

     0   :  { %s1466_s27 = smov 0   ;;  %s1468_s28 = smov 0   ;;  %s1653_s0 = inlined_call_operand.vmem [shape: bf16[2,8,256], index: 0, kind: input, shape index: {}]   ;;  %s1654_s1 = inlined_call_operand.vmem [shape: bf16[2,8,256], index: 1, kind: input, shape index: {}]   ;;  %s1655_s2 = inlined_call_operand.vmem [shape: bf16[2,8,256], index: 2, kind: input, shape index: {}]   ;;  %s1656_s3 = inlined_call_operand.vmem [shape: bf16[256,256], index: 3, kind: input, shape index: {}]   ;;  %s1657_s4 = inlined_call_operand.vmem [shape: f32[1,256], index: 4, kind: input, shape index: {}]   ;;  %s1658_s5 = inlined_call_operand.vmem [shape: f32[2,8,256], index: 5, kind: input, shape index: {}]   ;;  %s1659_s6 = inlined_call_operand.vmem [shape: f32[1,256], index: 6, kind: input, shape index: {}]   ;;  %s1660_s7 = inlined_call_operand.vmem [shape: f32[1,256], index: 7, kind: input, shape index: {}]   ;;  %s1661_s8 = inlined_call_operand.vmem [shape: f32[2,8,256], index: 8, kind: output, shape index: {}]  }
   0x1   :  { %s1470_s29 = smov 0  }
   0x2 LB: > { %s37_s30 = sadd.s32 1, %s1411_s28  ;;  %p1212_p0 = scmp.ge.s32.totalorder %s1415_s29, 1  ;;  %s1415_s29 = sphi %s1470_s29, %s18_s29   ;;  %s1411_s28 = sphi %s1468_s28, %s1663_s28   ;;  %s1407_s27 = sphi %s1466_s27, %s1662_s27  }
   0x3   : > { %p39_p1 = scmp.ge.s32.totalorder %s37_s30, 2  ;;  %p337_p2 = scmp.lt.s32.totalorder %s1415_s29, 3 }
   0x5   : > { %s1665_s30 = smov (%p39_p1, %s37_s30), 0  ;;  %p338_p3 = pnand %p1212_p0, %p337_p2 }
   0x6   : > { %p406_p4 = scmp.lt.s32.totalorder (!%p338_p3), %s1407_s27, 1 }
   0x7   : > { %341 = sbr.rel (%p338_p3) target bundleno = 1789 (0x6fd), region = 52 }
   0xc   : > { %v1417_v0 = vmov 0.0   ;;  %vm1418_vm0 = vmmov 0   ;;  %s1667_s27 = smov (!%p406_p4, %s1407_s27), 1  ;;  %vm456_vm1 = vcmask 7168   ;;  %v1419_v3 = vmov -1e+30  }
   0xd   : > { %1275 = vmatprep.subr.bf16.mxu0 %v1417_v0  ;;  %1277 = vmatprep.mubr.msk.bf16.mxu0 %vm1418_vm0, %v1417_v0  ;;  %s1488_s9 = sshll.u32 %s1667_s27, 3  ;;  %457 = vst.msk [vmem:[#allocation2] sm:$0xff] %vm456_vm1, %v1419_v3  ;;  %458 = vst.msk [vmem:[#allocation2 + $0x8] sm:$0xff] %vm456_vm1, %v1419_v3  ;;  %vm507_vm2 = vcmask 64512   ;;  %v1420_v9 = vmov 0   ;;  %vm542_vm3 = vcmask 1043456  }
   0xe   : > { %s423_s12 = scalar_lea.vmem %s1654_s1, %s1488_s9  ;;  %s414_s15 = scalar_lea.vmem %s1653_s0, %s1488_s9  ;;  %459 = vst.msk [vmem:[#allocation3] sm:$0xff] %vm456_vm1, %v1417_v0  ;;  %460 = vst.msk [vmem:[#allocation3 + $0x8] sm:$0xff] %vm456_vm1, %v1417_v0  ;;  %1327 = vset.pattern.permute.xlu0 %v1420_v9  ;;  %1328 = vset.pattern.permute.xlu1 %v1420_v9  ;;  %v1331_v56 = vld [vmem:[%s1656_s3 + $0x74] ss:$8 sps:$4 sm:$0xff]   ;;  %v1333_v57 = vld [vmem:[%s1656_s3 + $0x70] ss:$8 sps:$4 sm:$0xff]  }
   0xf   : > { %v464_v1 = vld [vmem:[%s423_s12] sm:$0xff]  ;;  %s432_s18 = scalar_lea.vmem %s1655_s2, %s1488_s9  ;;  %958 = vmatprep.subr.bf16.mxu1 %v1331_v56  ;;  %v1337_v60 = vld [vmem:[%s1656_s3 + $0x54] ss:$8 sps:$4 sm:$0xff]   ;;  %v1339_v61 = vld [vmem:[%s1656_s3 + $0x50] ss:$8 sps:$4 sm:$0xff]   ;;  %s1265_s13 = sshll.u32 %s1667_s27, 4 }
  0x10   : > { %1276 = vmatpush3.bf16.xpose.msra.mxu0 %v464_v1  ;;  %v463_v2 = vld [vmem:[%s414_s15] sm:$0xff]  ;;  %v1225_v20 = vcombine.high %v464_v1, %v464_v1  ;;  %959 = vmatpush1.bf16.msra.mxu1 %v1333_v57  ;;  %v1345_v1 = vld [vmem:[%s1656_s3 + $0x30] ss:$8 sps:$4 sm:$0xff]   ;;  %s441_s16 = scalar_lea.vmem %s1658_s5, %s1265_s13  ;;  %s450_s23 = scalar_lea.vmem %s1661_s8, %s1265_s13 }
  0x11   : > { %1281 = vmatprep.subr.bf16.mxu0 %v1417_v0  ;;  %v465_v14 = vld [vmem:[%s432_s18] sm:$0xff]  ;;  %v1224_v23 = vcombine.high %v463_v2, %v463_v2  ;;  %v1357_v9 = vld [vmem:[%s1656_s3 + $0xf0] ss:$8 sps:$4 sm:$0xff]  }
  0x12   : > { %v544_v15 = vsel %vm542_vm3, %v465_v14, 0  ;;  %v1226_v46 = vcombine.high %v465_v14, %v465_v14  ;;  %v1334_v58 = vld [vmem:[%s1656_s3 + $0x64] ss:$8 sps:$4 sm:$0xff]   ;;  %v1336_v59 = vld [vmem:[%s1656_s3 + $0x60] ss:$8 sps:$4 sm:$0xff]  }
  0x13   : > { %960 = vmatprep.subr.bf16.mxu1 %v1334_v58  ;;  %v1340_v62 = vld [vmem:[%s1656_s3 + $0x44] ss:$8 sps:$4 sm:$0xff]   ;;  %v1342_v63 = vld [vmem:[%s1656_s3 + $0x40] ss:$8 sps:$4 sm:$0xff]  }
  0x14   : > { %v506_v10 = vld [vmem:[#allocation2] sm:$0xff]  ;;  %v638_v42 = vld [vmem:[#allocation2 + $0x8] sm:$0xff]  ;;  %v678_v47 = vsel %vm542_vm3, %v1226_v46, 0  ;;  %961 = vmatpush1.bf16.msra.mxu1 %v1336_v59 }
  0x15   : > { %v523_v26 = vld [vmem:[#allocation3] sm:$0xff]  ;;  %962 = vmatprep.subr.bf16.mxu1 %v1337_v60  ;;  %v1348_v3 = vld [vmem:[%s1656_s3 + $0x20] ss:$8 sps:$4 sm:$0xff]   ;;  %v1364_v14 = vld [vmem:[%s1656_s3 + $0xc4] ss:$8 sps:$4 sm:$0xff]  }
  0x16   : > { %v999_v56 = vld [vmem:[%s441_s16] sm:$0xff]  ;;  %v1000_v58 = vld [vmem:[%s441_s16 + $0x8] sm:$0xff] }
  0x17   : > { %1278 = vmatmul.mubr.bf16.vlgmr.msra.gmra.mxu0 %v463_v2  ;;  %v1346_v2 = vld [vmem:[%s1656_s3 + $0x24] ss:$8 sps:$4 sm:$0xff]  }
  0x18   : > { %1283 = vmatprep.mubr.msk.bf16.mxu0 %vm1418_vm0, %v1417_v0  ;;  %1282 = vmatpush3.bf16.msra.mxu0 %v544_v15  ;;  %v1366_v15 = vld [vmem:[%s1656_s3 + $0xc0] ss:$8 sps:$4 sm:$0xff]  }
  0x19   : > { %1287 = vmatprep.subr.bf16.mxu0 %v1417_v0  ;;  %963 = vmatpush1.bf16.msra.mxu1 %v1339_v61 }
  0x1a   : > { %964 = vmatprep.subr.bf16.mxu1 %v1340_v62 }
  0x1d   : > { %965 = vmatpush1.bf16.msra.mxu1 %v1342_v63 }
  0xd7   : > { %v500_v4 = vpop.f32.mrf.mxu0 }
  0xd8   : > { %v508_v5 = vsel %vm507_vm2, %v500_v4, -inf }
  0xd9   : > { %509 = vmax.xlane.f32.xlu0 %v508_v5  ;;  %v1279_v6 = vpop.f32.mrf.mxu0  ;;  %v1351_v5 = vld [vmem:[%s1656_s3 + $0x10] ss:$8 sps:$4 sm:$0xff]  }
  0xda   : > { %v1352_v6 = vld [vmem:[%s1656_s3 + $0x4] ss:$8 sps:$4 sm:$0xff]  }
  0xdb   : > { %v503_v7 = vpop.f32.mrf.mxu0 }
  0xdc   : > { %v1354_v7 = vld [vmem:[%s1656_s3] ss:$8 sps:$4 sm:$0xff]  }
  0xdd   : > { %v1280_v8 = vpop.f32.mrf.mxu0 }
  0xde   : > { %v1355_v8 = vld [vmem:[%s1656_s3 + $0xf4] ss:$8 sps:$4 sm:$0xff]  }
 0x162   : > { %v510_v11 = vpop.xlane.xlu0 %509 }
 0x163   : > { %v511_v12 = vmax.f32 %v506_v10, %v510_v11  ;;  %v1360_v11 = vld [vmem:[%s1656_s3 + $0xe0] ss:$8 sps:$4 sm:$0xff]  }
 0x165   : > { %v512_v13 = vsub.f32 %v506_v10, %v511_v12  ;;  %588 = vst.msk [vmem:[#allocation2] sm:$0xff] %vm456_vm1, %v511_v12  ;;  %517 = vperm.xlu0 %1327, %v511_v12   ;;  %v1358_v10 = vld [vmem:[%s1656_s3 + $0xe4] ss:$8 sps:$4 sm:$0xff]   ;;  %v1361_v12 = vld [vmem:[%s1656_s3 + $0xd4] ss:$8 sps:$4 sm:$0xff]  }
 0x167   : > { %v513_v24 = vmul.f32 1.442695, %v512_v13  ;;  %v1363_v13 = vld [vmem:[%s1656_s3 + $0xd0] ss:$8 sps:$4 sm:$0xff]  }
 0x1e0   : > { %v518_v16 = vpop.permute.xlu0 %517 }
 0x1e1   : > { %v520_v17 = vsub.f32 %v500_v4, %v518_v16  ;;  %v1349_v4 = vld [vmem:[%s1656_s3 + $0x14] ss:$8 sps:$4 sm:$0xff]  }
 0x1e2   : > { %v1367_v16 = vld [vmem:[%s1656_s3 + $0xb4] ss:$8 sps:$4 sm:$0xff]  }
 0x1e3   : > { %v521_v18 = vmul.f32 1.442695, %v520_v17  ;;  %v1369_v17 = vld [vmem:[%s1656_s3 + $0xb0] ss:$8 sps:$4 sm:$0xff]  }
 0x1e5   : > { %1379 = vpow2.f32 %v521_v18  ;;  %v1370_v18 = vld [vmem:[%s1656_s3 + $0xa4] ss:$8 sps:$4 sm:$0xff]  }
 0x1e6   : > { %1381 = vpow2.f32 %v513_v24 }
 0x1f2   : > { %v1380_v19 = vpop.eup %1379 }
 0x1f3   : > { %v525_v21 = vsel %vm507_vm2, %v1380_v19, 0.0  ;;  %v538_v22 = vpack.c.bf16 %v1380_v19, %v1380_v19  ;;  %v1382_v25 = vpop.eup %1381  ;;  %v1372_v19 = vld [vmem:[%s1656_s3 + $0xa0] ss:$8 sps:$4 sm:$0xff]  }
 0x1f4   : > { %526 = vadd.xlane.f32.xlu0 %v525_v21  ;;  %v524_v27 = vmul.f32 %v1382_v25, %v523_v26  ;;  %v1375_v21 = vld [vmem:[%s1656_s3 + $0x90] ss:$8 sps:$4 sm:$0xff]  }
 0x1f5   : > { %1284 = vmatmul.mubr.msk.bf16.vlgmr.msra.gmra.mxu0 %vm507_vm2, %v538_v22  ;;  %v655_v22 = vld [vmem:[#allocation3 + $0x8] sm:$0xff] }
 0x1f6   : > { %1288 = vmatpush3.bf16.xpose.msra.mxu0 %v1225_v20  ;;  %1289 = vmatprep.mubr.msk.bf16.mxu0 %vm1418_vm0, %v1417_v0  ;;  %v1373_v20 = vld [vmem:[%s1656_s3 + $0x94] ss:$8 sps:$4 sm:$0xff]  }
 0x1f7   : > { %1293 = vmatprep.subr.bf16.mxu0 %v1417_v0 }
 0x1fd   : > { %1290 = vmatmul.mubr.bf16.vlgmr.msra.gmra.mxu0 %v1224_v23 }
 0x1fe   : > { %1295 = vmatprep.mubr.msk.bf16.mxu0 %vm1418_vm0, %v1417_v0  ;;  %1294 = vmatpush3.bf16.msra.mxu0 %v678_v47  ;;  %v1343_v0 = vld [vmem:[%s1656_s3 + $0x34] ss:$8 sps:$4 sm:$0xff]  }
 0x1ff   : > { %966 = vmatprep.subr.bf16.mxu1 %v1343_v0 }
 0x200   : > { %967 = vmatpush1.bf16.msra.mxu1 %v1345_v1 }
 0x201   : > { %968 = vmatprep.subr.bf16.mxu1 %v1346_v2 }
 0x204   : > { %969 = vmatpush1.bf16.msra.mxu1 %v1348_v3 }
 0x205   : > { %970 = vmatprep.subr.bf16.mxu1 %v1349_v4 }
 0x208   : > { %971 = vmatpush1.bf16.msra.mxu1 %v1351_v5 }
 0x209   : > { %972 = vmatprep.subr.bf16.mxu1 %v1352_v6 }
 0x20c   : > { %973 = vmatpush1.bf16.msra.mxu1 %v1354_v7 }
 0x20d   : > { %974 = vmatprep.subr.bf16.mxu1 %v1355_v8 }
 0x210   : > { %975 = vmatpush2.bf16.msra.mxu1 %v1357_v9 }
 0x211   : > { %976 = vmatprep.subr.bf16.mxu1 %v1358_v10 }
 0x214   : > { %977 = vmatpush2.bf16.msra.mxu1 %v1360_v11  ;;  %v1020_v11 = vld [vmem:[%s1659_s6] sm:$0x3] }
 0x215   : > { %978 = vmatprep.subr.bf16.mxu1 %v1361_v12  ;;  %v1034_v12 = vld [vmem:[%s1660_s7] sm:$0x3] }
 0x218   : > { %979 = vmatpush2.bf16.msra.mxu1 %v1363_v13 }
 0x219   : > { %980 = vmatprep.subr.bf16.mxu1 %v1364_v14 }
 0x21c   : > { %981 = vmatpush2.bf16.msra.mxu1 %v1366_v15 }
 0x21d   : > { %982 = vmatprep.subr.bf16.mxu1 %v1367_v16 }
 0x220   : > { %983 = vmatpush2.bf16.msra.mxu1 %v1369_v17 }
 0x221   : > { %984 = vmatprep.subr.bf16.mxu1 %v1370_v18 }
 0x224   : > { %985 = vmatpush2.bf16.msra.mxu1 %v1372_v19 }
 0x225   : > { %986 = vmatprep.subr.bf16.mxu1 %v1373_v20 }
 0x228   : > { %987 = vmatpush2.bf16.msra.mxu1 %v1375_v21 }
 0x27d   : > { %v527_v28 = vpop.xlane.xlu0 %526 }
 0x27e   : > { %v528_v29 = vadd.f32 %v527_v28, %v524_v27  ;;  %v1376_v28 = vld [vmem:[%s1656_s3 + $0x84] ss:$8 sps:$4 sm:$0xff]  }
 0x27f   : > { %988 = vmatprep.subr.bf16.mxu1 %v1376_v28 }
 0x280   : > { %530 = vst.msk [vmem:[#allocation3] sm:$0xff] %vm456_vm1, %v528_v29  ;;  %v1378_v29 = vld [vmem:[%s1656_s3 + $0x80] ss:$8 sps:$4 sm:$0xff]  }
 0x281   : > { %989 = vmatpush2.bf16.msra.mxu1 %v1378_v29 }
 0x287   : > { %v726_v30 = vld [vmem:[#allocation3] sm:$0xff] }
 0x288   : > { %vm727_vm4 = vcmp.eq.f32.partialorder %v726_v30, 0.0 }
 0x289   : > { %v728_v31 = vsel %vm727_vm4, 1.0, %v726_v30 }
 0x28a   : > { %1383 = vrcp.f32 %v728_v31 }
 0x297   : > { %v1384_v32 = vpop.eup %1383 }
 0x298   : > { %733 = vperm.xlu0 %1327, %v1384_v32  }
 0x2b5   : > { %v1515_v33 = vpop.f32.mrf.mxu0 }
 0x2b7   : > { %v1285_v34 = vpop.f32.mrf.mxu0 }
 0x2b9   : > { %v583_v35 = vpop.f32.mrf.mxu0 }
 0x2bb   : > { %v1286_v36 = vpop.f32.mrf.mxu0 }
 0x2bd   : > { %v631_v37 = vpop.f32.mrf.mxu0 }
 0x2be   : > { %v639_v38 = vsel %vm507_vm2, %v631_v37, -inf }
 0x2bf   : > { %640 = vmax.xlane.f32.xlu1 %v639_v38  ;;  %v1291_v39 = vpop.f32.mrf.mxu0 }
 0x2c1   : > { %v634_v40 = vpop.f32.mrf.mxu0 }
 0x2c3   : > { %v1292_v41 = vpop.f32.mrf.mxu0 }
 0x313   : > { %v734_v41 = vpop.permute.xlu0 %733 }
 0x348   : > { %v641_v43 = vpop.xlane.xlu1 %640 }
 0x349   : > { %v642_v44 = vmax.f32 %v638_v42, %v641_v43 }
 0x34b   : > { %v643_v45 = vsub.f32 %v638_v42, %v642_v44  ;;  %722 = vst.msk [vmem:[#allocation2 + $0x8] sm:$0xff] %vm456_vm1, %v642_v44  ;;  %648 = vperm.xlu1 %1328, %v642_v44  }
 0x34d   : > { %v644_v52 = vmul.f32 1.442695, %v643_v45 }
 0x3c6   : > { %v649_v48 = vpop.permute.xlu1 %648 }
 0x3c7   : > { %v651_v49 = vsub.f32 %v631_v37, %v649_v48  ;;  %v788_v48 = vlaneseq }
 0x3c9   : > { %v652_v50 = vmul.f32 1.442695, %v651_v49  ;;  %v789_v49 = vshrl.u32 %v788_v48, 7 }
 0x3cb   : > { %1385 = vpow2.f32 %v652_v50  ;;  %v790_v50 = vsub.s32 0, %v789_v49 }
 0x3cc   : > { %1387 = vpow2.f32 %v644_v52 }
 0x3cd   : > { %v1025_v13 = vrot.slane %v1020_v11, %v790_v50  ;;  %v1039_v16 = vrot.slane %v1034_v12, %v790_v50 }
 0x3d8   : > { %v1386_v51 = vpop.eup %1385 }
 0x3d9   : > { %v657_v53 = vsel %vm507_vm2, %v1386_v51, 0.0  ;;  %v670_v54 = vpack.c.bf16 %v1386_v51, %v1386_v51  ;;  %v1522_v55 = vpop.eup %1387  ;;  %v786_v51 = vld [vmem:[%s1657_s4] sm:$0x3] }
 0x3da   : > { %658 = vadd.xlane.f32.xlu1 %v657_v53  ;;  %v656_v23 = vmul.f32 %v1522_v55, %v655_v22  ;;  %v791_v52 = vrot.slane %v786_v51, %v790_v50 }
 0x3db   : > { %1296 = vmatmul.mubr.msk.bf16.vlgmr.msra.gmra.mxu0 %vm507_vm2, %v670_v54 }
 0x3eb   : > { %666 = vperm.xlu1 %1328, %v1522_v55  }
 0x3ef   : > { %534 = vperm.xlu1 %1328, %v1382_v25  }
 0x463   : > { %v659_v24 = vpop.xlane.xlu1 %658 }
 0x464   : > { %v660_v25 = vadd.f32 %v659_v24, %v656_v23 }
 0x466   : > { %661 = vst.msk [vmem:[#allocation3 + $0x8] sm:$0xff] %vm456_vm1, %v660_v25 }
 0x467   : > { %v667_v36 = vpop.permute.xlu1 %666 }
 0x468   : > { %v669_v40 = vmul.f32 0.0, %v667_v36 }
 0x46b   : > { %v535_v37 = vpop.permute.xlu1 %534 }
 0x46c   : > { %v537_v38 = vmul.f32 0.0, %v535_v37 }
 0x46d   : > { %v738_v26 = vld [vmem:[#allocation3 + $0x8] sm:$0xff] }
 0x46e   : > { %vm739_vm5 = vcmp.eq.f32.partialorder %v738_v26, 0.0  ;;  %v586_v39 = vadd.f32 %v1515_v33, %v537_v38  ;;  %v794_v33 = vsub.s32 1, %v789_v49 }
 0x46f   : > { %v740_v27 = vsel %vm739_vm5, 1.0, %v738_v26 }
 0x470   : > { %1389 = vrcp.f32 %v740_v27  ;;  %v736_v44 = vmul.f32 %v734_v41, %v586_v39  ;;  %v795_v53 = vrot.slane %v786_v51, %v794_v33  ;;  %v1029_v14 = vrot.slane %v1020_v11, %v794_v33 }
 0x471   : > { %v1043_v17 = vrot.slane %v1034_v12, %v794_v33 }
 0x472   : > { %v752_v47 = vpack.c.bf16 %v736_v44, %v736_v44 }
 0x47d   : > { %v1390_v30 = vpop.eup %1389 }
 0x47e   : > { %745 = vperm.xlu1 %1328, %v1390_v30  }
 0x49b   : > { %v714_v31 = vpop.f32.mrf.mxu0 }
 0x49c   : > { %v720_v42 = vadd.f32 %v714_v31, %v669_v40 }
 0x49d   : > { %v1297_v32 = vpop.f32.mrf.mxu0 }
 0x49f   : > { %v717_v34 = vpop.f32.mrf.mxu0 }
 0x4a1   : > { %v1298_v35 = vpop.f32.mrf.mxu0 }
 0x4f9   : > { %v746_v43 = vpop.permute.xlu1 %745 }
 0x4fa   : > { %v748_v45 = vmul.f32 %v746_v43, %v720_v42 }
 0x4fc   : > { %v753_v46 = vpack.c.bf16 %v748_v45, %v748_v45 }
 0x4fe   : > { %990 = vmatprep.mubr.bf16.mxu1 %v753_v46 }
 0x4ff   : > { %991 = vmatmul.mubr.bf16.vlgmr.msra.gmra.mxu1 %v752_v47 }
 0x5bf   : > { %v992_v54 = vpop.f32.mrf.mxu1 }
 0x5c0   : > { %v993_v55 = vadd.f32 %v992_v54, %v791_v52 }
 0x5c1   : > { %v994_v57 = vpop.f32.mrf.mxu1 }
 0x5c2   : > { %v995_v59 = vadd.f32 %v994_v57, %v795_v53  ;;  %v1001_v61 = vadd.f32 %v999_v56, %v993_v55 }
 0x5c3   : > { %v996_v60 = vpop.f32.mrf.mxu1 }
 0x5c4   : > { %v1002_v62 = vadd.f32 %v1000_v58, %v995_v59 }
 0x5c5   : > { %v997_v63 = vpop.f32.mrf.mxu1 }
 0x5c6   : > { %v1003_v0 = vadd.f32 %v1002_v62, %v1001_v61 }
 0x5c8   : > { %1004 = vadd.xlane.f32.xlu1 %v1003_v0 }
 0x651   : > { %v1005_v1 = vpop.xlane.xlu1 %1004 }
 0x652   : > { %v1007_v2 = vmul.f32 0.00390625, %v1005_v1 }
 0x654   : > { %v1008_v3 = vsub.f32 %v1001_v61, %v1007_v2  ;;  %v1009_v4 = vsub.f32 %v1002_v62, %v1007_v2 }
 0x656   : > { %v1010_v5 = vmul.f32 %v1008_v3, %v1008_v3  ;;  %v1011_v6 = vmul.f32 %v1009_v4, %v1009_v4 }
 0x658   : > { %v1012_v7 = vadd.f32 %v1011_v6, %v1010_v5 }
 0x65a   : > { %1013 = vadd.xlane.f32.xlu0 %v1012_v7 }
 0x6e3   : > { %v1014_v8 = vpop.xlane.xlu0 %1013 }
 0x6e4   : > { %v1015_v9 = vmul.f32 0.00390625, %v1014_v8 }
 0x6e6   : > { %v1016_v10 = vadd.f32 1e-05, %v1015_v9 }
 0x6e8   : > { %1391 = vrsqrt.f32 %v1016_v10 }
 0x6f5   : > { %v1392_v15 = vpop.eup %1391 }
 0x6f6   : > { %v1018_v18 = vmul.f32 %v1392_v15, %v1008_v3  ;;  %v1019_v19 = vmul.f32 %v1392_v15, %v1009_v4 }
 0x6f8   : > { %v1032_v20 = vmul.f32 %v1025_v13, %v1018_v18  ;;  %v1033_v21 = vmul.f32 %v1029_v14, %v1019_v19 }
 0x6fa   : > { %v1046_v22 = vadd.f32 %v1039_v16, %v1032_v20  ;;  %v1047_v23 = vadd.f32 %v1043_v17, %v1033_v21 }
 0x6fc   : > { %1048 = vst [vmem:[%s450_s23] sm:$0xff] %v1046_v22  ;;  %1049 = vst [vmem:[%s450_s23 + $0x8] sm:$0xff] %v1047_v23 }
 0x6fd PF: > { %s18_s29 = sadd.s32 1, %s1415_s29   ;;  %s1662_s27 = smov %s1411_s28 }
 0x6fe   : > { %p15_p5 = scmp.ge.s32.totalorder %s18_s29, 4   ;;  %s1663_s28 = smov %s1665_s30 }
 0x700   :  { %17 = sbr.rel (!%p15_p5) target bundleno = 2 (0x2), region = 102 }

// kernel: forward.20
= control target key start
LH: loop header
LB: loop body
LE: loop exit
PB: predicated region body
PF: predicated region fallthrough
CT: control target
= control target key end

     0   :  { %s1907_s1 = inlined_call_operand.vmem [shape: bf16[256,512], index: 1, kind: input, shape index: {}]   ;;  %s1908_s0 = inlined_call_operand.vmem [shape: f32[16,256], index: 0, kind: input, shape index: {}]   ;;  %s1909_s3 = inlined_call_operand.vmem [shape: bf16[512,256], index: 3, kind: input, shape index: {}]   ;;  %s1910_s2 = inlined_call_operand.vmem [shape: f32[1,512], index: 2, kind: input, shape index: {}]   ;;  %s1911_s4 = inlined_call_operand.vmem [shape: f32[1,256], index: 4, kind: input, shape index: {}]   ;;  %s1912_s5 = inlined_call_operand.vmem [shape: f32[1,256], index: 5, kind: input, shape index: {}]   ;;  %s1913_s6 = inlined_call_operand.vmem [shape: f32[1,256], index: 6, kind: input, shape index: {}]   ;;  %s1914_s7 = inlined_call_operand.vmem [shape: f32[16,256], index: 7, kind: output, shape index: {}]  }
   0x1   :  { %v1223_v0 = vld [vmem:[%s1907_s1 + $0xe4] ss:$16 sps:$4 sm:$0xff]   ;;  %v1225_v1 = vld [vmem:[%s1907_s1 + $0xec] ss:$16 sps:$4 sm:$0xff]   ;;  %v1227_v2 = vld [vmem:[%s1907_s1 + $0xe0] ss:$16 sps:$4 sm:$0xff]  }
   0x2   :  { %438 = vmatprep.subr.bf16.mxu0 %v1223_v0  ;;  %v1228_v3 = vld [vmem:[%s1907_s1 + $0xe8] ss:$16 sps:$4 sm:$0xff]   ;;  %481 = vmatprep.subr.bf16.mxu1 %v1225_v1  ;;  %v1229_v4 = vld [vmem:[%s1907_s1 + $0xc4] ss:$16 sps:$4 sm:$0xff]   ;;  %v1231_v5 = vld [vmem:[%s1907_s1 + $0xcc] ss:$16 sps:$4 sm:$0xff]  }
   0x3   :  { %439 = vmatpush1.bf16.msra.mxu0 %v1227_v2  ;;  %482 = vmatpush1.bf16.msra.mxu1 %v1228_v3  ;;  %v1233_v6 = vld [vmem:[%s1907_s1 + $0xc0] ss:$16 sps:$4 sm:$0xff]   ;;  %v1234_v7 = vld [vmem:[%s1907_s1 + $0xc8] ss:$16 sps:$4 sm:$0xff]   ;;  %v1235_v8 = vld [vmem:[%s1907_s1 + $0xa4] ss:$16 sps:$4 sm:$0xff]  }
   0x4   :  { %440 = vmatprep.subr.bf16.mxu0 %v1229_v4  ;;  %483 = vmatprep.subr.bf16.mxu1 %v1231_v5  ;;  %v1237_v9 = vld [vmem:[%s1907_s1 + $0xac] ss:$16 sps:$4 sm:$0xff]   ;;  %v1239_v10 = vld [vmem:[%s1907_s1 + $0xa0] ss:$16 sps:$4 sm:$0xff]   ;;  %v1240_v11 = vld [vmem:[%s1907_s1 + $0xa8] ss:$16 sps:$4 sm:$0xff]  }
   0x5   :  { %v1241_v12 = vld [vmem:[%s1907_s1 + $0x84] ss:$16 sps:$4 sm:$0xff]   ;;  %v1243_v13 = vld [vmem:[%s1907_s1 + $0x8c] ss:$16 sps:$4 sm:$0xff]   ;;  %v1245_v14 = vld [vmem:[%s1907_s1 + $0x80] ss:$16 sps:$4 sm:$0xff]  }
   0x6   :  { %v1246_v15 = vld [vmem:[%s1907_s1 + $0x88] ss:$16 sps:$4 sm:$0xff]   ;;  %v1247_v16 = vld [vmem:[%s1907_s1 + $0x64] ss:$16 sps:$4 sm:$0xff]   ;;  %v1249_v17 = vld [vmem:[%s1907_s1 + $0x6c] ss:$16 sps:$4 sm:$0xff]  }
   0x7   :  { %441 = vmatpush1.bf16.msra.mxu0 %v1233_v6  ;;  %484 = vmatpush1.bf16.msra.mxu1 %v1234_v7  ;;  %v1251_v18 = vld [vmem:[%s1907_s1 + $0x60] ss:$16 sps:$4 sm:$0xff]   ;;  %v1252_v19 = vld [vmem:[%s1907_s1 + $0x68] ss:$16 sps:$4 sm:$0xff]   ;;  %v1253_v20 = vld [vmem:[%s1907_s1 + $0x44] ss:$16 sps:$4 sm:$0xff]  }
   0x8   :  { %442 = vmatprep.subr.bf16.mxu0 %v1235_v8  ;;  %485 = vmatprep.subr.bf16.mxu1 %v1237_v9  ;;  %v1255_v21 = vld [vmem:[%s1907_s1 + $0x4c] ss:$16 sps:$4 sm:$0xff]   ;;  %v1257_v22 = vld [vmem:[%s1907_s1 + $0x40] ss:$16 sps:$4 sm:$0xff]   ;;  %v1258_v23 = vld [vmem:[%s1907_s1 + $0x48] ss:$16 sps:$4 sm:$0xff]  }
   0x9   :  { %v1259_v24 = vld [vmem:[%s1907_s1 + $0x24] ss:$16 sps:$4 sm:$0xff]   ;;  %v1261_v25 = vld [vmem:[%s1907_s1 + $0x2c] ss:$16 sps:$4 sm:$0xff]   ;;  %v1263_v26 = vld [vmem:[%s1907_s1 + $0x20] ss:$16 sps:$4 sm:$0xff]  }
   0xa   :  { %v1264_v27 = vld [vmem:[%s1907_s1 + $0x28] ss:$16 sps:$4 sm:$0xff]   ;;  %v1265_v28 = vld [vmem:[%s1907_s1 + $0x4] ss:$16 sps:$4 sm:$0xff]   ;;  %v1267_v29 = vld [vmem:[%s1907_s1 + $0xc] ss:$16 sps:$4 sm:$0xff]  }
   0xb   :  { %443 = vmatpush1.bf16.msra.mxu0 %v1239_v10  ;;  %486 = vmatpush1.bf16.msra.mxu1 %v1240_v11  ;;  %v1269_v30 = vld [vmem:[%s1907_s1] ss:$16 sps:$4 sm:$0xff]   ;;  %v1270_v31 = vld [vmem:[%s1907_s1 + $0x8] ss:$16 sps:$4 sm:$0xff]   ;;  %v1271_v32 = vld [vmem:[%s1907_s1 + $0x1e4] ss:$16 sps:$4 sm:$0xff]  }
   0xc   :  { %444 = vmatprep.subr.bf16.mxu0 %v1241_v12  ;;  %487 = vmatprep.subr.bf16.mxu1 %v1243_v13  ;;  %v1273_v33 = vld [vmem:[%s1907_s1 + $0x1ec] ss:$16 sps:$4 sm:$0xff]   ;;  %v1275_v34 = vld [vmem:[%s1907_s1 + $0x1e0] ss:$16 sps:$4 sm:$0xff]   ;;  %v1276_v35 = vld [vmem:[%s1907_s1 + $0x1e8] ss:$16 sps:$4 sm:$0xff]  }
   0xd   :  { %v1277_v36 = vld [vmem:[%s1907_s1 + $0x1c4] ss:$16 sps:$4 sm:$0xff]   ;;  %v1279_v37 = vld [vmem:[%s1907_s1 + $0x1cc] ss:$16 sps:$4 sm:$0xff]   ;;  %v1281_v38 = vld [vmem:[%s1907_s1 + $0x1c0] ss:$16 sps:$4 sm:$0xff]  }
   0xe   :  { %v1282_v39 = vld [vmem:[%s1907_s1 + $0x1c8] ss:$16 sps:$4 sm:$0xff]   ;;  %v1283_v40 = vld [vmem:[%s1907_s1 + $0x1a4] ss:$16 sps:$4 sm:$0xff]   ;;  %v1285_v41 = vld [vmem:[%s1907_s1 + $0x1ac] ss:$16 sps:$4 sm:$0xff]  }
   0xf   :  { %445 = vmatpush1.bf16.msra.mxu0 %v1245_v14  ;;  %488 = vmatpush1.bf16.msra.mxu1 %v1246_v15  ;;  %v1287_v42 = vld [vmem:[%s1907_s1 + $0x1a0] ss:$16 sps:$4 sm:$0xff]   ;;  %v1288_v43 = vld [vmem:[%s1907_s1 + $0x1a8] ss:$16 sps:$4 sm:$0xff]   ;;  %v1289_v44 = vld [vmem:[%s1907_s1 + $0x184] ss:$16 sps:$4 sm:$0xff]  }
  0x10   :  { %446 = vmatprep.subr.bf16.mxu0 %v1247_v16  ;;  %489 = vmatprep.subr.bf16.mxu1 %v1249_v17  ;;  %v1291_v45 = vld [vmem:[%s1907_s1 + $0x18c] ss:$16 sps:$4 sm:$0xff]   ;;  %v1293_v47 = vld [vmem:[%s1907_s1 + $0x180] ss:$16 sps:$4 sm:$0xff]   ;;  %v1294_v48 = vld [vmem:[%s1907_s1 + $0x188] ss:$16 sps:$4 sm:$0xff]  }
  0x11   :  { %v1600_v46 = vld [vmem:[%s1908_s0 + $0x8] sm:$0xff]  ;;  %v1611_v49 = vld [vmem:[%s1908_s0 + $0x18] sm:$0xff]  ;;  %v1295_v50 = vld [vmem:[%s1907_s1 + $0x164] ss:$16 sps:$4 sm:$0xff]  }
  0x12   :  { %v31_v51 = vpack.c.bf16 %v1611_v49, %v1600_v46  ;;  %v1297_v52 = vld [vmem:[%s1907_s1 + $0x16c] ss:$16 sps:$4 sm:$0xff]   ;;  %v1299_v53 = vld [vmem:[%s1907_s1 + $0x160] ss:$16 sps:$4 sm:$0xff]   ;;  %v1300_v54 = vld [vmem:[%s1907_s1 + $0x168] ss:$16 sps:$4 sm:$0xff]  }
  0x13   :  { %447 = vmatpush1.bf16.msra.mxu0 %v1251_v18  ;;  %490 = vmatpush1.bf16.msra.mxu1 %v1252_v19  ;;  %v1301_v55 = vld [vmem:[%s1907_s1 + $0x144] ss:$16 sps:$4 sm:$0xff]   ;;  %v1303_v56 = vld [vmem:[%s1907_s1 + $0x14c] ss:$16 sps:$4 sm:$0xff]   ;;  %v1305_v57 = vld [vmem:[%s1907_s1 + $0x140] ss:$16 sps:$4 sm:$0xff]  }
  0x14   :  { %448 = vmatprep.subr.bf16.mxu0 %v1253_v20  ;;  %491 = vmatprep.subr.bf16.mxu1 %v1255_v21  ;;  %v1306_v58 = vld [vmem:[%s1907_s1 + $0x148] ss:$16 sps:$4 sm:$0xff]   ;;  %v1307_v59 = vld [vmem:[%s1907_s1 + $0x124] ss:$16 sps:$4 sm:$0xff]   ;;  %v1309_v60 = vld [vmem:[%s1907_s1 + $0x12c] ss:$16 sps:$4 sm:$0xff]  }
  0x15   :  { %470 = vmatprep.mubr.bf16.mxu0 %v31_v51  ;;  %513 = vmatprep.mubr.bf16.mxu1 %v31_v51  ;;  %v1311_v61 = vld [vmem:[%s1907_s1 + $0x120] ss:$16 sps:$4 sm:$0xff]   ;;  %v1312_v62 = vld [vmem:[%s1907_s1 + $0x128] ss:$16 sps:$4 sm:$0xff]   ;;  %v1313_v63 = vld [vmem:[%s1907_s1 + $0x104] ss:$16 sps:$4 sm:$0xff]  }
  0x16   :  { %v1315_v0 = vld [vmem:[%s1907_s1 + $0x10c] ss:$16 sps:$4 sm:$0xff]   ;;  %v1317_v1 = vld [vmem:[%s1907_s1 + $0x100] ss:$16 sps:$4 sm:$0xff]   ;;  %v1318_v2 = vld [vmem:[%s1907_s1 + $0x108] ss:$16 sps:$4 sm:$0xff]  }
  0x17   :  { %449 = vmatpush1.bf16.msra.mxu0 %v1257_v22  ;;  %492 = vmatpush1.bf16.msra.mxu1 %v1258_v23  ;;  %v1666_v3 = vld [vmem:[%s1908_s0] sm:$0xff]  ;;  %v1671_v4 = vld [vmem:[%s1908_s0 + $0x10] sm:$0xff] }
  0x18   :  { %450 = vmatprep.subr.bf16.mxu0 %v1259_v24  ;;  %493 = vmatprep.subr.bf16.mxu1 %v1261_v25  ;;  %v1321_v5 = vld [vmem:[%s1909_s3 + $0x74] ss:$8 sps:$4 sm:$0xff]   ;;  %v30_v7 = vpack.c.bf16 %v1671_v4, %v1666_v3  ;;  %v1319_v8 = vld [vmem:[%s1909_s3 + $0x70] ss:$8 sps:$4 sm:$0xff]   ;;  %v1327_v10 = vld [vmem:[%s1909_s3 + $0x64] ss:$8 sps:$4 sm:$0xff]  }
  0x19   :  { %v1324_v6 = vld [vmem:[%s1909_s3 + $0x174] ss:$8 sps:$4 sm:$0xff]   ;;  %v1322_v9 = vld [vmem:[%s1909_s3 + $0x170] ss:$8 sps:$4 sm:$0xff]   ;;  %v1330_v11 = vld [vmem:[%s1909_s3 + $0x164] ss:$8 sps:$4 sm:$0xff]  }
  0x1a   :  { %v1325_v12 = vld [vmem:[%s1909_s3 + $0x60] ss:$8 sps:$4 sm:$0xff]   ;;  %v1333_v14 = vld [vmem:[%s1909_s3 + $0x54] ss:$8 sps:$4 sm:$0xff]   ;;  %v1331_v16 = vld [vmem:[%s1909_s3 + $0x50] ss:$8 sps:$4 sm:$0xff]  }
  0x1b   :  { %451 = vmatpush1.bf16.msra.mxu0 %v1263_v26  ;;  %494 = vmatpush1.bf16.msra.mxu1 %v1264_v27  ;;  %v1328_v13 = vld [vmem:[%s1909_s3 + $0x160] ss:$8 sps:$4 sm:$0xff]   ;;  %v1336_v15 = vld [vmem:[%s1909_s3 + $0x154] ss:$8 sps:$4 sm:$0xff]   ;;  %v1334_v17 = vld [vmem:[%s1909_s3 + $0x150] ss:$8 sps:$4 sm:$0xff]  }
  0x1c   :  { %452 = vmatprep.subr.bf16.mxu0 %v1265_v28  ;;  %495 = vmatprep.subr.bf16.mxu1 %v1267_v29  ;;  %v1339_v18 = vld [vmem:[%s1909_s3 + $0x44] ss:$8 sps:$4 sm:$0xff]   ;;  %v1337_v20 = vld [vmem:[%s1909_s3 + $0x40] ss:$8 sps:$4 sm:$0xff]   ;;  %v1345_v22 = vld [vmem:[%s1909_s3 + $0x34] ss:$8 sps:$4 sm:$0xff]  }
  0x1d   :  { %v1342_v19 = vld [vmem:[%s1909_s3 + $0x144] ss:$8 sps:$4 sm:$0xff]   ;;  %v1340_v21 = vld [vmem:[%s1909_s3 + $0x140] ss:$8 sps:$4 sm:$0xff]   ;;  %v1348_v23 = vld [vmem:[%s1909_s3 + $0x134] ss:$8 sps:$4 sm:$0xff]  }
  0x1e   :  { %v1343_v24 = vld [vmem:[%s1909_s3 + $0x30] ss:$8 sps:$4 sm:$0xff]   ;;  %v1351_v26 = vld [vmem:[%s1909_s3 + $0x24] ss:$8 sps:$4 sm:$0xff]   ;;  %v1349_v28 = vld [vmem:[%s1909_s3 + $0x20] ss:$8 sps:$4 sm:$0xff]  }
  0x1f   :  { %453 = vmatpush1.bf16.msra.mxu0 %v1269_v30  ;;  %496 = vmatpush1.bf16.msra.mxu1 %v1270_v31  ;;  %v1346_v25 = vld [vmem:[%s1909_s3 + $0x130] ss:$8 sps:$4 sm:$0xff]   ;;  %v1354_v27 = vld [vmem:[%s1909_s3 + $0x124] ss:$8 sps:$4 sm:$0xff]   ;;  %v1352_v29 = vld [vmem:[%s1909_s3 + $0x120] ss:$8 sps:$4 sm:$0xff]  }
  0x20   :  { %454 = vmatprep.subr.bf16.mxu0 %v1271_v32  ;;  %497 = vmatprep.subr.bf16.mxu1 %v1273_v33  ;;  %v1357_v30 = vld [vmem:[%s1909_s3 + $0x14] ss:$8 sps:$4 sm:$0xff]   ;;  %v1355_v32 = vld [vmem:[%s1909_s3 + $0x10] ss:$8 sps:$4 sm:$0xff]  }
  0x21   :  { %v1360_v31 = vld [vmem:[%s1909_s3 + $0x114] ss:$8 sps:$4 sm:$0xff]   ;;  %v1358_v33 = vld [vmem:[%s1909_s3 + $0x110] ss:$8 sps:$4 sm:$0xff]  }
  0x22   :  { %v1382_v51 = vld [vmem:[%s1909_s3 + $0x1d0] ss:$8 sps:$4 sm:$0xff]  }
  0x23   :  { %455 = vmatpush2.bf16.msra.mxu0 %v1275_v34  ;;  %498 = vmatpush2.bf16.msra.mxu1 %v1276_v35  ;;  %v1363_v34 = vld [vmem:[%s1909_s3 + $0x4] ss:$8 sps:$4 sm:$0xff]  }
  0x24   :  { %456 = vmatprep.subr.bf16.mxu0 %v1277_v36  ;;  %499 = vmatprep.subr.bf16.mxu1 %v1279_v37  ;;  %v1366_v35 = vld [vmem:[%s1909_s3 + $0x104] ss:$8 sps:$4 sm:$0xff]   ;;  %v1361_v36 = vld [vmem:[%s1909_s3] ss:$8 sps:$4 sm:$0xff]  }
  0x25   :  { %v1364_v37 = vld [vmem:[%s1909_s3 + $0x100] ss:$8 sps:$4 sm:$0xff]  }
  0x27   :  { %457 = vmatpush2.bf16.msra.mxu0 %v1281_v38  ;;  %500 = vmatpush2.bf16.msra.mxu1 %v1282_v39  ;;  %v1369_v38 = vld [vmem:[%s1909_s3 + $0xf4] ss:$8 sps:$4 sm:$0xff]  }
  0x28   :  { %458 = vmatprep.subr.bf16.mxu0 %v1283_v40  ;;  %501 = vmatprep.subr.bf16.mxu1 %v1285_v41  ;;  %v1372_v39 = vld [vmem:[%s1909_s3 + $0x1f4] ss:$8 sps:$4 sm:$0xff]   ;;  %v1367_v40 = vld [vmem:[%s1909_s3 + $0xf0] ss:$8 sps:$4 sm:$0xff]  }
  0x29   :  { %v1370_v41 = vld [vmem:[%s1909_s3 + $0x1f0] ss:$8 sps:$4 sm:$0xff]  }
  0x2b   :  { %459 = vmatpush2.bf16.msra.mxu0 %v1287_v42  ;;  %502 = vmatpush2.bf16.msra.mxu1 %v1288_v43  ;;  %v1375_v42 = vld [vmem:[%s1909_s3 + $0xe4] ss:$8 sps:$4 sm:$0xff]  }
  0x2c   :  { %460 = vmatprep.subr.bf16.mxu0 %v1289_v44  ;;  %503 = vmatprep.subr.bf16.mxu1 %v1291_v45  ;;  %v1378_v43 = vld [vmem:[%s1909_s3 + $0x1e4] ss:$8 sps:$4 sm:$0xff]   ;;  %v1373_v44 = vld [vmem:[%s1909_s3 + $0xe0] ss:$8 sps:$4 sm:$0xff]  }
  0x2d   :  { %v1376_v45 = vld [vmem:[%s1909_s3 + $0x1e0] ss:$8 sps:$4 sm:$0xff]  }
  0x2f   :  { %461 = vmatpush2.bf16.msra.mxu0 %v1293_v47  ;;  %504 = vmatpush2.bf16.msra.mxu1 %v1294_v48  ;;  %v1381_v47 = vld [vmem:[%s1909_s3 + $0xd4] ss:$8 sps:$4 sm:$0xff]  }
  0x30   :  { %462 = vmatprep.subr.bf16.mxu0 %v1295_v50  ;;  %505 = vmatprep.subr.bf16.mxu1 %v1297_v52  ;;  %v1384_v48 = vld [vmem:[%s1909_s3 + $0x1d4] ss:$8 sps:$4 sm:$0xff]   ;;  %v1379_v50 = vld [vmem:[%s1909_s3 + $0xd0] ss:$8 sps:$4 sm:$0xff]   ;;  %v1387_v52 = vld [vmem:[%s1909_s3 + $0xc4] ss:$8 sps:$4 sm:$0xff]  }
  0x33   :  { %463 = vmatpush2.bf16.msra.mxu0 %v1299_v53  ;;  %506 = vmatpush2.bf16.msra.mxu1 %v1300_v54  ;;  %v1390_v53 = vld [vmem:[%s1909_s3 + $0x1c4] ss:$8 sps:$4 sm:$0xff]   ;;  %v1385_v54 = vld [vmem:[%s1909_s3 + $0xc0] ss:$8 sps:$4 sm:$0xff]  }
  0x34   :  { %464 = vmatprep.subr.bf16.mxu0 %v1301_v55  ;;  %507 = vmatprep.subr.bf16.mxu1 %v1303_v56  ;;  %v1388_v55 = vld [vmem:[%s1909_s3 + $0x1c0] ss:$8 sps:$4 sm:$0xff]   ;;  %v1393_v56 = vld [vmem:[%s1909_s3 + $0xb4] ss:$8 sps:$4 sm:$0xff]  }
  0x37   :  { %465 = vmatpush2.bf16.msra.mxu0 %v1305_v57  ;;  %508 = vmatpush2.bf16.msra.mxu1 %v1306_v58  ;;  %v1396_v57 = vld [vmem:[%s1909_s3 + $0x1b4] ss:$8 sps:$4 sm:$0xff]   ;;  %v1391_v58 = vld [vmem:[%s1909_s3 + $0xb0] ss:$8 sps:$4 sm:$0xff]  }
  0x38   :  { %466 = vmatprep.subr.bf16.mxu0 %v1307_v59  ;;  %509 = vmatprep.subr.bf16.mxu1 %v1309_v60  ;;  %v1394_v59 = vld [vmem:[%s1909_s3 + $0x1b0] ss:$8 sps:$4 sm:$0xff]   ;;  %v1399_v60 = vld [vmem:[%s1909_s3 + $0xa4] ss:$8 sps:$4 sm:$0xff]  }
  0x3b   :  { %467 = vmatpush2.bf16.msra.mxu0 %v1311_v61  ;;  %510 = vmatpush2.bf16.msra.mxu1 %v1312_v62  ;;  %v1402_v61 = vld [vmem:[%s1909_s3 + $0x1a4] ss:$8 sps:$4 sm:$0xff]   ;;  %v1397_v62 = vld [vmem:[%s1909_s3 + $0xa0] ss:$8 sps:$4 sm:$0xff]  }
  0x3c   :  { %468 = vmatprep.subr.bf16.mxu0 %v1313_v63  ;;  %511 = vmatprep.subr.bf16.mxu1 %v1315_v0  ;;  %v1400_v63 = vld [vmem:[%s1909_s3 + $0x1a0] ss:$8 sps:$4 sm:$0xff]   ;;  %v1405_v0 = vld [vmem:[%s1909_s3 + $0x94] ss:$8 sps:$4 sm:$0xff]  }
  0x3f   :  { %469 = vmatpush2.bf16.msra.mxu0 %v1317_v1  ;;  %512 = vmatpush2.bf16.msra.mxu1 %v1318_v2  ;;  %v1408_v1 = vld [vmem:[%s1909_s3 + $0x194] ss:$8 sps:$4 sm:$0xff]   ;;  %v1403_v2 = vld [vmem:[%s1909_s3 + $0x90] ss:$8 sps:$4 sm:$0xff]  }
  0x40   :  { %932 = vmatprep.subr.bf16.mxu0 %v1321_v5  ;;  %975 = vmatprep.subr.bf16.mxu1 %v1324_v6  ;;  %v1406_v5 = vld [vmem:[%s1909_s3 + $0x190] ss:$8 sps:$4 sm:$0xff]   ;;  %v1411_v6 = vld [vmem:[%s1909_s3 + $0x84] ss:$8 sps:$4 sm:$0xff]  }
  0x42   :  { %471 = vmatmul.mubr.bf16.vlgmr.msra.gmra.mxu0 %v30_v7  ;;  %514 = vmatmul.mubr.bf16.vlgmr.msra.gmra.mxu1 %v30_v7  ;;  %v1414_v7 = vld [vmem:[%s1909_s3 + $0x184] ss:$8 sps:$4 sm:$0xff]  }
  0x43   :  { %933 = vmatpush1.bf16.msra.mxu0 %v1319_v8  ;;  %976 = vmatpush1.bf16.msra.mxu1 %v1322_v9  ;;  %v1409_v8 = vld [vmem:[%s1909_s3 + $0x80] ss:$8 sps:$4 sm:$0xff]  }
  0x44   :  { %934 = vmatprep.subr.bf16.mxu0 %v1327_v10  ;;  %977 = vmatprep.subr.bf16.mxu1 %v1330_v11  ;;  %v1412_v9 = vld [vmem:[%s1909_s3 + $0x180] ss:$8 sps:$4 sm:$0xff]   ;;  %v98_v10 = vlaneseq }
  0x46   :  { %v99_v11 = vshrl.u32 %v98_v10, 7 }
  0x47   :  { %935 = vmatpush1.bf16.msra.mxu0 %v1325_v12  ;;  %978 = vmatpush1.bf16.msra.mxu1 %v1328_v13 }
  0x48   :  { %936 = vmatprep.subr.bf16.mxu0 %v1333_v14  ;;  %979 = vmatprep.subr.bf16.mxu1 %v1336_v15  ;;  %v1867_v12 = vsub.s32 1, %v99_v11  ;;  %v112_v13 = vsub.s32 3, %v99_v11  ;;  %v1869_v14 = vsub.s32 0, %v99_v11  ;;  %v108_v15 = vsub.s32 2, %v99_v11 }
  0x4b   :  { %937 = vmatpush1.bf16.msra.mxu0 %v1331_v16  ;;  %980 = vmatpush1.bf16.msra.mxu1 %v1334_v17  ;;  %v96_v16 = vld [vmem:[%s1910_s2] sm:$0xf] }
  0x4c   :  { %938 = vmatprep.subr.bf16.mxu0 %v1339_v18  ;;  %981 = vmatprep.subr.bf16.mxu1 %v1342_v19  ;;  %v105_v19 = vrot.slane %v96_v16, %v1867_v12 }
  0x4f   :  { %939 = vmatpush1.bf16.msra.mxu0 %v1337_v20  ;;  %982 = vmatpush1.bf16.msra.mxu1 %v1340_v21  ;;  %v113_v20 = vrot.slane %v96_v16, %v112_v13  ;;  %v101_v21 = vrot.slane %v96_v16, %v1869_v14 }
  0x50   :  { %940 = vmatprep.subr.bf16.mxu0 %v1345_v22  ;;  %983 = vmatprep.subr.bf16.mxu1 %v1348_v23  ;;  %v109_v22 = vrot.slane %v96_v16, %v108_v15 }
  0x53   :  { %941 = vmatpush1.bf16.msra.mxu0 %v1343_v24  ;;  %984 = vmatpush1.bf16.msra.mxu1 %v1346_v25 }
  0x54   :  { %942 = vmatprep.subr.bf16.mxu0 %v1351_v26  ;;  %985 = vmatprep.subr.bf16.mxu1 %v1354_v27 }
  0x57   :  { %943 = vmatpush1.bf16.msra.mxu0 %v1349_v28  ;;  %986 = vmatpush1.bf16.msra.mxu1 %v1352_v29 }
  0x58   :  { %944 = vmatprep.subr.bf16.mxu0 %v1357_v30  ;;  %987 = vmatprep.subr.bf16.mxu1 %v1360_v31 }
  0x5b   :  { %945 = vmatpush1.bf16.msra.mxu0 %v1355_v32  ;;  %988 = vmatpush1.bf16.msra.mxu1 %v1358_v33 }
  0x5c   :  { %946 = vmatprep.subr.bf16.mxu0 %v1363_v34  ;;  %989 = vmatprep.subr.bf16.mxu1 %v1366_v35 }
  0x5f   :  { %947 = vmatpush1.bf16.msra.mxu0 %v1361_v36  ;;  %990 = vmatpush1.bf16.msra.mxu1 %v1364_v37 }
  0x60   :  { %948 = vmatprep.subr.bf16.mxu0 %v1369_v38  ;;  %991 = vmatprep.subr.bf16.mxu1 %v1372_v39 }
  0x63   :  { %949 = vmatpush2.bf16.msra.mxu0 %v1367_v40  ;;  %992 = vmatpush2.bf16.msra.mxu1 %v1370_v41 }
  0x64   :  { %950 = vmatprep.subr.bf16.mxu0 %v1375_v42  ;;  %993 = vmatprep.subr.bf16.mxu1 %v1378_v43 }
  0x67   :  { %951 = vmatpush2.bf16.msra.mxu0 %v1373_v44  ;;  %994 = vmatpush2.bf16.msra.mxu1 %v1376_v45 }
  0x68   :  { %952 = vmatprep.subr.bf16.mxu0 %v1381_v47  ;;  %995 = vmatprep.subr.bf16.mxu1 %v1384_v48 }
  0x6b   :  { %953 = vmatpush2.bf16.msra.mxu0 %v1379_v50  ;;  %996 = vmatpush2.bf16.msra.mxu1 %v1382_v51  ;;  %v600_v51 = vld [vmem:[%s1911_s4] sm:$0x3] }
  0x6c   :  { %954 = vmatprep.subr.bf16.mxu0 %v1387_v52  ;;  %997 = vmatprep.subr.bf16.mxu1 %v1390_v53  ;;  %v605_v52 = vrot.slane %v600_v51, %v1869_v14  ;;  %v609_v53 = vrot.slane %v600_v51, %v1867_v12 }
  0x6f   :  { %955 = vmatpush2.bf16.msra.mxu0 %v1385_v54  ;;  %998 = vmatpush2.bf16.msra.mxu1 %v1388_v55 }
  0x70   :  { %956 = vmatprep.subr.bf16.mxu0 %v1393_v56  ;;  %999 = vmatprep.subr.bf16.mxu1 %v1396_v57 }
  0x73   :  { %957 = vmatpush2.bf16.msra.mxu0 %v1391_v58  ;;  %1000 = vmatpush2.bf16.msra.mxu1 %v1394_v59 }
  0x74   :  { %958 = vmatprep.subr.bf16.mxu0 %v1399_v60  ;;  %1001 = vmatprep.subr.bf16.mxu1 %v1402_v61 }
  0x77   :  { %959 = vmatpush2.bf16.msra.mxu0 %v1397_v62  ;;  %1002 = vmatpush2.bf16.msra.mxu1 %v1400_v63 }
  0x78   :  { %960 = vmatprep.subr.bf16.mxu0 %v1405_v0  ;;  %1003 = vmatprep.subr.bf16.mxu1 %v1408_v1 }
  0x7b   :  { %961 = vmatpush2.bf16.msra.mxu0 %v1403_v2  ;;  %1004 = vmatpush2.bf16.msra.mxu1 %v1406_v5 }
  0x7c   :  { %962 = vmatprep.subr.bf16.mxu0 %v1411_v6  ;;  %1005 = vmatprep.subr.bf16.mxu1 %v1414_v7 }
  0x7f   :  { %963 = vmatpush2.bf16.msra.mxu0 %v1409_v8  ;;  %1006 = vmatpush2.bf16.msra.mxu1 %v1412_v9 }
 0x102   :  { %v472_v17 = vpop.f32.mrf.mxu0  ;;  %v515_v18 = vpop.f32.mrf.mxu1 }
 0x103   :  { %v473_v31 = vadd.f32 %v472_v17, %v101_v21  ;;  %v516_v32 = vadd.f32 %v515_v18, %v109_v22 }
 0x104   :  { %v474_v23 = vpop.f32.mrf.mxu0  ;;  %v517_v24 = vpop.f32.mrf.mxu1 }
 0x105   :  { %v475_v27 = vadd.f32 %v474_v23, %v105_v19  ;;  %v518_v28 = vadd.f32 %v517_v24, %v113_v20  ;;  %v524_v43 = vmax.f32 %v473_v31, 0.0  ;;  %v526_v44 = vmax.f32 %v516_v32, 0.0  ;;  %v1055_v32 = vld [vmem:[%s1912_s5] sm:$0x3] }
 0x106   :  { %v476_v25 = vpop.f32.mrf.mxu0  ;;  %v519_v26 = vpop.f32.mrf.mxu1 }
 0x107   :  { %v477_v29 = vadd.f32 %v476_v25, %v101_v21  ;;  %v520_v30 = vadd.f32 %v519_v26, %v109_v22  ;;  %v525_v39 = vmax.f32 %v475_v27, 0.0  ;;  %v527_v40 = vmax.f32 %v518_v28, 0.0 }
 0x108   :  { %v478_v33 = vpop.f32.mrf.mxu0  ;;  %v521_v34 = vpop.f32.mrf.mxu1 }
 0x109   :  { %v479_v35 = vadd.f32 %v478_v33, %v105_v19  ;;  %v522_v36 = vadd.f32 %v521_v34, %v113_v20  ;;  %v528_v37 = vmax.f32 %v477_v29, 0.0  ;;  %v530_v38 = vmax.f32 %v520_v30, 0.0  ;;  %v1071_v33 = vld [vmem:[%s1913_s6] sm:$0x3] }
 0x10a   :  { %v1060_v34 = vrot.slane %v1055_v32, %v1869_v14 }
 0x10b   :  { %v529_v41 = vmax.f32 %v479_v35, 0.0  ;;  %v531_v42 = vmax.f32 %v522_v36, 0.0  ;;  %v532_v48 = vpack.c.bf16 %v528_v37, %v524_v43  ;;  %v534_v50 = vpack.c.bf16 %v530_v38, %v526_v44 }
 0x10c   :  { %v1064_v35 = vrot.slane %v1055_v32, %v1867_v12  ;;  %v1076_v37 = vrot.slane %v1071_v33, %v1869_v14  ;;  %v1080_v38 = vrot.slane %v1071_v33, %v1867_v12 }
 0x10d   :  { %v533_v45 = vpack.c.bf16 %v529_v41, %v525_v39  ;;  %v535_v47 = vpack.c.bf16 %v531_v42, %v527_v40 }
 0x10f   :  { %964 = vmatprep.mubr.bf16.mxu0 %v533_v45  ;;  %1007 = vmatprep.mubr.bf16.mxu1 %v535_v47 }
 0x110   :  { %965 = vmatmul.mubr.bf16.vlgmr.msra.gmra.mxu0 %v532_v48  ;;  %1008 = vmatmul.mubr.bf16.vlgmr.msra.gmra.mxu1 %v534_v50 }
 0x1d0   :  { %v966_v54 = vpop.f32.mrf.mxu0  ;;  %v1009_v55 = vpop.f32.mrf.mxu1 }
 0x1d1   :  { %v967_v56 = vadd.f32 %v966_v54, %v605_v52 }
 0x1d2   :  { %v968_v57 = vpop.f32.mrf.mxu0  ;;  %v1011_v58 = vpop.f32.mrf.mxu1 }
 0x1d3   :  { %v1010_v59 = vadd.f32 %v1009_v55, %v967_v56  ;;  %v969_v60 = vadd.f32 %v968_v57, %v609_v53 }
 0x1d4   :  { %v970_v61 = vpop.f32.mrf.mxu0  ;;  %v1013_v62 = vpop.f32.mrf.mxu1 }
 0x1d5   :  { %v1012_v63 = vadd.f32 %v1011_v58, %v969_v60  ;;  %v971_v0 = vadd.f32 %v970_v61, %v605_v52  ;;  %v1018_v6 = vadd.f32 %v1010_v59, %v1666_v3 }
 0x1d6   :  { %v972_v1 = vpop.f32.mrf.mxu0  ;;  %v1015_v8 = vpop.f32.mrf.mxu1 }
 0x1d7   :  { %v1014_v2 = vadd.f32 %v1013_v62, %v971_v0  ;;  %v973_v5 = vadd.f32 %v972_v1, %v609_v53  ;;  %v1019_v7 = vadd.f32 %v1012_v63, %v1600_v46 }
 0x1d9   :  { %v1016_v9 = vadd.f32 %v1015_v8, %v973_v5  ;;  %v1022_v10 = vadd.f32 %v1019_v7, %v1018_v6  ;;  %v1020_v11 = vadd.f32 %v1014_v2, %v1671_v4 }
 0x1db   :  { %v1021_v13 = vadd.f32 %v1016_v9, %v1611_v49  ;;  %1023 = vadd.xlane.f32.xlu0 %v1022_v10 }
 0x1dd   :  { %v1025_v15 = vadd.f32 %v1021_v13, %v1020_v11 }
 0x1df   :  { %1026 = vadd.xlane.f32.xlu0 %v1025_v15 }
 0x264   :  { %v1024_v16 = vpop.xlane.xlu0 %1023 }
 0x265   :  { %v1029_v17 = vmul.f32 0.00390625, %v1024_v16 }
 0x267   :  { %v1031_v18 = vsub.f32 %v1018_v6, %v1029_v17  ;;  %v1032_v19 = vsub.f32 %v1019_v7, %v1029_v17 }
 0x268   :  { %v1027_v20 = vpop.xlane.xlu0 %1026 }
 0x269   :  { %v1030_v21 = vmul.f32 0.00390625, %v1027_v20  ;;  %v1035_v22 = vmul.f32 %v1031_v18, %v1031_v18  ;;  %v1036_v3 = vmul.f32 %v1032_v19, %v1032_v19 }
 0x26b   :  { %v1033_v23 = vsub.f32 %v1020_v11, %v1030_v21  ;;  %v1034_v46 = vsub.f32 %v1021_v13, %v1030_v21  ;;  %v1039_v24 = vadd.f32 %v1036_v3, %v1035_v22 }
 0x26d   :  { %1040 = vadd.xlane.f32.xlu1 %v1039_v24  ;;  %v1037_v25 = vmul.f32 %v1033_v23, %v1033_v23  ;;  %v1038_v26 = vmul.f32 %v1034_v46, %v1034_v46 }
 0x26f   :  { %v1042_v4 = vadd.f32 %v1038_v26, %v1037_v25 }
 0x271   :  { %1043 = vadd.xlane.f32.xlu1 %v1042_v4 }
 0x2f6   :  { %v1041_v49 = vpop.xlane.xlu1 %1040 }
 0x2f7   :  { %v1045_v27 = vmul.f32 0.00390625, %v1041_v49 }
 0x2f9   :  { %v1047_v28 = vadd.f32 1e-05, %v1045_v27 }
 0x2fa   :  { %v1044_v29 = vpop.xlane.xlu1 %1043 }
 0x2fb   :  { %1415 = vrsqrt.f32 %v1047_v28  ;;  %v1046_v30 = vmul.f32 0.00390625, %v1044_v29 }
 0x2fd   :  { %v1048_v31 = vadd.f32 1e-05, %v1046_v30 }
 0x2ff   :  { %1417 = vrsqrt.f32 %v1048_v31 }
 0x308   :  { %v1416_v36 = vpop.eup %1415 }
 0x309   :  { %v1051_v39 = vmul.f32 %v1416_v36, %v1031_v18  ;;  %v1052_v40 = vmul.f32 %v1416_v36, %v1032_v19 }
 0x30b   :  { %v1067_v41 = vmul.f32 %v1060_v34, %v1051_v39  ;;  %v1068_v42 = vmul.f32 %v1064_v35, %v1052_v40 }
 0x30c   :  { %v1418_v43 = vpop.eup %1417 }
 0x30d   :  { %v1083_v44 = vadd.f32 %v1076_v37, %v1067_v41  ;;  %v1084_v45 = vadd.f32 %v1080_v38, %v1068_v42  ;;  %v1053_v47 = vmul.f32 %v1418_v43, %v1033_v23  ;;  %v1054_v48 = vmul.f32 %v1418_v43, %v1034_v46 }
 0x30f   :  { %1087 = vst [vmem:[%s1914_s7] sm:$0xff] %v1083_v44  ;;  %1088 = vst [vmem:[%s1914_s7 + $0x8] sm:$0xff] %v1084_v45  ;;  %v1069_v14 = vmul.f32 %v1060_v34, %v1053_v47  ;;  %v1070_v50 = vmul.f32 %v1064_v35, %v1054_v48 }
 0x311   :  { %v1085_v12 = vadd.f32 %v1076_v37, %v1069_v14  ;;  %v1086_v51 = vadd.f32 %v1080_v38, %v1070_v50 }
 0x313   :  { %1089 = vst [vmem:[%s1914_s7 + $0x10] sm:$0xff] %v1085_v12  ;;  %1090 = vst [vmem:[%s1914_s7 + $0x18] sm:$0xff] %v1086_v51 }

</bundles_post_ra>
